<compile_context>
chip_gen: v7x
topology: tpu7x:2x2x1
jax: 0.10.0
libtpu: 0.0.40
codegen_flags: <defaults>
</compile_context>

<pallas_src>
import functools

import jax
import jax.numpy as jnp
from jax.experimental import pallas as pl
from jax.experimental.pallas import tpu as pltpu


def _default_vmem_limit_bytes():
    cap = 128 * 1024 * 1024
    try:
        cap = int(pltpu.get_tpu_info().vmem_capacity_bytes)
    except Exception:
        pass
    # <= ~3/4 of physical VMEM, capped at 96 MiB: 96 MiB on v5e/v6e (128 MiB),
    # 48 MiB on v7x (64 MiB).
    return int(min(96 * 1024 * 1024, (cap * 3) // 4))


_VMEM_LIMIT_BYTES = _default_vmem_limit_bytes()


# ----------------------------------------------------------------------------
# Kernel 1: conv as a single K-folded MXU matmul from a per-image im2col slab
# held in persistent VMEM scratch, plus per-image [sum, centered-ssq] BN
# partials.  Grid = (N, n_cblk): image OUTER (stays resident), channels inner.
# ----------------------------------------------------------------------------
def _make_conv_stats_kernel(H, W, C_in, KH, KW):
    HW = H * W
    inv_hw = 1.0 / float(HW)

    def kernel(x_ref, w_ref, o_ref, s_ref, col_ref):
        # x_ref:   (Hp, Wp, C_in)       padded image (resident across c blocks)
        # w_ref:   (KH*KW*C_in, tc)     K-folded weights for this channel block
        # o_ref:   (HW, tc)             conv output (f32 or bf16)
        # s_ref:   (2, tc)              per-image [sum, centered sum-of-squares]
        # col_ref: (HW, KH*KW*C_in)     persistent per-image im2col scratch

        # Build the im2col slab once per image; the channel-block axis is the
        # inner, sequential ("arbitrary") axis, so all channel blocks reuse it
        # -> no per-channel-block slice/reshape copies on the hot path.
        @pl.when(pl.program_id(1) == 0)
        def _():
            for t in range(KH * KW):
                ky, kx = divmod(t, KW)
                xs = x_ref[pl.ds(ky, H), pl.ds(kx, W), :].reshape(HW, C_in)
                col_ref[:, pl.ds(t * C_in, C_in)] = xs.astype(col_ref.dtype)

        # One matmul with K = KH*KW*C_in (fills the MXU contraction even for
        # small C_in), accumulated in f32.
        acc = jnp.dot(col_ref[...], w_ref[...],
                      preferred_element_type=jnp.float32)        # (HW, tc)
        o_ref[...] = acc.astype(o_ref.dtype)

        # Per-image centered second moment; combined across images in JAX via
        # the pooled-variance formula (avoids E[x^2]-E[x]^2 cancellation).
        s0 = jnp.sum(acc, axis=0, keepdims=True)                 # (1, tc)
        d = acc - s0 * inv_hw
        css = jnp.sum(d * d, axis=0, keepdims=True)              # (1, tc)
        s_ref[...] = jnp.concatenate([s0, css], axis=0)

    return kernel


# ----------------------------------------------------------------------------
# Kernel 2: fused BatchNorm affine (precomputed scale/shift) + ReLU, in place.
# ----------------------------------------------------------------------------
def _bn_relu_kernel(x_ref, scale_ref, shift_ref, o_ref):
    y = x_ref[...].astype(jnp.float32) * scale_ref[...] + shift_ref[...]
    o_ref[...] = jnp.maximum(y, 0.0).astype(o_ref.dtype)


@functools.partial(jax.jit, static_argnames=("use_bf16",))
def conv_bn_relu(x_nchw, conv_w, gamma, beta, *, eps=1e-5, use_bf16=False):
    """x_nchw: (N, C_in, H, W); conv_w: (C_out, C_in, KH, KW); gamma/beta: (C_out,).

    Stride-1, "same"-padded conv -> BN (batch stats, biased var) -> ReLU. NCHW out.
    """
    N, C_in, H, W = x_nchw.shape
    C_out, _, KH, KW = conv_w.shape
    HW = H * W
    M = N * HW
    K_total = KH * KW * C_in

    compute_dtype = jnp.bfloat16 if use_bf16 else jnp.float32
    inter_dtype = jnp.bfloat16 if use_bf16 else jnp.float32

    # ---- layout glue: NCHW -> NHWC, zero pad spatially (padding = ks // 2) ----
    # TODO(synk): staying NHWC end-to-end (with in-kernel padding) would remove
    # two full-tensor HBM round trips per layer; NCHW kept to match PyTorch.
    ph, pw = KH // 2, KW // 2
    x_nhwc = jnp.transpose(x_nchw, (0, 2, 3, 1)).astype(compute_dtype)
    x_pad = jnp.pad(x_nhwc, ((0, 0), (ph, ph), (pw, pw), (0, 0)))
    Hp, Wp = H + 2 * ph, W + 2 * pw

    # K-folded weights: (Cout,Cin,kh,kw) -> (kh,kw,Cin,Cout) -> (K_total, Cout),
    # matching the im2col column ordering (tap-major, then C_in).
    w_fold = jnp.transpose(conv_w, (2, 3, 1, 0)).reshape(K_total, C_out)
    w_fold = w_fold.astype(compute_dtype)

    # Channel blocking: 256 matches the v6e/v7x MXU N-width; 128-native v5e
    # still splits it cleanly.  Dense lane dim for all real DCTNet layers.
    tc = min(C_out, 256)
    n_cblk = pl.cdiv(C_out, tc)

    conv_kernel = _make_conv_stats_kernel(H, W, C_in, KH, KW)

    # ---- Pallas call 1: conv + per-image channel statistics ------------------
    conv_out, part_stats = pl.pallas_call(
        conv_kernel,
        out_shape=(
            jax.ShapeDtypeStruct((N, HW, C_out), inter_dtype),
            jax.ShapeDtypeStruct((N, 2, C_out), jnp.float32),
        ),
        grid=(N, n_cblk),                      # image OUTER -> stays resident
        in_specs=[
            pl.BlockSpec((None, Hp, Wp, C_in), lambda n, c: (n, 0, 0, 0)),
            pl.BlockSpec((K_total, tc), lambda n, c: (0, c)),
        ],
        out_specs=[
            pl.BlockSpec((None, HW, tc), lambda n, c: (n, 0, c)),
            pl.BlockSpec((None, 2, tc), lambda n, c: (n, 0, c)),
        ],
        scratch_shapes=[pltpu.VMEM((HW, K_total), compute_dtype)],
        compiler_params=pltpu.CompilerParams(
            # channel-block axis carries the per-image im2col scratch state ->
            # "arbitrary"; image axis is "parallel" (feeds both v7x TCs, N>=2).
            dimension_semantics=("parallel", "arbitrary"),
            vmem_limit_bytes=_VMEM_LIMIT_BYTES,
        ),
    )(x_pad, w_fold)

    # ---- fold BN (training-mode batch stats, biased variance) ----------------
    # Pooled (Chan) combine of per-image centered moments: exact in exact
    # arithmetic, no E[x^2]-E[x]^2 cancellation.
    s0 = part_stats[:, 0, :]                   # (N, C_out) per-image sums
    css = part_stats[:, 1, :]                  # (N, C_out) centered ssq
    m_img = s0 / HW
    mean = jnp.sum(s0, axis=0) / M
    var = (jnp.sum(css, axis=0)
           + HW * jnp.sum((m_img - mean[None, :]) ** 2, axis=0)) / M
    var = jnp.maximum(var, 0.0)
    scale = gamma.astype(jnp.float32) * jax.lax.rsqrt(var + eps)   # (C_out,)
    shift = beta.astype(jnp.float32) - mean * scale                # (C_out,)

    # ---- Pallas call 2: normalize + ReLU, in place over conv_out -------------
    conv_flat = conv_out.reshape(M, C_out)
    itemsize = jnp.dtype(inter_dtype).itemsize
    target_bytes = 2 * 1024 * 1024             # ~2 MiB blocks: ~85% HBM roofline
    rows = max(8, (target_bytes // max(1, C_out * itemsize)) // 8 * 8)
    tm_eff = min(rows, M)                      # full dim or a multiple of 8
    grid_m = pl.cdiv(M, tm_eff)                # remainder block handled by Pallas

    out_flat = pl.pallas_call(
        _bn_relu_kernel,
        out_shape=jax.ShapeDtypeStruct((M, C_out), inter_dtype),
        grid=(grid_m,),
        in_specs=[
            pl.BlockSpec((tm_eff, C_out), lambda i: (i, 0)),
            pl.BlockSpec((1, C_out), lambda i: (0, 0)),
            pl.BlockSpec((1, C_out), lambda i: (0, 0)),
        ],
        out_specs=pl.BlockSpec((tm_eff, C_out), lambda i: (i, 0)),
        input_output_aliases={0: 0},           # reuse conv_out's buffer
        compiler_params=pltpu.CompilerParams(
            dimension_semantics=("parallel",),
            vmem_limit_bytes=_VMEM_LIMIT_BYTES,
        ),
    )(conv_flat, scale.reshape(1, C_out), shift.reshape(1, C_out))

    out = out_flat.reshape(N, H, W, C_out)
    # TODO(synk): fusing this NHWC->NCHW transpose into kernel 2 (channel-major
    # out blocks via the XLU) would save another full HBM round trip.
    return jnp.transpose(out, (0, 3, 1, 2)).astype(jnp.float32)


# ----------------------------------------------------------------------------
# Pure-JAX reference (same semantics) for a sanity check.
# ----------------------------------------------------------------------------
def _reference(x_nchw, conv_w, gamma, beta, eps=1e-5):
    y = jax.lax.conv_general_dilated(
        x_nchw, conv_w, window_strides=(1, 1), padding=((1, 1), (1, 1)),
        dimension_numbers=("NCHW", "OIHW", "NCHW"))
    mean = jnp.mean(y, axis=(0, 2, 3), keepdims=True)
    var = jnp.mean((y - mean) ** 2, axis=(0, 2, 3), keepdims=True)
    yhat = (y - mean) / jnp.sqrt(var + eps)
    yhat = yhat * gamma.reshape(1, -1, 1, 1) + beta.reshape(1, -1, 1, 1)
    return jnp.maximum(yhat, 0.0)


if __name__ == "__main__":
    key = jax.random.PRNGKey(0)
    k_x, k_w, k_g, k_b = jax.random.split(key, 4)

    N, C_in, H, W = 2, 4, 16, 16
    C_out = 8

    x = jax.random.normal(k_x, (N, C_in, H, W), dtype=jnp.float32)
    # Deterministic synthetic parameters (shapes per nn.Conv2d / nn.BatchNorm2d).
    conv_w = jax.random.normal(k_w, (C_out, C_in, 3, 3), dtype=jnp.float32) * 0.1
    gamma = jnp.ones((C_out,), jnp.float32) + 0.1 * jax.random.normal(k_g, (C_out,))
    beta = 0.1 * jax.random.normal(k_b, (C_out,), dtype=jnp.float32)

    ref = _reference(x, conv_w, gamma, beta)

    # f32 MXU path: exactness check against the reference.
    out = jax.block_until_ready(conv_bn_relu(x, conv_w, gamma, beta))
    assert out.shape == (N, C_out, H, W)
    assert jnp.allclose(out, ref, atol=1e-4, rtol=1e-4), "f32 path mismatch vs reference"

    # bf16 MXU path (v6e/v7x perf option, bf16 intermediate): looser sanity check.
    out_bf16 = jax.block_until_ready(conv_bn_relu(x, conv_w, gamma, beta, use_bf16=True))
    assert jnp.allclose(out_bf16, ref, atol=1e-1, rtol=1e-1), "bf16 path mismatch vs reference"

    print("KERNEL_OK")
</pallas_src>

<mosaic_0001>
module attributes {stable_mosaic.version = 11 : i64} {
  func.func @kernel(%arg0: i32, %arg1: i32, %arg2: memref<1x18x18x4xf32, #tpu.memory_space<vmem>>, %arg3: memref<36x8xf32, #tpu.memory_space<vmem>>, %arg4: memref<1x256x8xf32, #tpu.memory_space<vmem>>, %arg5: memref<1x2x8xf32, #tpu.memory_space<vmem>>, %arg6: memref<256x36xf32, #tpu.memory_space<vmem>>) attributes {dimension_semantics = [#tpu.dimension_semantics<parallel>, #tpu.dimension_semantics<arbitrary>], iteration_bounds = array<i64: 2, 1>, scalar_prefetch = 0 : i64, scratch_operands = 1 : i64, tpu.core_type = #tpu.core_type<tc>, window_params = [{transform_indices = @transform_0, window_bounds = array<i64: 1, 18, 18, 4>}, {transform_indices = @transform_1, window_bounds = array<i64: 36, 8>}, {transform_indices = @transform_2, window_bounds = array<i64: 1, 256, 8>}, {transform_indices = @transform_3, window_bounds = array<i64: 1, 2, 8>}]} {
    %c0_i32 = arith.constant 0 : i32
    %0 = arith.cmpi eq, %arg1, %c0_i32 : i32
    %1 = arith.extui %0 : i1 to i32
    %c0_i32_0 = arith.constant 0 : i32
    %2 = arith.cmpi ne, %1, %c0_i32_0 : i32
    scf.if %2 {
      %c0_13 = arith.constant 0 : index
      %c0_14 = arith.constant 0 : index
      %c0_15 = arith.constant 0 : index
      %c0_16 = arith.constant 0 : index
      %22 = vector.load %arg2[%c0_13, %c0_14, %c0_15, %c0_16] : memref<1x18x18x4xf32, #tpu.memory_space<vmem>>, vector<1x16x16x4xf32>
      %23 = vector.shape_cast %22 : vector<1x16x16x4xf32> to vector<16x16x4xf32>
      %24 = vector.shape_cast %23 : vector<16x16x4xf32> to vector<256x4xf32>
      %c0_17 = arith.constant 0 : index
      %c0_18 = arith.constant 0 : index
      %25 = vector.load %arg6[%c0_17, %c0_18] : memref<256x36xf32, #tpu.memory_space<vmem>>, vector<256x4xf32>
      tpu.vector_store %arg6[%c0_17, %c0_18], %24 {strides = array<i32>} : memref<256x36xf32, #tpu.memory_space<vmem>>, vector<256x4xf32>,
      %c0_19 = arith.constant 0 : index
      %c0_20 = arith.constant 0 : index
      %c1 = arith.constant 1 : index
      %c0_21 = arith.constant 0 : index
      %26 = vector.load %arg2[%c0_19, %c0_20, %c1, %c0_21] : memref<1x18x18x4xf32, #tpu.memory_space<vmem>>, vector<1x16x16x4xf32>
      %27 = vector.shape_cast %26 : vector<1x16x16x4xf32> to vector<16x16x4xf32>
      %28 = vector.shape_cast %27 : vector<16x16x4xf32> to vector<256x4xf32>
      %c0_22 = arith.constant 0 : index
      %c4 = arith.constant 4 : index
      %29 = vector.load %arg6[%c0_22, %c4] : memref<256x36xf32, #tpu.memory_space<vmem>>, vector<256x4xf32>
      tpu.vector_store %arg6[%c0_22, %c4], %28 {strides = array<i32>} : memref<256x36xf32, #tpu.memory_space<vmem>>, vector<256x4xf32>,
      %c0_23 = arith.constant 0 : index
      %c0_24 = arith.constant 0 : index
      %c2 = arith.constant 2 : index
      %c0_25 = arith.constant 0 : index
      %30 = vector.load %arg2[%c0_23, %c0_24, %c2, %c0_25] : memref<1x18x18x4xf32, #tpu.memory_space<vmem>>, vector<1x16x16x4xf32>
      %31 = vector.shape_cast %30 : vector<1x16x16x4xf32> to vector<16x16x4xf32>
      %32 = vector.shape_cast %31 : vector<16x16x4xf32> to vector<256x4xf32>
      %c0_26 = arith.constant 0 : index
      %c8 = arith.constant 8 : index
      %33 = vector.load %arg6[%c0_26, %c8] : memref<256x36xf32, #tpu.memory_space<vmem>>, vector<256x4xf32>
      tpu.vector_store %arg6[%c0_26, %c8], %32 {strides = array<i32>} : memref<256x36xf32, #tpu.memory_space<vmem>>, vector<256x4xf32>,
      %c0_27 = arith.constant 0 : index
      %c1_28 = arith.constant 1 : index
      %c0_29 = arith.constant 0 : index
      %c0_30 = arith.constant 0 : index
      %34 = vector.load %arg2[%c0_27, %c1_28, %c0_29, %c0_30] : memref<1x18x18x4xf32, #tpu.memory_space<vmem>>, vector<1x16x16x4xf32>
      %35 = vector.shape_cast %34 : vector<1x16x16x4xf32> to vector<16x16x4xf32>
      %36 = vector.shape_cast %35 : vector<16x16x4xf32> to vector<256x4xf32>
      %c0_31 = arith.constant 0 : index
      %c12 = arith.constant 12 : index
      %37 = vector.load %arg6[%c0_31, %c12] : memref<256x36xf32, #tpu.memory_space<vmem>>, vector<256x4xf32>
      tpu.vector_store %arg6[%c0_31, %c12], %36 {strides = array<i32>} : memref<256x36xf32, #tpu.memory_space<vmem>>, vector<256x4xf32>,
      %c0_32 = arith.constant 0 : index
      %c1_33 = arith.constant 1 : index
      %c1_34 = arith.constant 1 : index
      %c0_35 = arith.constant 0 : index
      %38 = vector.load %arg2[%c0_32, %c1_33, %c1_34, %c0_35] : memref<1x18x18x4xf32, #tpu.memory_space<vmem>>, vector<1x16x16x4xf32>
      %39 = vector.shape_cast %38 : vector<1x16x16x4xf32> to vector<16x16x4xf32>
      %40 = vector.shape_cast %39 : vector<16x16x4xf32> to vector<256x4xf32>
      %c0_36 = arith.constant 0 : index
      %c16 = arith.constant 16 : index
      %41 = vector.load %arg6[%c0_36, %c16] : memref<256x36xf32, #tpu.memory_space<vmem>>, vector<256x4xf32>
      tpu.vector_store %arg6[%c0_36, %c16], %40 {strides = array<i32>} : memref<256x36xf32, #tpu.memory_space<vmem>>, vector<256x4xf32>,
      %c0_37 = arith.constant 0 : index
      %c1_38 = arith.constant 1 : index
      %c2_39 = arith.constant 2 : index
      %c0_40 = arith.constant 0 : index
      %42 = vector.load %arg2[%c0_37, %c1_38, %c2_39, %c0_40] : memref<1x18x18x4xf32, #tpu.memory_space<vmem>>, vector<1x16x16x4xf32>
      %43 = vector.shape_cast %42 : vector<1x16x16x4xf32> to vector<16x16x4xf32>
      %44 = vector.shape_cast %43 : vector<16x16x4xf32> to vector<256x4xf32>
      %c0_41 = arith.constant 0 : index
      %c20 = arith.constant 20 : index
      %45 = vector.load %arg6[%c0_41, %c20] : memref<256x36xf32, #tpu.memory_space<vmem>>, vector<256x4xf32>
      tpu.vector_store %arg6[%c0_41, %c20], %44 {strides = array<i32>} : memref<256x36xf32, #tpu.memory_space<vmem>>, vector<256x4xf32>,
      %c0_42 = arith.constant 0 : index
      %c2_43 = arith.constant 2 : index
      %c0_44 = arith.constant 0 : index
      %c0_45 = arith.constant 0 : index
      %46 = vector.load %arg2[%c0_42, %c2_43, %c0_44, %c0_45] : memref<1x18x18x4xf32, #tpu.memory_space<vmem>>, vector<1x16x16x4xf32>
      %47 = vector.shape_cast %46 : vector<1x16x16x4xf32> to vector<16x16x4xf32>
      %48 = vector.shape_cast %47 : vector<16x16x4xf32> to vector<256x4xf32>
      %c0_46 = arith.constant 0 : index
      %c24 = arith.constant 24 : index
      %49 = vector.load %arg6[%c0_46, %c24] : memref<256x36xf32, #tpu.memory_space<vmem>>, vector<256x4xf32>
      tpu.vector_store %arg6[%c0_46, %c24], %48 {strides = array<i32>} : memref<256x36xf32, #tpu.memory_space<vmem>>, vector<256x4xf32>,
      %c0_47 = arith.constant 0 : index
      %c2_48 = arith.constant 2 : index
      %c1_49 = arith.constant 1 : index
      %c0_50 = arith.constant 0 : index
      %50 = vector.load %arg2[%c0_47, %c2_48, %c1_49, %c0_50] : memref<1x18x18x4xf32, #tpu.memory_space<vmem>>, vector<1x16x16x4xf32>
      %51 = vector.shape_cast %50 : vector<1x16x16x4xf32> to vector<16x16x4xf32>
      %52 = vector.shape_cast %51 : vector<16x16x4xf32> to vector<256x4xf32>
      %c0_51 = arith.constant 0 : index
      %c28 = arith.constant 28 : index
      %53 = vector.load %arg6[%c0_51, %c28] : memref<256x36xf32, #tpu.memory_space<vmem>>, vector<256x4xf32>
      tpu.vector_store %arg6[%c0_51, %c28], %52 {strides = array<i32>} : memref<256x36xf32, #tpu.memory_space<vmem>>, vector<256x4xf32>,
      %c0_52 = arith.constant 0 : index
      %c2_53 = arith.constant 2 : index
      %c2_54 = arith.constant 2 : index
      %c0_55 = arith.constant 0 : index
      %54 = vector.load %arg2[%c0_52, %c2_53, %c2_54, %c0_55] : memref<1x18x18x4xf32, #tpu.memory_space<vmem>>, vector<1x16x16x4xf32>
      %55 = vector.shape_cast %54 : vector<1x16x16x4xf32> to vector<16x16x4xf32>
      %56 = vector.shape_cast %55 : vector<16x16x4xf32> to vector<256x4xf32>
      %c0_56 = arith.constant 0 : index
      %c32 = arith.constant 32 : index
      %57 = vector.load %arg6[%c0_56, %c32] : memref<256x36xf32, #tpu.memory_space<vmem>>, vector<256x4xf32>
      tpu.vector_store %arg6[%c0_56, %c32], %56 {strides = array<i32>} : memref<256x36xf32, #tpu.memory_space<vmem>>, vector<256x4xf32>,
    } else {
    }
    %c0 = arith.constant 0 : index
    %c0_1 = arith.constant 0 : index
    %3 = vector.load %arg6[%c0, %c0_1] : memref<256x36xf32, #tpu.memory_space<vmem>>, vector<256x36xf32>
    %c0_2 = arith.constant 0 : index
    %c0_3 = arith.constant 0 : index
    %4 = vector.load %arg3[%c0_2, %c0_3] : memref<36x8xf32, #tpu.memory_space<vmem>>, vector<36x8xf32>
    %cst = arith.constant dense<0.000000e+00> : vector<256x8xf32>
    %5 = tpu.matmul %3, %4, %cst {dimension_numbers = #tpu.dot_dimension_numbers<[1], [0], [0], [1], [0, 0, 1, 1], [], []>} : vector<256x36xf32>, vector<36x8xf32>, vector<256x8xf32> -> vector<256x8xf32>
    %c0_4 = arith.constant 0 : index
    %c0_5 = arith.constant 0 : index
    %c0_6 = arith.constant 0 : index
    %6 = vector.load %arg4[%c0_4, %c0_5, %c0_6] : memref<1x256x8xf32, #tpu.memory_space<vmem>>, vector<1x256x8xf32>
    %7 = vector.shape_cast %6 : vector<1x256x8xf32> to vector<256x8xf32>
    %8 = vector.shape_cast %5 : vector<256x8xf32> to vector<1x256x8xf32>
    tpu.vector_store %arg4[%c0_4, %c0_5, %c0_6], %8 {strides = array<i32>} : memref<1x256x8xf32, #tpu.memory_space<vmem>>, vector<1x256x8xf32>,
    %cst_7 = arith.constant dense<0.000000e+00> : vector<8xf32>
    %9 = vector.multi_reduction <add>, %5, %cst_7 [0] : vector<256x8xf32> to vector<8xf32>
    %10 = vector.shape_cast %9 : vector<8xf32> to vector<1x8xf32>
    %cst_8 = arith.constant 3.906250e-03 : f32
    %11 = vector.broadcast %cst_8 : f32 to vector<1x8xf32>
    %12 = arith.mulf %10, %11 : vector<1x8xf32>
    %13 = vector.broadcast %12 : vector<1x8xf32> to vector<256x8xf32>
    %14 = arith.subf %5, %13 : vector<256x8xf32>
    %15 = arith.mulf %14, %14 : vector<256x8xf32>
    %cst_9 = arith.constant dense<0.000000e+00> : vector<8xf32>
    %16 = vector.multi_reduction <add>, %15, %cst_9 [0] : vector<256x8xf32> to vector<8xf32>
    %17 = vector.shape_cast %16 : vector<8xf32> to vector<1x8xf32>
    %18 = tpu.concatenate %10, %17 in 0 : vector<1x8xf32>, vector<1x8xf32> -> vector<2x8xf32>
    %c0_10 = arith.constant 0 : index
    %c0_11 = arith.constant 0 : index
    %c0_12 = arith.constant 0 : index
    %19 = vector.load %arg5[%c0_10, %c0_11, %c0_12] : memref<1x2x8xf32, #tpu.memory_space<vmem>>, vector<1x2x8xf32>
    %20 = vector.shape_cast %19 : vector<1x2x8xf32> to vector<2x8xf32>
    %21 = vector.shape_cast %18 : vector<2x8xf32> to vector<1x2x8xf32>
    tpu.vector_store %arg5[%c0_10, %c0_11, %c0_12], %21 {strides = array<i32>} : memref<1x2x8xf32, #tpu.memory_space<vmem>>, vector<1x2x8xf32>,
    return
  }
  func.func @transform_0(%arg0: i32, %arg1: i32) -> (i32, i32, i32, i32) {
    %c0_i32 = arith.constant 0 : i32
    %c0_i32_0 = arith.constant 0 : i32
    %c0_i32_1 = arith.constant 0 : i32
    %c0_i32_2 = arith.constant 0 : i32
    return %arg0, %c0_i32, %c0_i32_0, %c0_i32_1 : i32, i32, i32, i32
  }
  func.func @transform_1(%arg0: i32, %arg1: i32) -> (i32, i32) {
    %c0_i32 = arith.constant 0 : i32
    %c0_i32_0 = arith.constant 0 : i32
    return %c0_i32, %arg1 : i32, i32
  }
  func.func @transform_2(%arg0: i32, %arg1: i32) -> (i32, i32, i32) {
    %c0_i32 = arith.constant 0 : i32
    %c0_i32_0 = arith.constant 0 : i32
    return %arg0, %c0_i32, %arg1 : i32, i32, i32
  }
  func.func @transform_3(%arg0: i32, %arg1: i32) -> (i32, i32, i32) {
    %c0_i32 = arith.constant 0 : i32
    %c0_i32_0 = arith.constant 0 : i32
    return %arg0, %c0_i32, %arg1 : i32, i32, i32
  }
}

module attributes {stable_mosaic.version = 11 : i64} {
  func.func @_bn_relu_kernel(%arg0: i32, %arg1: memref<512x8xf32, #tpu.memory_space<vmem>>, %arg2: memref<1x8xf32, #tpu.memory_space<vmem>>, %arg3: memref<1x8xf32, #tpu.memory_space<vmem>>, %arg4: memref<512x8xf32, #tpu.memory_space<vmem>>) attributes {dimension_semantics = [#tpu.dimension_semantics<parallel>], iteration_bounds = array<i64: 1>, scalar_prefetch = 0 : i64, scratch_operands = 0 : i64, tpu.core_type = #tpu.core_type<tc>, window_params = [{transform_indices = @transform_0, window_bounds = array<i64: 512, 8>}, {pipeline_mode = #tpu.pipeline_mode<synchronous>, transform_indices = @transform_1, window_bounds = array<i64: 1, 8>}, {pipeline_mode = #tpu.pipeline_mode<synchronous>, transform_indices = @transform_2, window_bounds = array<i64: 1, 8>}, {transform_indices = @transform_3, window_bounds = array<i64: 512, 8>}]} {
    %c0 = arith.constant 0 : index
    %c0_0 = arith.constant 0 : index
    %0 = vector.load %arg1[%c0, %c0_0] : memref<512x8xf32, #tpu.memory_space<vmem>>, vector<512x8xf32>
    %c0_1 = arith.constant 0 : index
    %c0_2 = arith.constant 0 : index
    %1 = vector.load %arg2[%c0_1, %c0_2] : memref<1x8xf32, #tpu.memory_space<vmem>>, vector<1x8xf32>
    %2 = vector.broadcast %1 : vector<1x8xf32> to vector<512x8xf32>
    %3 = arith.mulf %0, %2 : vector<512x8xf32>
    %c0_3 = arith.constant 0 : index
    %c0_4 = arith.constant 0 : index
    %4 = vector.load %arg3[%c0_3, %c0_4] : memref<1x8xf32, #tpu.memory_space<vmem>>, vector<1x8xf32>
    %5 = vector.broadcast %4 : vector<1x8xf32> to vector<512x8xf32>
    %6 = arith.addf %3, %5 : vector<512x8xf32>
    %cst = arith.constant 0.000000e+00 : f32
    %7 = vector.broadcast %cst : f32 to vector<512x8xf32>
    %8 = arith.maximumf %6, %7 : vector<512x8xf32>
    %c0_5 = arith.constant 0 : index
    %c0_6 = arith.constant 0 : index
    %9 = vector.load %arg4[%c0_5, %c0_6] : memref<512x8xf32, #tpu.memory_space<vmem>>, vector<512x8xf32>
    tpu.vector_store %arg4[%c0_5, %c0_6], %8 {strides = array<i32>} : memref<512x8xf32, #tpu.memory_space<vmem>>, vector<512x8xf32>,
    return
  }
  func.func @transform_0(%arg0: i32) -> (i32, i32) {
    %c0_i32 = arith.constant 0 : i32
    %c0_i32_0 = arith.constant 0 : i32
    return %arg0, %c0_i32 : i32, i32
  }
  func.func @transform_1(%arg0: i32) -> (i32, i32) {
    %c0_i32 = arith.constant 0 : i32
    %c0_i32_0 = arith.constant 0 : i32
    %c0_i32_1 = arith.constant 0 : i32
    return %c0_i32, %c0_i32_0 : i32, i32
  }
  func.func @transform_2(%arg0: i32) -> (i32, i32) {
    %c0_i32 = arith.constant 0 : i32
    %c0_i32_0 = arith.constant 0 : i32
    %c0_i32_1 = arith.constant 0 : i32
    return %c0_i32, %c0_i32_0 : i32, i32
  }
  func.func @transform_3(%arg0: i32) -> (i32, i32) {
    %c0_i32 = arith.constant 0 : i32
    %c0_i32_0 = arith.constant 0 : i32
    return %arg0, %c0_i32 : i32, i32
  }
}

</mosaic_0001>

<bundles_post_ra>
// kernel: conv_bn_relu.3
= control target key start
LH: loop header
LB: loop body
LE: loop exit
PB: predicated region body
PF: predicated region fallthrough
CT: control target
= control target key end

     0   :  { %8 = vsyncpa [#allocation3], 0  ;;  %s790_s0 = inlined_call_operand.hbm [shape: f32[512,8], index: 0, kind: input, shape index: {}, may-alias: {0,3}]   ;;  %s791_s1 = inlined_call_operand.hbm [shape: f32[1,8], index: 1, kind: input, shape index: {}]   ;;  %s792_s2 = inlined_call_operand.hbm [shape: f32[1,8], index: 2, kind: input, shape index: {}]   ;;  %s793_s3 = inlined_call_operand.hbm [shape: f32[512,8], index: 3, kind: output, shape index: {}, may-alias: {0,3}]  }
   0x1   :  { %9 = vsyncpa [#allocation6], 0 }
   0x2   :  { %10 = vsyncpa [#allocation4], 0  ;;  %s507_s12 = smov [#allocation5]   ;;  %s508_s14 = smov [#allocation2]  }
   0x3   :  { %s29_s13 = sshll.u32 %s507_s12, 4  ;;  %s16_s15 = sshll.u32 %s508_s14, 4  ;;  %s30_s13 = int_to_ptr.vmem [resolvable:$true] %s29_s13  ;;  %s533_s15 = int_to_ptr.vmem [resolvable:$true] %s16_s15 }
   0x4   :  { %s413_s18 = scalar_lea.hbm %s791_s1, 16 }
   0x5   :  { %p414_p0 = scmp.ne.s32.totalorder %s791_s1, %s413_s18  ;;  %p417_p1 = scmp.lt.u32.totalorder %s413_s18, %s791_s1 }
   0x7   :  { %p419_p2 = pnand %p417_p1, %p414_p0 }
   0x9   :  { %422 = shalt.err (!%p419_p2)
}
   0xa   :  { %s423_s23 = scalar_lea.vmem %s30_s13, 16  ;;  %s427_s24 = scalar_lea.vmem %s30_s13, 32 }
   0xb   :  { %p424_p3 = scmp.ne.s32.totalorder %s30_s13, %s423_s23  ;;  %p428_p4 = scmp.lt.s32.totalorder %s30_s13, %s30_s13 }
   0xc   :  { %p429_p5 = scmp.lt.s32.totalorder %s427_s24, %s423_s23 }
   0xe   :  { %p430_p6 = por %p429_p5, %p428_p4 }
  0x10   :  { %p431_p7 = pnand %p430_p6, %p424_p3 }
  0x12   :  { %434 = shalt.err (!%p431_p7)
}
  0x13   :  { %32 = dma.hbm_to_vmem [thread:$0]  %s791_s1, 16, %s30_s13, [#allocation6]  }
  0x14   :  { %s435_s29 = scalar_lea.hbm %s790_s0, 8192 }
  0x15   :  { %p436_p8 = scmp.ne.s32.totalorder %s790_s0, %s435_s29  ;;  %p439_p9 = scmp.lt.u32.totalorder %s435_s29, %s790_s0 }
  0x17   :  { %p441_p10 = pnand %p439_p9, %p436_p8 }
  0x19   :  { %444 = shalt.err (!%p441_p10)
}
  0x1a   :  { %s445_s7 = scalar_lea.vmem %s533_s15, 8192  ;;  %p450_p12 = scmp.lt.s32.totalorder %s533_s15, %s533_s15 }
  0x1b   :  { %p446_p11 = scmp.ne.s32.totalorder %s533_s15, %s445_s7  ;;  %p451_p13 = scmp.lt.s32.totalorder %s445_s7, %s445_s7 }
  0x1d   :  { %p452_p0 = por %p451_p13, %p450_p12 }
  0x1f   :  { %p453_p1 = pnand %p452_p0, %p446_p11 }
  0x21   :  { %456 = shalt.err (!%p453_p1)
}
  0x22   :  { %s509_s1 = smov 128   ;;  %s510_s8 = smov 8  }
  0x23   :  { %22 = dma.hbm_to_vmem [thread:$0]  %s790_s0, 8192, %s533_s15, [#allocation3], %s509_s1, %s509_s1, %s510_s8  }
  0x24   :  { %s511_s11 = smov [#allocation7]   ;;  %s457_s16 = scalar_lea.hbm %s792_s2, 16 }
  0x25   :  { %s39_s12 = sshll.u32 %s511_s11, 4  ;;  %p458_p2 = scmp.ne.s32.totalorder %s792_s2, %s457_s16  ;;  %s40_s12 = int_to_ptr.vmem [resolvable:$true] %s39_s12 }
  0x26   :  { %p461_p3 = scmp.lt.u32.totalorder %s457_s16, %s792_s2 }
  0x28   :  { %p463_p4 = pnand %p461_p3, %p458_p2 }
  0x2a   :  { %466 = shalt.err (!%p463_p4)
}
  0x2b   :  { %s467_s21 = scalar_lea.vmem %s40_s12, 16  ;;  %s471_s0 = scalar_lea.vmem %s40_s12, 32 }
  0x2c   :  { %p468_p5 = scmp.ne.s32.totalorder %s40_s12, %s467_s21  ;;  %p472_p6 = scmp.lt.s32.totalorder %s40_s12, %s40_s12 }
  0x2d   :  { %p473_p7 = scmp.lt.s32.totalorder %s471_s0, %s467_s21 }
  0x2f   :  { %p474_p8 = por %p473_p7, %p472_p6 }
  0x31   :  { %p475_p9 = pnand %p474_p8, %p468_p5 }
  0x33   :  { %478 = shalt.err (!%p475_p9)
}
  0x34   :  { %42 = dma.hbm_to_vmem [thread:$0]  %s792_s2, 16, %s40_s12, [#allocation6]  }
  0x35   :  { %501 = dma.done.wait [#allocation3], 8192  }
  0x36   :  { %502 = vsyncadd [#allocation3], 4294959104 }
  0x37   :  { %503 = dma.done.wait [#allocation6], 32  }
  0x38   :  { %504 = vsyncadd [#allocation6], 4294967264  ;;  %v52_v0 = vld [vmem:[#allocation2] sm:$0xff]  ;;  %v53_v4 = vld [vmem:[#allocation2 + $0x8] sm:$0xff]  ;;  %vm322_vm0 = vcmask 64512   ;;  %s512_s2 = smov [#allocation8]  }
  0x39   :  { %v579_v1 = vld [vmem:[#allocation5] ss:$0 sm:$0xff]  ;;  %v581_v2 = vld [vmem:[#allocation7] ss:$0 sm:$0xff]  ;;  %v54_v5 = vld [vmem:[#allocation2 + $0x10] sm:$0xff]  ;;  %s392_s23 = sshll.u32 %s512_s2, 4  ;;  %s393_s23 = int_to_ptr.vmem [resolvable:$true] %s392_s23 }
  0x3a   :  { %v123_v3 = vmul.f32 %v579_v1, %v52_v0  ;;  %v55_v6 = vld [vmem:[#allocation2 + $0x18] sm:$0xff]  ;;  %v124_v7 = vmul.f32 %v579_v1, %v53_v4  ;;  %v125_v8 = vmul.f32 %v579_v1, %v54_v5  ;;  %v56_v10 = vld [vmem:[#allocation2 + $0x20] sm:$0xff]  ;;  %v57_v11 = vld [vmem:[#allocation2 + $0x28] sm:$0xff]  ;;  %s479_s24 = scalar_lea.vmem %s393_s23, 8192  ;;  %p484_p11 = scmp.lt.s32.totalorder %s393_s23, %s393_s23 }
  0x3b   :  { %v126_v9 = vmul.f32 %v579_v1, %v55_v6  ;;  %v58_v12 = vld [vmem:[#allocation2 + $0x30] sm:$0xff]  ;;  %v127_v14 = vmul.f32 %v579_v1, %v56_v10  ;;  %v128_v15 = vmul.f32 %v579_v1, %v57_v11  ;;  %v59_v17 = vld [vmem:[#allocation2 + $0x38] sm:$0xff]  ;;  %v60_v22 = vld [vmem:[#allocation2 + $0x40] sm:$0xff]  ;;  %p480_p10 = scmp.ne.s32.totalorder %s393_s23, %s479_s24  ;;  %p485_p12 = scmp.lt.s32.totalorder %s479_s24, %s479_s24 }
  0x3c   :  { %v194_v13 = vadd.f32 %v581_v2, %v123_v3  ;;  %v129_v16 = vmul.f32 %v579_v1, %v58_v12  ;;  %v195_v18 = vadd.f32 %v581_v2, %v124_v7  ;;  %v196_v19 = vadd.f32 %v581_v2, %v125_v8  ;;  %v61_v27 = vld [vmem:[#allocation2 + $0x48] sm:$0xff]  ;;  %v62_v28 = vld [vmem:[#allocation2 + $0x50] sm:$0xff]  ;;  %v63_v29 = vld [vmem:[#allocation2 + $0x58] sm:$0xff] }
  0x3d   :  { %v197_v20 = vadd.f32 %v581_v2, %v126_v9  ;;  %v130_v21 = vmul.f32 %v579_v1, %v59_v17  ;;  %v198_v24 = vadd.f32 %v581_v2, %v127_v14  ;;  %v199_v25 = vadd.f32 %v581_v2, %v128_v15  ;;  %v64_v34 = vld [vmem:[#allocation2 + $0x60] sm:$0xff]  ;;  %v65_v35 = vld [vmem:[#allocation2 + $0x68] sm:$0xff]  ;;  %v66_v36 = vld [vmem:[#allocation2 + $0x70] sm:$0xff]  ;;  %p486_p13 = por %p485_p12, %p484_p11 }
  0x3e   :  { %v258_v23 = vmax.f32 %v194_v13, 0.0  ;;  %v200_v26 = vadd.f32 %v581_v2, %v129_v16  ;;  %v259_v30 = vmax.f32 %v195_v18, 0.0  ;;  %v260_v31 = vmax.f32 %v196_v19, 0.0  ;;  %v67_v41 = vld [vmem:[#allocation2 + $0x78] sm:$0xff]  ;;  %v68_v54 = vld [vmem:[#allocation2 + $0x80] sm:$0xff]  ;;  %v69_v59 = vld [vmem:[#allocation2 + $0x88] sm:$0xff] }
  0x3f   :  { %v261_v32 = vmax.f32 %v197_v20, 0.0  ;;  %v201_v33 = vadd.f32 %v581_v2, %v130_v21  ;;  %v262_v37 = vmax.f32 %v198_v24, 0.0  ;;  %v263_v38 = vmax.f32 %v199_v25, 0.0  ;;  %v70_v60 = vld [vmem:[#allocation2 + $0x90] sm:$0xff]  ;;  %v71_v61 = vld [vmem:[#allocation2 + $0x98] sm:$0xff]  ;;  %v72_v4 = vld [vmem:[#allocation2 + $0xa0] sm:$0xff]  ;;  %p487_p0 = pnand %p486_p13, %p480_p10 }
  0x40   :  { %323 = vst.msk [vmem:[#allocation8] sm:$0xff] %vm322_vm0, %v258_v23  ;;  %v264_v39 = vmax.f32 %v200_v26, 0.0  ;;  %v131_v40 = vmul.f32 %v579_v1, %v60_v22  ;;  %324 = vst.msk [vmem:[#allocation8 + $0x8] sm:$0xff] %vm322_vm0, %v259_v30  ;;  %v132_v43 = vmul.f32 %v579_v1, %v61_v27  ;;  %v133_v44 = vmul.f32 %v579_v1, %v62_v28  ;;  %v73_v5 = vld [vmem:[#allocation2 + $0xa8] sm:$0xff]  ;;  %v74_v6 = vld [vmem:[#allocation2 + $0xb0] sm:$0xff] }
  0x41   :  { %325 = vst.msk [vmem:[#allocation8 + $0x10] sm:$0xff] %vm322_vm0, %v260_v31  ;;  %326 = vst.msk [vmem:[#allocation8 + $0x18] sm:$0xff] %vm322_vm0, %v261_v32  ;;  %v265_v42 = vmax.f32 %v201_v33, 0.0  ;;  %v134_v45 = vmul.f32 %v579_v1, %v63_v29  ;;  %v135_v47 = vmul.f32 %v579_v1, %v64_v34  ;;  %v136_v48 = vmul.f32 %v579_v1, %v65_v35  ;;  %v75_v11 = vld [vmem:[#allocation2 + $0xb8] sm:$0xff]  ;;  %v76_v24 = vld [vmem:[#allocation2 + $0xc0] sm:$0xff] }
  0x42   :  { %327 = vst.msk [vmem:[#allocation8 + $0x20] sm:$0xff] %vm322_vm0, %v262_v37  ;;  %328 = vst.msk [vmem:[#allocation8 + $0x28] sm:$0xff] %vm322_vm0, %v263_v38  ;;  %v202_v46 = vadd.f32 %v581_v2, %v131_v40  ;;  %v137_v49 = vmul.f32 %v579_v1, %v66_v36  ;;  %v203_v50 = vadd.f32 %v581_v2, %v132_v43  ;;  %v77_v29 = vld [vmem:[#allocation2 + $0xc8] sm:$0xff]  ;;  %v78_v30 = vld [vmem:[#allocation2 + $0xd0] sm:$0xff] }
  0x43   :  { %329 = vst.msk [vmem:[#allocation8 + $0x30] sm:$0xff] %vm322_vm0, %v264_v39  ;;  %330 = vst.msk [vmem:[#allocation8 + $0x38] sm:$0xff] %vm322_vm0, %v265_v42  ;;  %v204_v51 = vadd.f32 %v581_v2, %v133_v44  ;;  %v205_v52 = vadd.f32 %v581_v2, %v134_v45  ;;  %v138_v53 = vmul.f32 %v579_v1, %v67_v41  ;;  %v79_v31 = vld [vmem:[#allocation2 + $0xd8] sm:$0xff]  ;;  %v80_v36 = vld [vmem:[#allocation2 + $0xe0] sm:$0xff] }
  0x44   :  { %v266_v55 = vmax.f32 %v202_v46, 0.0  ;;  %v206_v56 = vadd.f32 %v581_v2, %v135_v47  ;;  %v207_v57 = vadd.f32 %v581_v2, %v136_v48  ;;  %v208_v58 = vadd.f32 %v581_v2, %v137_v49  ;;  %v81_v37 = vld [vmem:[#allocation2 + $0xe8] sm:$0xff]  ;;  %v82_v38 = vld [vmem:[#allocation2 + $0xf0] sm:$0xff]  ;;  %v83_v43 = vld [vmem:[#allocation2 + $0xf8] sm:$0xff] }
  0x45   :  { %v267_v62 = vmax.f32 %v203_v50, 0.0  ;;  %v268_v63 = vmax.f32 %v204_v51, 0.0  ;;  %v269_v0 = vmax.f32 %v205_v52, 0.0  ;;  %v209_v3 = vadd.f32 %v581_v2, %v138_v53 }
  0x46   :  { %331 = vst.msk [vmem:[#allocation8 + $0x40] sm:$0xff] %vm322_vm0, %v266_v55  ;;  %v270_v7 = vmax.f32 %v206_v56, 0.0  ;;  %v271_v8 = vmax.f32 %v207_v57, 0.0  ;;  %v272_v9 = vmax.f32 %v208_v58, 0.0  ;;  %v139_v10 = vmul.f32 %v579_v1, %v68_v54  ;;  %v84_v56 = vld [vmem:[#allocation2 + $0x100] sm:$0xff] }
  0x47   :  { %332 = vst.msk [vmem:[#allocation8 + $0x48] sm:$0xff] %vm322_vm0, %v267_v62  ;;  %333 = vst.msk [vmem:[#allocation8 + $0x50] sm:$0xff] %vm322_vm0, %v268_v63  ;;  %v273_v12 = vmax.f32 %v209_v3, 0.0  ;;  %v140_v13 = vmul.f32 %v579_v1, %v69_v59  ;;  %v141_v14 = vmul.f32 %v579_v1, %v70_v60  ;;  %v142_v15 = vmul.f32 %v579_v1, %v71_v61  ;;  %v85_v61 = vld [vmem:[#allocation2 + $0x108] sm:$0xff]  ;;  %v86_v62 = vld [vmem:[#allocation2 + $0x110] sm:$0xff] }
  0x48   :  { %334 = vst.msk [vmem:[#allocation8 + $0x58] sm:$0xff] %vm322_vm0, %v269_v0  ;;  %335 = vst.msk [vmem:[#allocation8 + $0x60] sm:$0xff] %vm322_vm0, %v270_v7  ;;  %v210_v16 = vadd.f32 %v581_v2, %v139_v10  ;;  %v143_v17 = vmul.f32 %v579_v1, %v72_v4  ;;  %v144_v18 = vmul.f32 %v579_v1, %v73_v5  ;;  %v87_v63 = vld [vmem:[#allocation2 + $0x118] sm:$0xff]  ;;  %v89_v7 = vld [vmem:[#allocation2 + $0x128] sm:$0xff] }
  0x49   :  { %336 = vst.msk [vmem:[#allocation8 + $0x68] sm:$0xff] %vm322_vm0, %v271_v8  ;;  %337 = vst.msk [vmem:[#allocation8 + $0x70] sm:$0xff] %vm322_vm0, %v272_v9  ;;  %v145_v19 = vmul.f32 %v579_v1, %v74_v6  ;;  %v211_v20 = vadd.f32 %v581_v2, %v140_v13  ;;  %v212_v21 = vadd.f32 %v581_v2, %v141_v14  ;;  %v88_v6 = vld [vmem:[#allocation2 + $0x120] sm:$0xff]  ;;  %v90_v8 = vld [vmem:[#allocation2 + $0x130] sm:$0xff] }
  0x4a   :  { %338 = vst.msk [vmem:[#allocation8 + $0x78] sm:$0xff] %vm322_vm0, %v273_v12  ;;  %v213_v22 = vadd.f32 %v581_v2, %v142_v15  ;;  %v146_v23 = vmul.f32 %v579_v1, %v75_v11  ;;  %v274_v25 = vmax.f32 %v210_v16, 0.0  ;;  %v214_v26 = vadd.f32 %v581_v2, %v143_v17  ;;  %v91_v13 = vld [vmem:[#allocation2 + $0x138] sm:$0xff] }
  0x4b   :  { %v215_v27 = vadd.f32 %v581_v2, %v144_v18  ;;  %v216_v28 = vadd.f32 %v581_v2, %v145_v19  ;;  %v275_v32 = vmax.f32 %v211_v20, 0.0  ;;  %v276_v33 = vmax.f32 %v212_v21, 0.0 }
  0x4c   :  { %v277_v34 = vmax.f32 %v213_v22, 0.0  ;;  %v217_v35 = vadd.f32 %v581_v2, %v146_v23  ;;  %339 = vst.msk [vmem:[#allocation8 + $0x80] sm:$0xff] %vm322_vm0, %v274_v25  ;;  %v278_v39 = vmax.f32 %v214_v26, 0.0  ;;  %v147_v42 = vmul.f32 %v579_v1, %v76_v24  ;;  %v92_v26 = vld [vmem:[#allocation2 + $0x140] sm:$0xff] }
  0x4d   :  { %v279_v40 = vmax.f32 %v215_v27, 0.0  ;;  %v280_v41 = vmax.f32 %v216_v28, 0.0  ;;  %340 = vst.msk [vmem:[#allocation8 + $0x88] sm:$0xff] %vm322_vm0, %v275_v32  ;;  %341 = vst.msk [vmem:[#allocation8 + $0x90] sm:$0xff] %vm322_vm0, %v276_v33  ;;  %v148_v45 = vmul.f32 %v579_v1, %v77_v29  ;;  %v149_v46 = vmul.f32 %v579_v1, %v78_v30  ;;  %v94_v32 = vld [vmem:[#allocation2 + $0x150] sm:$0xff]  ;;  %v95_v33 = vld [vmem:[#allocation2 + $0x158] sm:$0xff] }
  0x4e   :  { %342 = vst.msk [vmem:[#allocation8 + $0x98] sm:$0xff] %vm322_vm0, %v277_v34  ;;  %v281_v44 = vmax.f32 %v217_v35, 0.0  ;;  %v150_v47 = vmul.f32 %v579_v1, %v79_v31  ;;  %343 = vst.msk [vmem:[#allocation8 + $0xa0] sm:$0xff] %vm322_vm0, %v278_v39  ;;  %v218_v48 = vadd.f32 %v581_v2, %v147_v42  ;;  %v151_v49 = vmul.f32 %v579_v1, %v80_v36  ;;  %v93_v31 = vld [vmem:[#allocation2 + $0x148] sm:$0xff] }
  0x4f   :  { %344 = vst.msk [vmem:[#allocation8 + $0xa8] sm:$0xff] %vm322_vm0, %v279_v40  ;;  %345 = vst.msk [vmem:[#allocation8 + $0xb0] sm:$0xff] %vm322_vm0, %v280_v41  ;;  %v152_v50 = vmul.f32 %v579_v1, %v81_v37  ;;  %v153_v51 = vmul.f32 %v579_v1, %v82_v38  ;;  %v219_v52 = vadd.f32 %v581_v2, %v148_v45  ;;  %v96_v38 = vld [vmem:[#allocation2 + $0x160] sm:$0xff]  ;;  %v97_v39 = vld [vmem:[#allocation2 + $0x168] sm:$0xff] }
  0x50   :  { %346 = vst.msk [vmem:[#allocation8 + $0xb8] sm:$0xff] %vm322_vm0, %v281_v44  ;;  %v220_v53 = vadd.f32 %v581_v2, %v149_v46  ;;  %v221_v54 = vadd.f32 %v581_v2, %v150_v47  ;;  %v154_v55 = vmul.f32 %v579_v1, %v83_v43  ;;  %v282_v57 = vmax.f32 %v218_v48, 0.0  ;;  %v98_v40 = vld [vmem:[#allocation2 + $0x170] sm:$0xff]  ;;  %v99_v45 = vld [vmem:[#allocation2 + $0x178] sm:$0xff] }
  0x51   :  { %v222_v58 = vadd.f32 %v581_v2, %v151_v49  ;;  %v223_v59 = vadd.f32 %v581_v2, %v152_v50  ;;  %v224_v60 = vadd.f32 %v581_v2, %v153_v51  ;;  %v283_v0 = vmax.f32 %v219_v52, 0.0 }
  0x52   :  { %v284_v3 = vmax.f32 %v220_v53, 0.0  ;;  %v285_v4 = vmax.f32 %v221_v54, 0.0  ;;  %v225_v5 = vadd.f32 %v581_v2, %v154_v55  ;;  %347 = vst.msk [vmem:[#allocation8 + $0xc0] sm:$0xff] %vm322_vm0, %v282_v57  ;;  %v155_v12 = vmul.f32 %v579_v1, %v84_v56 }
  0x53   :  { %v286_v9 = vmax.f32 %v222_v58, 0.0  ;;  %v287_v10 = vmax.f32 %v223_v59, 0.0  ;;  %v288_v11 = vmax.f32 %v224_v60, 0.0  ;;  %348 = vst.msk [vmem:[#allocation8 + $0xc8] sm:$0xff] %vm322_vm0, %v283_v0  ;;  %v156_v15 = vmul.f32 %v579_v1, %v85_v61  ;;  %v100_v58 = vld [vmem:[#allocation2 + $0x180] sm:$0xff]  ;;  %v102_v0 = vld [vmem:[#allocation2 + $0x190] sm:$0xff] }
  0x54   :  { %349 = vst.msk [vmem:[#allocation8 + $0xd0] sm:$0xff] %vm322_vm0, %v284_v3  ;;  %350 = vst.msk [vmem:[#allocation8 + $0xd8] sm:$0xff] %vm322_vm0, %v285_v4  ;;  %v289_v14 = vmax.f32 %v225_v5, 0.0  ;;  %v157_v16 = vmul.f32 %v579_v1, %v86_v62  ;;  %v158_v17 = vmul.f32 %v579_v1, %v87_v63  ;;  %v226_v18 = vadd.f32 %v581_v2, %v155_v12  ;;  %v101_v63 = vld [vmem:[#allocation2 + $0x188] sm:$0xff]  ;;  %v103_v3 = vld [vmem:[#allocation2 + $0x198] sm:$0xff] }
  0x55   :  { %351 = vst.msk [vmem:[#allocation8 + $0xe0] sm:$0xff] %vm322_vm0, %v286_v9  ;;  %352 = vst.msk [vmem:[#allocation8 + $0xe8] sm:$0xff] %vm322_vm0, %v287_v10  ;;  %v159_v19 = vmul.f32 %v579_v1, %v88_v6  ;;  %v160_v20 = vmul.f32 %v579_v1, %v89_v7  ;;  %v161_v21 = vmul.f32 %v579_v1, %v90_v8  ;;  %v104_v8 = vld [vmem:[#allocation2 + $0x1a0] sm:$0xff]  ;;  %v105_v9 = vld [vmem:[#allocation2 + $0x1a8] sm:$0xff] }
  0x56   :  { %353 = vst.msk [vmem:[#allocation8 + $0xf0] sm:$0xff] %vm322_vm0, %v288_v11  ;;  %354 = vst.msk [vmem:[#allocation8 + $0xf8] sm:$0xff] %vm322_vm0, %v289_v14  ;;  %v227_v22 = vadd.f32 %v581_v2, %v156_v15  ;;  %v228_v23 = vadd.f32 %v581_v2, %v157_v16  ;;  %v229_v24 = vadd.f32 %v581_v2, %v158_v17  ;;  %v290_v27 = vmax.f32 %v226_v18, 0.0  ;;  %v106_v10 = vld [vmem:[#allocation2 + $0x1b0] sm:$0xff]  ;;  %v107_v15 = vld [vmem:[#allocation2 + $0x1b8] sm:$0xff] }
  0x57   :  { %v162_v25 = vmul.f32 %v579_v1, %v91_v13  ;;  %v230_v28 = vadd.f32 %v581_v2, %v159_v19  ;;  %v231_v29 = vadd.f32 %v581_v2, %v160_v20  ;;  %v232_v30 = vadd.f32 %v581_v2, %v161_v21 }
  0x58   :  { %v291_v34 = vmax.f32 %v227_v22, 0.0  ;;  %v292_v35 = vmax.f32 %v228_v23, 0.0  ;;  %v293_v36 = vmax.f32 %v229_v24, 0.0  ;;  %355 = vst.msk [vmem:[#allocation8 + $0x100] sm:$0xff] %vm322_vm0, %v290_v27  ;;  %v163_v44 = vmul.f32 %v579_v1, %v92_v26 }
  0x59   :  { %v233_v37 = vadd.f32 %v581_v2, %v162_v25  ;;  %v294_v41 = vmax.f32 %v230_v28, 0.0  ;;  %v295_v42 = vmax.f32 %v231_v29, 0.0  ;;  %v296_v43 = vmax.f32 %v232_v30, 0.0  ;;  %v108_v28 = vld [vmem:[#allocation2 + $0x1c0] sm:$0xff] }
  0x5a   :  { %356 = vst.msk [vmem:[#allocation8 + $0x108] sm:$0xff] %vm322_vm0, %v291_v34  ;;  %357 = vst.msk [vmem:[#allocation8 + $0x110] sm:$0xff] %vm322_vm0, %v292_v35  ;;  %v164_v47 = vmul.f32 %v579_v1, %v93_v31  ;;  %v165_v48 = vmul.f32 %v579_v1, %v94_v32  ;;  %v166_v49 = vmul.f32 %v579_v1, %v95_v33  ;;  %v109_v33 = vld [vmem:[#allocation2 + $0x1c8] sm:$0xff]  ;;  %v110_v34 = vld [vmem:[#allocation2 + $0x1d0] sm:$0xff] }
  0x5b   :  { %358 = vst.msk [vmem:[#allocation8 + $0x118] sm:$0xff] %vm322_vm0, %v293_v36  ;;  %v297_v46 = vmax.f32 %v233_v37, 0.0  ;;  %359 = vst.msk [vmem:[#allocation8 + $0x120] sm:$0xff] %vm322_vm0, %v294_v41  ;;  %v234_v50 = vadd.f32 %v581_v2, %v163_v44  ;;  %v167_v51 = vmul.f32 %v579_v1, %v96_v38  ;;  %v168_v52 = vmul.f32 %v579_v1, %v97_v39  ;;  %v111_v35 = vld [vmem:[#allocation2 + $0x1d8] sm:$0xff]  ;;  %v113_v41 = vld [vmem:[#allocation2 + $0x1e8] sm:$0xff] }
  0x5c   :  { %360 = vst.msk [vmem:[#allocation8 + $0x128] sm:$0xff] %vm322_vm0, %v295_v42  ;;  %361 = vst.msk [vmem:[#allocation8 + $0x130] sm:$0xff] %vm322_vm0, %v296_v43  ;;  %v169_v53 = vmul.f32 %v579_v1, %v98_v40  ;;  %v235_v54 = vadd.f32 %v581_v2, %v164_v47  ;;  %v236_v55 = vadd.f32 %v581_v2, %v165_v48  ;;  %v112_v40 = vld [vmem:[#allocation2 + $0x1e0] sm:$0xff]  ;;  %v114_v42 = vld [vmem:[#allocation2 + $0x1f0] sm:$0xff] }
  0x5d   :  { %362 = vst.msk [vmem:[#allocation8 + $0x138] sm:$0xff] %vm322_vm0, %v297_v46  ;;  %v237_v56 = vadd.f32 %v581_v2, %v166_v49  ;;  %v170_v57 = vmul.f32 %v579_v1, %v99_v45  ;;  %v298_v59 = vmax.f32 %v234_v50, 0.0  ;;  %v238_v60 = vadd.f32 %v581_v2, %v167_v51  ;;  %v115_v47 = vld [vmem:[#allocation2 + $0x1f8] sm:$0xff] }
  0x5e   :  { %v239_v61 = vadd.f32 %v581_v2, %v168_v52  ;;  %v240_v62 = vadd.f32 %v581_v2, %v169_v53  ;;  %v299_v4 = vmax.f32 %v235_v54, 0.0  ;;  %v300_v5 = vmax.f32 %v236_v55, 0.0 }
  0x5f   :  { %v301_v6 = vmax.f32 %v237_v56, 0.0  ;;  %v241_v7 = vadd.f32 %v581_v2, %v170_v57  ;;  %363 = vst.msk [vmem:[#allocation8 + $0x140] sm:$0xff] %vm322_vm0, %v298_v59  ;;  %v302_v11 = vmax.f32 %v238_v60, 0.0  ;;  %v171_v14 = vmul.f32 %v579_v1, %v100_v58 }
  0x60   :  { %v303_v12 = vmax.f32 %v239_v61, 0.0  ;;  %v304_v13 = vmax.f32 %v240_v62, 0.0  ;;  %364 = vst.msk [vmem:[#allocation8 + $0x148] sm:$0xff] %vm322_vm0, %v299_v4  ;;  %365 = vst.msk [vmem:[#allocation8 + $0x150] sm:$0xff] %vm322_vm0, %v300_v5  ;;  %v172_v17 = vmul.f32 %v579_v1, %v101_v63  ;;  %v173_v18 = vmul.f32 %v579_v1, %v102_v0 }
  0x61   :  { %366 = vst.msk [vmem:[#allocation8 + $0x158] sm:$0xff] %vm322_vm0, %v301_v6  ;;  %v305_v16 = vmax.f32 %v241_v7, 0.0  ;;  %v174_v19 = vmul.f32 %v579_v1, %v103_v3  ;;  %367 = vst.msk [vmem:[#allocation8 + $0x160] sm:$0xff] %vm322_vm0, %v302_v11  ;;  %v242_v20 = vadd.f32 %v581_v2, %v171_v14  ;;  %v175_v21 = vmul.f32 %v579_v1, %v104_v8 }
  0x62   :  { %368 = vst.msk [vmem:[#allocation8 + $0x168] sm:$0xff] %vm322_vm0, %v303_v12  ;;  %369 = vst.msk [vmem:[#allocation8 + $0x170] sm:$0xff] %vm322_vm0, %v304_v13  ;;  %v176_v22 = vmul.f32 %v579_v1, %v105_v9  ;;  %v177_v23 = vmul.f32 %v579_v1, %v106_v10  ;;  %v243_v24 = vadd.f32 %v581_v2, %v172_v17 }
  0x63   :  { %370 = vst.msk [vmem:[#allocation8 + $0x178] sm:$0xff] %vm322_vm0, %v305_v16  ;;  %v244_v25 = vadd.f32 %v581_v2, %v173_v18  ;;  %v245_v26 = vadd.f32 %v581_v2, %v174_v19  ;;  %v178_v27 = vmul.f32 %v579_v1, %v107_v15  ;;  %v306_v29 = vmax.f32 %v242_v20, 0.0 }
  0x64   :  { %v246_v30 = vadd.f32 %v581_v2, %v175_v21  ;;  %v247_v31 = vadd.f32 %v581_v2, %v176_v22  ;;  %v248_v32 = vadd.f32 %v581_v2, %v177_v23  ;;  %v307_v36 = vmax.f32 %v243_v24, 0.0 }
  0x65   :  { %v308_v37 = vmax.f32 %v244_v25, 0.0  ;;  %v309_v38 = vmax.f32 %v245_v26, 0.0  ;;  %v249_v39 = vadd.f32 %v581_v2, %v178_v27  ;;  %371 = vst.msk [vmem:[#allocation8 + $0x180] sm:$0xff] %vm322_vm0, %v306_v29  ;;  %v179_v46 = vmul.f32 %v579_v1, %v108_v28 }
  0x66   :  { %v310_v43 = vmax.f32 %v246_v30, 0.0  ;;  %v311_v44 = vmax.f32 %v247_v31, 0.0  ;;  %v312_v45 = vmax.f32 %v248_v32, 0.0  ;;  %372 = vst.msk [vmem:[#allocation8 + $0x188] sm:$0xff] %vm322_vm0, %v307_v36  ;;  %v180_v49 = vmul.f32 %v579_v1, %v109_v33 }
  0x67   :  { %373 = vst.msk [vmem:[#allocation8 + $0x190] sm:$0xff] %vm322_vm0, %v308_v37  ;;  %374 = vst.msk [vmem:[#allocation8 + $0x198] sm:$0xff] %vm322_vm0, %v309_v38  ;;  %v313_v48 = vmax.f32 %v249_v39, 0.0  ;;  %v181_v50 = vmul.f32 %v579_v1, %v110_v34  ;;  %v182_v51 = vmul.f32 %v579_v1, %v111_v35  ;;  %v250_v52 = vadd.f32 %v581_v2, %v179_v46 }
  0x68   :  { %375 = vst.msk [vmem:[#allocation8 + $0x1a0] sm:$0xff] %vm322_vm0, %v310_v43  ;;  %376 = vst.msk [vmem:[#allocation8 + $0x1a8] sm:$0xff] %vm322_vm0, %v311_v44  ;;  %v183_v53 = vmul.f32 %v579_v1, %v112_v40  ;;  %v184_v54 = vmul.f32 %v579_v1, %v113_v41  ;;  %v185_v55 = vmul.f32 %v579_v1, %v114_v42 }
  0x69   :  { %377 = vst.msk [vmem:[#allocation8 + $0x1b0] sm:$0xff] %vm322_vm0, %v312_v45  ;;  %378 = vst.msk [vmem:[#allocation8 + $0x1b8] sm:$0xff] %vm322_vm0, %v313_v48  ;;  %v251_v56 = vadd.f32 %v581_v2, %v180_v49  ;;  %v252_v57 = vadd.f32 %v581_v2, %v181_v50  ;;  %v253_v58 = vadd.f32 %v581_v2, %v182_v51  ;;  %v314_v60 = vmax.f32 %v250_v52, 0.0 }
  0x6a   :  { %v186_v59 = vmul.f32 %v579_v1, %v115_v47  ;;  %v254_v61 = vadd.f32 %v581_v2, %v183_v53  ;;  %v255_v62 = vadd.f32 %v581_v2, %v184_v54  ;;  %v256_v63 = vadd.f32 %v581_v2, %v185_v55 }
  0x6b   :  { %v315_v0 = vmax.f32 %v251_v56, 0.0  ;;  %v316_v3 = vmax.f32 %v252_v57, 0.0  ;;  %v317_v4 = vmax.f32 %v253_v58, 0.0  ;;  %379 = vst.msk [vmem:[#allocation8 + $0x1c0] sm:$0xff] %vm322_vm0, %v314_v60 }
  0x6c   :  { %v257_v5 = vadd.f32 %v581_v2, %v186_v59  ;;  %v318_v6 = vmax.f32 %v254_v61, 0.0  ;;  %v319_v7 = vmax.f32 %v255_v62, 0.0  ;;  %v320_v8 = vmax.f32 %v256_v63, 0.0 }
  0x6d   :  { %380 = vst.msk [vmem:[#allocation8 + $0x1c8] sm:$0xff] %vm322_vm0, %v315_v0  ;;  %381 = vst.msk [vmem:[#allocation8 + $0x1d0] sm:$0xff] %vm322_vm0, %v316_v3 }
  0x6e   :  { %382 = vst.msk [vmem:[#allocation8 + $0x1d8] sm:$0xff] %vm322_vm0, %v317_v4  ;;  %v321_v1 = vmax.f32 %v257_v5, 0.0  ;;  %383 = vst.msk [vmem:[#allocation8 + $0x1e0] sm:$0xff] %vm322_vm0, %v318_v6 }
  0x6f   :  { %384 = vst.msk [vmem:[#allocation8 + $0x1e8] sm:$0xff] %vm322_vm0, %v319_v7  ;;  %385 = vst.msk [vmem:[#allocation8 + $0x1f0] sm:$0xff] %vm322_vm0, %v320_v8 }
  0x70   :  { %386 = vst.msk [vmem:[#allocation8 + $0x1f8] sm:$0xff] %vm322_vm0, %v321_v1 }
  0x71   :  { %490 = shalt.err (!%p487_p0)
}
  0x72   :  { %s491_s27 = scalar_lea.hbm %s793_s3, 8192 }
  0x73   :  { %p492_p1 = scmp.ne.s32.totalorder %s793_s3, %s491_s27  ;;  %p495_p2 = scmp.lt.u32.totalorder %s491_s27, %s793_s3 }
  0x75   :  { %p497_p3 = pnand %p495_p2, %p492_p1 }
  0x77   :  { %500 = shalt.err (!%p497_p3)
}
  0x78   :  { %398 = dma.vmem_to_hbm [thread:$0]  %s393_s23, 8192, %s793_s3, [#allocation4], %s509_s1, %s509_s1, %s510_s8  }
  0x79   :  { %505 = dma.done.wait [#allocation4], 8192  }
  0x7a   :  { %506 = vsyncadd [#allocation4], 4294959104 }
  0x7b   :  { %402 = vsyncpa [#allocation3], 1 }
  0x7c   :  { %403 = vsyncpa [#allocation6], 1 }
  0x7d   :  { %404 = vsyncpa [#allocation4], 1 }

// kernel: conv_bn_relu.2
= control target key start
LH: loop header
LB: loop body
LE: loop exit
PB: predicated region body
PF: predicated region fallthrough
CT: control target
= control target key end

     0   :  { %9 = vsyncpa [#allocation4], 0  ;;  %s4762_s0 = inlined_call_operand.hbm [shape: f32[2,18,18,4], index: 0, kind: input, shape index: {}]   ;;  %s4763_s1 = inlined_call_operand.hbm [shape: f32[36,8], index: 1, kind: input, shape index: {}]   ;;  %s4764_s2 = inlined_call_operand.hbm [shape: f32[2,256,8], index: 2, kind: output, shape index: {0}]   ;;  %s4765_s3 = inlined_call_operand.hbm [shape: f32[2,2,8], index: 3, kind: output, shape index: {1}]  }
   0x1   :  { %11 = vsyncpa [#allocation4 + $0x1], 0 }
   0x2   :  { %12 = vsyncpa [#allocation7], 0 }
   0x3   :  { %13 = vsyncpa [#allocation5], 0 }
   0x4   :  { %15 = vsyncpa [#allocation5 + $0x1], 0 }
   0x5   :  { %16 = vsyncpa [#allocation10], 0 }
   0x6   :  { %18 = vsyncpa [#allocation10 + $0x1], 0  ;;  %s3275_s12 = smov 0   ;;  %s3277_s13 = smov 0  }
   0x7   :  { %s3279_s14 = smov 0   ;;  %s3281_s15 = smov 0  }
   0x8   :  { %s3283_s16 = smov 0   ;;  %s3285_s17 = smov 0  }
   0x9 LB: > { %s2618_s18 = sadd.s32 4294967295, %s3238_s17   ;;  %s2619_s19 = sadd.s32 4294967294, %s3238_s17   ;;  %s3238_s17 = sphi %s3285_s17, %s24_s17   ;;  %s3234_s16 = sphi %s3283_s16, %s4788_s16   ;;  %s3230_s15 = sphi %s3281_s15, %s4787_s15   ;;  %s3226_s14 = sphi %s3279_s14, %s4786_s14   ;;  %s3222_s13 = sphi %s3277_s13, %s4785_s13   ;;  %s3218_s12 = sphi %s3275_s12, %s4784_s12  }
   0xa   : > { %p56_p0 = scmp.ne.s32.totalorder %s3222_s13, %s3218_s12  ;;  %p3309_p1 = scmp.eq.s32.totalorder %s2618_s18, 0 }
   0xb   : > { %p3313_p2 = scmp.eq.s32.totalorder %s2618_s18, 1  ;;  %p114_p3 = scmp.eq.s32.totalorder %s2619_s19, 1 }
   0xc   : > { %s4770_s20 = scalar_select %p3309_p1, 1, 0 }
   0xd   : > { %s4771_s21 = scalar_select %p3313_p2, 1, 0 }
   0xe   : > { %p3319_p4 = por %p3309_p1, %p56_p0  ;;  %p2620_p5 = scmp.ge.s32.totalorder %s3238_s17, 1 }
   0xf   : > { %p3324_p6 = por %p114_p3, %p56_p0  ;;  %p149_p7 = scmp.lt.s32.totalorder %s3238_s17, 3 }
  0x10   : > { %s4772_s22 = scalar_select %p3319_p4, 1, 0 }
  0x11   : > { %s4773_s23 = scalar_select %p3324_p6, 1, 0 }
  0x12   : > { %p3329_p8 = pnand %p2620_p5, %p149_p7  ;;  %s3240_s25 = smov [#allocation6]  }
  0x13   : > { %s163_s26 = sshll.u32 %s3240_s25, 4  ;;  %s36_s28 = sadd.s32 1, %s3234_s16  ;;  %s164_s26 = int_to_ptr.vmem [resolvable:$true] %s163_s26 }
  0x14   : > { %s4774_s24 = scalar_select %p3329_p8, 1, 0 }
  0x15   : > { %p2983_p9 = pneg %p3329_p8  ;;  %s3062_s4 = scalar_lea.hbm %s4763_s1, 640 }
  0x16   : > { %p3063_p12 = scmp.ne.s32.totalorder %s4763_s1, %s3062_s4  ;;  %p3069_p5 = scmp.lt.u32.totalorder %s3062_s4, %s4763_s1 }
  0x17   : > { %p3338_p11 = pnand %p2983_p9, %p3309_p1 }
  0x19   : > { %p3064_p13 = pneg %p3338_p11 }
  0x1b   : > { %p3065_p0 = pnand %p3064_p13, %p3063_p12 }
  0x1d   : > { %p3066_p3 = pneg %p3065_p0 }
  0x1f   : > { %p3071_p7 = pnand %p3069_p5, %p3066_p3 }
  0x21   : > { %3074 = shalt.err (!%p3071_p7)
}
  0x22   : > { %s3075_s9 = scalar_lea.vmem %s164_s26, 640  ;;  %p3083_p1 = scmp.lt.s32.totalorder %s164_s26, %s164_s26 }
  0x23   : > { %p3076_p9 = scmp.ne.s32.totalorder %s164_s26, %s3075_s9  ;;  %p3084_p4 = scmp.lt.s32.totalorder %s3075_s9, %s3075_s9 }
  0x25   : > { %p3078_p10 = pnand %p3076_p9, %p3064_p13  ;;  %p3085_p8 = por %p3084_p4, %p3083_p1 }
  0x27   : > { %p3079_p6 = pneg %p3078_p10 }
  0x29   : > { %p3086_p2 = pnand %p3085_p8, %p3079_p6 }
  0x2b   : > { %3089 = shalt.err (!%p3086_p2)
}
  0x2c   : > { %s3241_s10 = smov 128   ;;  %s3242_s11 = smov 8  }
  0x2d   : > { %2986 = dma.hbm_to_vmem [thread:$0]  (!%p3338_p11), %s4763_s1, 640, %s164_s26, [#allocation7], %s3241_s10, %s3241_s10, %s3242_s11  }
  0x2e   : > { %p38_p1 = scmp.ge.s32.totalorder %s36_s28, 2  ;;  %s43_s25 = sadd.s32 1, %s3226_s14 }
  0x2f   : > { %p50_p2 = scmp.ne.s32.totalorder %s3226_s14, %s3222_s13  ;;  %p51_p4 = scmp.eq.s32.totalorder %s3238_s17, 0 }
  0x30   : > { %s4790_s28 = smov (%p38_p1, %s36_s28), 0  ;;  %p4776_p8 = scmp.ne.s32.totalorder %s4771_s21, 0 }
  0x31   : > { %p52_p6 = por %p51_p4, %p50_p2  ;;  %s40_s27 = ssub.s32 %s3234_s16, %s4790_s28 }
  0x32   : > { %p3370_p10 = por %p4776_p8, %p50_p2  ;;  %p2999_p12 = scmp.lt.s32.totalorder %s3238_s17, 2 }
  0x33   : > { %p41_p13 = scmp.eq.s32.totalorder %s40_s27, 0  ;;  %s177_s30 = sand.u32 1, %s3226_s14  }
  0x34   : > { %s2970_s4 = smul.u32 432, %s177_s30  ;;  %p3382_p11 = pnand %p2999_p12, %p52_p6 }
  0x35   : > { %s3379_s5 = scalar_select %p41_p13, %s3226_s14, %s43_s25  }
  0x36   : > { %s2971_s26 = smul.u32 6912, %s3234_s16  ;;  %s181_s6 = scalar_lea.vmem [#allocation3], %s2970_s4 }
  0x37   : > { %s188_s7 = sshll.u32 %s181_s6, 4  ;;  %s3393_s19 = scalar_lea.sflag [#allocation4], %s177_s30  ;;  %s3391_s7 = int_to_ptr.vmem [resolvable:$true] %s188_s7 }
  0x38   : > { %s3389_s18 = scalar_lea.hbm %s4762_s0, %s2971_s26  ;;  %p3092_p3 = pneg %p3382_p11 }
  0x39   : > { %s3090_s25 = scalar_lea.hbm %s3389_s18, 6912  ;;  %s3095_s26 = scalar_lea.hbm %s4762_s0, 13824 }
  0x3a   : > { %p3091_p0 = scmp.ne.s32.totalorder %s3389_s18, %s3090_s25  ;;  %p3096_p9 = scmp.lt.u32.totalorder %s3389_s18, %s4762_s0 }
  0x3b   : > { %p3097_p1 = scmp.lt.u32.totalorder %s3095_s26, %s3090_s25  ;;  %p3099_p4 = scmp.lt.u32.totalorder %s3090_s25, %s3389_s18 }
  0x3c   : > { %p3093_p5 = pnand %p3092_p3, %p3091_p0 }
  0x3d   : > { %p3098_p2 = por %p3097_p1, %p3096_p9 }
  0x3e   : > { %p3094_p7 = pneg %p3093_p5 }
  0x3f   : > { %p3100_p6 = por %p3099_p4, %p3098_p2 }
  0x41   : > { %p3101_p8 = pnand %p3100_p6, %p3094_p7 }
  0x43   : > { %3104 = shalt.err (!%p3101_p8)
}
  0x44   : > { %s3105_s30 = scalar_lea.vmem %s3391_s7, 6912  ;;  %s3243_s21 = smov [#allocation3]  }
  0x45   : > { %p3106_p12 = scmp.ne.s32.totalorder %s3391_s7, %s3105_s30  ;;  %s3110_s27 = sshll.u32 %s3243_s21, 4  ;;  %s3111_s27 = int_to_ptr.vmem [resolvable:$false] %s3110_s27 }
  0x46   : > { %s3112_s4 = scalar_lea.vmem %s3111_s27, 13824  ;;  %p3113_p5 = scmp.lt.s32.totalorder %s3391_s7, %s3111_s27 }
  0x47   : > { %p3108_p13 = pnand %p3106_p12, %p3092_p3  ;;  %p3114_p9 = scmp.lt.s32.totalorder %s3112_s4, %s3105_s30 }
  0x49   : > { %p3109_p0 = pneg %p3108_p13  ;;  %p3115_p1 = por %p3114_p9, %p3113_p5 }
  0x4b   : > { %p3116_p2 = pnand %p3115_p1, %p3109_p0 }
  0x4d   : > { %3119 = shalt.err (!%p3116_p2)
}
  0x4e   : > { %2990 = dma.hbm_to_vmem [thread:$0]  (!%p3382_p11), %s3389_s18, 6912, %s3391_s7, %s3393_s19, %s3241_s10, %s3241_s10, %s3242_s11  }
  0x4f   : > { %p4779_p3 = scmp.ne.s32.totalorder %s4774_s24, 0 }
  0x50   : > { %s3427_s25 = sand.u32 (!%p4779_p3), 1, %s3222_s13   ;;  %p4780_p7 = scmp.ne.s32.totalorder (!%p4779_p3), %s4772_s22, 0 }
  0x51   : > { %200 = sbr.rel (%p4779_p3) target bundleno = 1063 (0x427), region = 28  ;;  %s203_s6 = scalar_lea.sflag (!%p4779_p3), [#allocation4], %s3427_s25 }
  0x52   : > { %s2972_s26 = smul.u32 (!%p4779_p3), 432, %s3427_s25 }
  0x54   : > { %s3431_s9 = scalar_lea.vmem (!%p4779_p3), [#allocation3], %s2972_s26 }
  0x58   : > { %3201 = dma.done.wait (%p4780_p7), %s203_s6, 6912  }
  0x59   : > { %3203 = vsyncadd (%p4780_p7), %s203_s6, 4294960384  ;;  %p4781_p11 = scmp.ne.s32.totalorder %s4770_s20, 0 }
  0x5b   : > { %3205 = dma.done.wait (%p4781_p11), [#allocation7], 640  }
  0x5c   : > { %3207 = vsyncadd (%p4781_p11), [#allocation7], 4294966656  ;;  %v307_v0 = vld [vmem:[%s3431_s9 + $0x1] sm:$0xff]  ;;  %v3443_v1 = vld [vmem:[%s3431_s9 + $0x19] sm:$0xff]  ;;  %s3244_s22 = smov 4   ;;  %vm274_vm0 = vcmask 31744  }
  0x5d   : > { %371 = vrot.lane.b32.xlu0 %v307_v0, %s3244_s22  ;;  %375 = vrot.lane.b32.xlu1 %v3443_v1, %s3244_s22  ;;  %v308_v2 = vld [vmem:[%s3431_s9 + $0x9] sm:$0xff]  ;;  %v3450_v3 = vld [vmem:[%s3431_s9 + $0x21] sm:$0xff]  ;;  %s3245_s20 = smov 8   ;;  %s3246_s24 = smov 12   ;;  %vm1987_vm1 = vcmask 1043456   ;;  %vm467_vm2 = vcmask 64544  }
  0x5e   : > { %v3456_v4 = vld [vmem:[%s3431_s9 + $0x31] sm:$0xff]  ;;  %v3459_v5 = vld [vmem:[%s3431_s9 + $0x39] sm:$0xff]  ;;  %v3466_v6 = vld [vmem:[%s3431_s9 + $0x49] sm:$0xff]  ;;  %s3247_s10 = smov 16   ;;  %s3248_s11 = smov 20   ;;  %vm660_vm3 = vcmask 97344  }
  0x5f   : > { %v3469_v7 = vld [vmem:[%s3431_s9 + $0x51] sm:$0xff]  ;;  %v3475_v9 = vld [vmem:[%s3431_s9 + $0x20] sm:$0xff]  ;;  %v3489_v11 = vld [vmem:[%s3431_s9 + $0x69] sm:$0xff]  ;;  %s3249_s7 = smov 24   ;;  %s3250_s8 = smov 28   ;;  %vm854_vm4 = vcmask 130144  }
  0x60   : > { %v3472_v8 = vld [vmem:[%s3431_s9 + $0x18] sm:$0xff]  ;;  %v3482_v10 = vld [vmem:[%s3431_s9 + $0x61] sm:$0xff]  ;;  %278 = vst.msk [vmem:[#allocation2 + $0x18] sm:$0xff] %vm274_vm0, %v3475_v9  ;;  %v3492_v12 = vld [vmem:[%s3431_s9 + $0x30] sm:$0xff]  ;;  %s3251_s18 = smov 32   ;;  %vm1047_vm5 = vcmask 162944  }
  0x61   : > { %373 = vrot.lane.b32.xlu0 %v308_v2, %s3244_s22  ;;  %377 = vrot.lane.b32.xlu1 %v3450_v3, %s3244_s22  ;;  %277 = vst.msk [vmem:[#allocation2 + $0x10] sm:$0xff] %vm274_vm0, %v3472_v8  ;;  %v3495_v13 = vld [vmem:[%s3431_s9 + $0x38] sm:$0xff]  ;;  %v3498_v14 = vld [vmem:[%s3431_s9 + $0x48] sm:$0xff]  ;;  %279 = vst.msk [vmem:[#allocation2 + $0x20] sm:$0xff] %vm274_vm0, %v3492_v12  ;;  %vm1240_vm6 = vcmask 195744   ;;  %vm1434_vm7 = vcmask 228544  }
  0x62   : > { %v242_v15 = vld [vmem:[%s3431_s9] sm:$0xff]  ;;  %280 = vst.msk [vmem:[#allocation2 + $0x28] sm:$0xff] %vm274_vm0, %v3495_v13  ;;  %v3510_v17 = vld [vmem:[%s3431_s9 + $0x50] sm:$0xff]  ;;  %v243_v18 = vld [vmem:[%s3431_s9 + $0x8] sm:$0xff]  ;;  %vm1627_vm8 = vcmask 261344   ;;  %vm1820_vm9 = vcmask 294144  }
  0x63   : > { %v3506_v16 = vld [vmem:[%s3431_s9 + $0x79] sm:$0xff]  ;;  %275 = vst.msk [vmem:[#allocation2] sm:$0xff] %vm274_vm0, %v242_v15  ;;  %281 = vst.msk [vmem:[#allocation2 + $0x30] sm:$0xff] %vm274_vm0, %v3498_v14  ;;  %v3526_v20 = vld [vmem:[%s3431_s9 + $0x68] sm:$0xff]  ;;  %vm1890_vm10 = vcmask 293888   ;;  %s2626_s19 = sshll.u32 %s3427_s25, 8 }
  0x64   : > { %276 = vst.msk [vmem:[#allocation2 + $0x8] sm:$0xff] %vm274_vm0, %v243_v18  ;;  %282 = vst.msk [vmem:[#allocation2 + $0x38] sm:$0xff] %vm274_vm0, %v3510_v17  ;;  %v3523_v19 = vld [vmem:[%s3431_s9 + $0x60] sm:$0xff]  ;;  %v3536_v22 = vld [vmem:[%s3431_s9 + $0x78] sm:$0xff]  ;;  %vm2216_vm11 = vcmask 64512   ;;  %s4185_s30 = scalar_lea.vmem [#allocation8], %s2626_s19 }
  0x65   : > { %379 = vrot.lane.b32.xlu0 %v3456_v4, %s3244_s22  ;;  %381 = vrot.lane.b32.xlu1 %v3459_v5, %s3244_s22  ;;  %v3529_v21 = vld [vmem:[%s3431_s9 + $0x81] sm:$0xff]  ;;  %283 = vst.msk [vmem:[#allocation2 + $0x40] sm:$0xff] %vm274_vm0, %v3523_v19  ;;  %284 = vst.msk [vmem:[#allocation2 + $0x48] sm:$0xff] %vm274_vm0, %v3526_v20  ;;  %v3546_v24 = vld [vmem:[%s3431_s9 + $0x90] sm:$0xff]  ;;  %s2860_s21 = sshll.u32 %s3230_s15, 12  ;;  %s2476_s27 = sshll.u32 %s4185_s30, 4  ;;  %s4567_s27 = int_to_ptr.vmem [resolvable:$true] %s2476_s27 }
  0x66   : > { %v3539_v23 = vld [vmem:[%s3431_s9 + $0x80] sm:$0xff]  ;;  %285 = vst.msk [vmem:[#allocation2 + $0x50] sm:$0xff] %vm274_vm0, %v3536_v22  ;;  %v3549_v25 = vld [vmem:[%s3431_s9 + $0x98] sm:$0xff]  ;;  %v3552_v26 = vld [vmem:[%s3431_s9 + $0xa8] sm:$0xff]  ;;  %s4563_s6 = scalar_lea.hbm %s4764_s2, %s2860_s21 }
  0x67   : > { %286 = vst.msk [vmem:[#allocation2 + $0x58] sm:$0xff] %vm274_vm0, %v3539_v23  ;;  %287 = vst.msk [vmem:[#allocation2 + $0x60] sm:$0xff] %vm274_vm0, %v3546_v24  ;;  %v3561_v27 = vld [vmem:[%s3431_s9 + $0xb0] sm:$0xff]  ;;  %v3564_v28 = vld [vmem:[%s3431_s9 + $0xc0] sm:$0xff] }
  0x68   : > { %288 = vst.msk [vmem:[#allocation2 + $0x68] sm:$0xff] %vm274_vm0, %v3549_v25  ;;  %289 = vst.msk [vmem:[#allocation2 + $0x70] sm:$0xff] %vm274_vm0, %v3552_v26  ;;  %v3567_v29 = vld [vmem:[%s3431_s9 + $0xc8] sm:$0xff]  ;;  %v3580_v30 = vld [vmem:[%s3431_s9 + $0x91] sm:$0xff] }
  0x69   : > { %383 = vrot.lane.b32.xlu0 %v3466_v6, %s3244_s22  ;;  %385 = vrot.lane.b32.xlu1 %v3469_v7, %s3244_s22  ;;  %290 = vst.msk [vmem:[#allocation2 + $0x78] sm:$0xff] %vm274_vm0, %v3561_v27  ;;  %291 = vst.msk [vmem:[#allocation2 + $0x80] sm:$0xff] %vm274_vm0, %v3564_v28  ;;  %v3583_v31 = vld [vmem:[%s3431_s9 + $0x99] sm:$0xff]  ;;  %v3600_v34 = vld [vmem:[%s3431_s9 + $0xa9] sm:$0xff] }
  0x6a   : > { %292 = vst.msk [vmem:[#allocation2 + $0x88] sm:$0xff] %vm274_vm0, %v3567_v29  ;;  %v3586_v32 = vld [vmem:[%s3431_s9 + $0xd8] sm:$0xff]  ;;  %v3591_v33 = vld [vmem:[%s3431_s9 + $0xe0] sm:$0xff]  ;;  %v3606_v36 = vld [vmem:[%s3431_s9 + $0xf0] sm:$0xff] }
  0x6b   : > { %293 = vst.msk [vmem:[#allocation2 + $0x90] sm:$0xff] %vm274_vm0, %v3586_v32  ;;  %294 = vst.msk [vmem:[#allocation2 + $0x98] sm:$0xff] %vm274_vm0, %v3591_v33  ;;  %v3603_v35 = vld [vmem:[%s3431_s9 + $0xb1] sm:$0xff]  ;;  %v3620_v38 = vld [vmem:[%s3431_s9 + $0xc1] sm:$0xff] }
  0x6c   : > { %295 = vst.msk [vmem:[#allocation2 + $0xa0] sm:$0xff] %vm274_vm0, %v3606_v36  ;;  %v3611_v37 = vld [vmem:[%s3431_s9 + $0xf8] sm:$0xff]  ;;  %v3623_v39 = vld [vmem:[%s3431_s9 + $0xc9] sm:$0xff]  ;;  %v326_v43 = vld [vmem:[%s3431_s9 + $0xe1] sm:$0xff] }
  0x6d   : > { %387 = vrot.lane.b32.xlu0 %v3482_v10, %s3244_s22  ;;  %389 = vrot.lane.b32.xlu1 %v3489_v11, %s3244_s22  ;;  %296 = vst.msk [vmem:[#allocation2 + $0xa8] sm:$0xff] %vm274_vm0, %v3611_v37  ;;  %v3626_v40 = vld [vmem:[%s3431_s9 + $0x108] sm:$0xff]  ;;  %v3631_v41 = vld [vmem:[%s3431_s9 + $0x110] sm:$0xff] }
  0x6e   : > { %297 = vst.msk [vmem:[#allocation2 + $0xb0] sm:$0xff] %vm274_vm0, %v3626_v40  ;;  %298 = vst.msk [vmem:[#allocation2 + $0xb8] sm:$0xff] %vm274_vm0, %v3631_v41  ;;  %v325_v42 = vld [vmem:[%s3431_s9 + $0xd9] sm:$0xff]  ;;  %v3647_v45 = vld [vmem:[%s3431_s9 + $0x128] sm:$0xff] }
  0x6f   : > { %v3642_v44 = vld [vmem:[%s3431_s9 + $0x120] sm:$0xff]  ;;  %300 = vst.msk [vmem:[#allocation2 + $0xc8] sm:$0xff] %vm274_vm0, %v3647_v45  ;;  %v327_v46 = vld [vmem:[%s3431_s9 + $0xf1] sm:$0xff]  ;;  %v329_v50 = vld [vmem:[%s3431_s9 + $0x109] sm:$0xff] }
  0x70   : > { %299 = vst.msk [vmem:[#allocation2 + $0xc0] sm:$0xff] %vm274_vm0, %v3642_v44  ;;  %v328_v47 = vld [vmem:[%s3431_s9 + $0xf9] sm:$0xff]  ;;  %v330_v51 = vld [vmem:[%s3431_s9 + $0x111] sm:$0xff]  ;;  %v331_v54 = vld [vmem:[%s3431_s9 + $0x121] sm:$0xff] }
  0x71   : > { %391 = vrot.lane.b32.xlu0 %v3506_v16, %s3244_s22  ;;  %393 = vrot.lane.b32.xlu1 %v3529_v21, %s3244_s22  ;;  %v3656_v48 = vld [vmem:[%s3431_s9 + $0x138] sm:$0xff]  ;;  %v269_v49 = vld [vmem:[%s3431_s9 + $0x140] sm:$0xff] }
  0x72   : > { %301 = vst.msk [vmem:[#allocation2 + $0xd0] sm:$0xff] %vm274_vm0, %v3656_v48  ;;  %302 = vst.msk [vmem:[#allocation2 + $0xd8] sm:$0xff] %vm274_vm0, %v269_v49  ;;  %v270_v52 = vld [vmem:[%s3431_s9 + $0x150] sm:$0xff]  ;;  %v271_v53 = vld [vmem:[%s3431_s9 + $0x158] sm:$0xff] }
  0x73   : > { %303 = vst.msk [vmem:[#allocation2 + $0xe0] sm:$0xff] %vm274_vm0, %v270_v52  ;;  %304 = vst.msk [vmem:[#allocation2 + $0xe8] sm:$0xff] %vm274_vm0, %v271_v53  ;;  %v332_v55 = vld [vmem:[%s3431_s9 + $0x129] sm:$0xff]  ;;  %v333_v58 = vld [vmem:[%s3431_s9 + $0x139] sm:$0xff] }
  0x74   : > { %v272_v56 = vld [vmem:[%s3431_s9 + $0x168] sm:$0xff]  ;;  %v273_v57 = vld [vmem:[%s3431_s9 + $0x170] sm:$0xff]  ;;  %v336_v61 = vld [vmem:[%s3431_s9 + $0x159] sm:$0xff] }
  0x75   : > { %395 = vrot.lane.b32.xlu0 %v3580_v30, %s3244_s22  ;;  %397 = vrot.lane.b32.xlu1 %v3583_v31, %s3244_s22  ;;  %305 = vst.msk [vmem:[#allocation2 + $0xf0] sm:$0xff] %vm274_vm0, %v272_v56  ;;  %306 = vst.msk [vmem:[#allocation2 + $0xf8] sm:$0xff] %vm274_vm0, %v273_v57  ;;  %v334_v59 = vld [vmem:[%s3431_s9 + $0x141] sm:$0xff]  ;;  %v335_v60 = vld [vmem:[%s3431_s9 + $0x151] sm:$0xff] }
  0x76   : > { %v337_v62 = vld [vmem:[%s3431_s9 + $0x169] sm:$0xff]  ;;  %v338_v63 = vld [vmem:[%s3431_s9 + $0x171] sm:$0xff]  ;;  %v2692_v15 = vld [vmem:[%s3431_s9 + $0x1a] sm:$0xff] }
  0x77   : > { %v500_v0 = vld [vmem:[%s3431_s9 + $0x2] sm:$0xff]  ;;  %v501_v2 = vld [vmem:[%s3431_s9 + $0xa] sm:$0xff] }
  0x78   : > { %v2693_v18 = vld [vmem:[%s3431_s9 + $0x22] sm:$0xff] }
  0x79   : > { %399 = vrot.lane.b32.xlu0 %v3600_v34, %s3244_s22  ;;  %401 = vrot.lane.b32.xlu1 %v3603_v35, %s3244_s22 }
  0x7d   : > { %403 = vrot.lane.b32.xlu0 %v3620_v38, %s3244_s22  ;;  %405 = vrot.lane.b32.xlu1 %v3623_v39, %s3244_s22 }
  0x81   : > { %407 = vrot.lane.b32.xlu0 %v325_v42, %s3244_s22  ;;  %409 = vrot.lane.b32.xlu1 %v326_v43, %s3244_s22  ;;  %v1888_v42 = vld [vmem:[#allocation6 + $0x18] sm:$0xff] }
  0x85   : > { %411 = vrot.lane.b32.xlu0 %v327_v46, %s3244_s22  ;;  %413 = vrot.lane.b32.xlu1 %v328_v47, %s3244_s22  ;;  %v1889_v46 = vld [vmem:[#allocation6 + $0x20] sm:$0xf] }
  0x89   : > { %415 = vrot.lane.b32.xlu0 %v329_v50, %s3244_s22  ;;  %417 = vrot.lane.b32.xlu1 %v330_v51, %s3244_s22 }
  0x8d   : > { %419 = vrot.lane.b32.xlu0 %v331_v54, %s3244_s22  ;;  %421 = vrot.lane.b32.xlu1 %v332_v55, %s3244_s22 }
  0x91   : > { %423 = vrot.lane.b32.xlu0 %v333_v58, %s3244_s22  ;;  %425 = vrot.lane.b32.xlu1 %v334_v59, %s3244_s22 }
  0x95   : > { %427 = vrot.lane.b32.xlu0 %v335_v60, %s3244_s22  ;;  %429 = vrot.lane.b32.xlu1 %v336_v61, %s3244_s22 }
  0x99   : > { %431 = vrot.lane.b32.xlu0 %v337_v62, %s3244_s22  ;;  %433 = vrot.lane.b32.xlu1 %v338_v63, %s3244_s22  ;;  %s3120_s22 = scalar_lea.vmem %s4567_s27, 4096 }
  0x9a   : > { %p3121_p4 = scmp.ne.s32.totalorder %s4567_s27, %s3120_s22 }
  0x9c   : > { %p3122_p6 = pnand %p3121_p4, %p3370_p10 }
  0x9d   : > { %564 = vrot.lane.b32.xlu0 %v500_v0, %s3245_s20  ;;  %566 = vrot.lane.b32.xlu1 %v501_v2, %s3245_s20 }
  0x9e   : > { %p3123_p8 = pneg %p3122_p6 }
  0xa1   : > { %758 = vrot.lane.b32.xlu0 %v3472_v8, %s3246_s24  ;;  %760 = vrot.lane.b32.xlu1 %v3475_v9, %s3246_s24  ;;  %v1887_v9 = vld [vmem:[#allocation6 + $0x10] sm:$0xff] }
  0xa2   : > { %v2960_v43 = vpack.c.bf16 %v1888_v42, %v1887_v9 }
  0xa5   : > { %951 = vrot.lane.b32.xlu0 %v3443_v1, %s3247_s10  ;;  %953 = vrot.lane.b32.xlu1 %v3450_v3, %s3247_s10  ;;  %v1885_v1 = vld [vmem:[#allocation6] sm:$0xff]  ;;  %v1886_v3 = vld [vmem:[#allocation6 + $0x8] sm:$0xff] }
  0xa6   : > { %v2956_v8 = vpack.c.bf16 %v1886_v3, %v1885_v1 }
  0xa8   : > { %2957 = vmatprep.subr.bf16.mxu0 %v2956_v8  ;;  %2964 = vmatprep.subr.bf16.mxu1 %v2956_v8 }
  0xa9   : > { %1144 = vrot.lane.b32.xlu0 %v2692_v15, %s3248_s11  ;;  %568 = vrot.lane.b32.xlu1 %v2692_v15, %s3245_s20 }
  0xaa   : > { %2959 = vmatpush3.bf16.msra.mxu0 %v2956_v8  ;;  %2967 = vmatpush3.bf16.msra.mxu1 %v2956_v8 }
  0xab   : > { %2961 = vmatprep.subr.bf16.mxu0 %v2960_v43  ;;  %2965 = vmatprep.subr.bf16.mxu1 %v2960_v43 }
  0xad   : > { %1146 = vrot.lane.b32.xlu0 %v2693_v18, %s3248_s11  ;;  %1338 = vrot.lane.b32.xlu1 %v3492_v12, %s3249_s7 }
  0xae   : > { %2963 = vmatpush3.bf16.msra.mxu0 %v2960_v43  ;;  %2968 = vmatpush3.bf16.msra.mxu1 %v2960_v43 }
  0xaf   : > { %2906 = vmatprep.subr.msk.mxu0 %vm1987_vm1, %v1889_v46  ;;  %2966 = vmatprep.subr.msk.mxu1 %vm1987_vm1, %v1889_v46 }
  0xb1   : > { %570 = vrot.lane.b32.xlu0 %v2693_v18, %s3245_s20  ;;  %762 = vrot.lane.b32.xlu1 %v3492_v12, %s3246_s24  ;;  %v2788_v12 = vld [vmem:[%s3431_s9 + $0x32] sm:$0xff] }
  0xb2   : > { %2907 = vmatpush3.msk.msra.mxu0 %vm1987_vm1, %v1889_v46  ;;  %2969 = vmatpush3.msk.msra.mxu1 %vm1987_vm1, %v1889_v46 }
  0xb5   : > { %1340 = vrot.lane.b32.xlu0 %v3495_v13, %s3249_s7  ;;  %1531 = vrot.lane.b32.xlu1 %v3456_v4, %s3250_s8 }
  0xb9   : > { %764 = vrot.lane.b32.xlu0 %v3495_v13, %s3246_s24  ;;  %955 = vrot.lane.b32.xlu1 %v3456_v4, %s3247_s10  ;;  %v2789_v4 = vld [vmem:[%s3431_s9 + $0x3a] sm:$0xff] }
  0xbd   : > { %1533 = vrot.lane.b32.xlu0 %v3459_v5, %s3250_s8  ;;  %1724 = vrot.lane.b32.xlu1 %v2788_v12, %s3251_s18 }
  0xc1   : > { %957 = vrot.lane.b32.xlu0 %v3459_v5, %s3247_s10  ;;  %1148 = vrot.lane.b32.xlu1 %v2788_v12, %s3248_s11 }
  0xc5   : > { %1726 = vrot.lane.b32.xlu0 %v2789_v4, %s3251_s18  ;;  %572 = vrot.lane.b32.xlu1 %v2788_v12, %s3245_s20 }
  0xc9   : > { %1150 = vrot.lane.b32.xlu0 %v2789_v4, %s3248_s11  ;;  %1342 = vrot.lane.b32.xlu1 %v3498_v14, %s3249_s7 }
  0xcd   : > { %574 = vrot.lane.b32.xlu0 %v2789_v4, %s3245_s20  ;;  %766 = vrot.lane.b32.xlu1 %v3498_v14, %s3246_s24  ;;  %v2790_v14 = vld [vmem:[%s3431_s9 + $0x4a] sm:$0xff] }
  0xcf   : > { %v372_v5 = vpop.permute.xlu0 %371  ;;  %v376_v13 = vpop.permute.xlu1 %375 }
  0xd0   : > { %468 = vst.msk [vmem:[#allocation2] sm:$0xff] %vm467_vm2, %v372_v5  ;;  %470 = vst.msk [vmem:[#allocation2 + $0x10] sm:$0xff] %vm467_vm2, %v376_v13 }
  0xd1   : > { %1344 = vrot.lane.b32.xlu0 %v3510_v17, %s3249_s7  ;;  %1535 = vrot.lane.b32.xlu1 %v3466_v6, %s3250_s8 }
  0xd3   : > { %v374_v47 = vpop.permute.xlu0 %373  ;;  %v378_v49 = vpop.permute.xlu1 %377 }
  0xd4   : > { %469 = vst.msk [vmem:[#allocation2 + $0x8] sm:$0xff] %vm467_vm2, %v374_v47  ;;  %471 = vst.msk [vmem:[#allocation2 + $0x18] sm:$0xff] %vm467_vm2, %v378_v49 }
  0xd5   : > { %768 = vrot.lane.b32.xlu0 %v3510_v17, %s3246_s24  ;;  %959 = vrot.lane.b32.xlu1 %v3466_v6, %s3247_s10  ;;  %v2791_v6 = vld [vmem:[%s3431_s9 + $0x52] sm:$0xff] }
  0xd7   : > { %v380_v50 = vpop.permute.xlu0 %379  ;;  %v382_v51 = vpop.permute.xlu1 %381 }
  0xd8   : > { %472 = vst.msk [vmem:[#allocation2 + $0x20] sm:$0xff] %vm467_vm2, %v380_v50  ;;  %473 = vst.msk [vmem:[#allocation2 + $0x28] sm:$0xff] %vm467_vm2, %v382_v51 }
  0xd9   : > { %1537 = vrot.lane.b32.xlu0 %v3469_v7, %s3250_s8  ;;  %1728 = vrot.lane.b32.xlu1 %v2790_v14, %s3251_s18 }
  0xdb   : > { %v384_v52 = vpop.permute.xlu0 %383  ;;  %v386_v53 = vpop.permute.xlu1 %385 }
  0xdc   : > { %474 = vst.msk [vmem:[#allocation2 + $0x30] sm:$0xff] %vm467_vm2, %v384_v52  ;;  %475 = vst.msk [vmem:[#allocation2 + $0x38] sm:$0xff] %vm467_vm2, %v386_v53 }
  0xdd   : > { %961 = vrot.lane.b32.xlu0 %v3469_v7, %s3247_s10  ;;  %1152 = vrot.lane.b32.xlu1 %v2790_v14, %s3248_s11 }
  0xdf   : > { %v388_v17 = vpop.permute.xlu0 %387  ;;  %v390_v54 = vpop.permute.xlu1 %389 }
  0xe0   : > { %476 = vst.msk [vmem:[#allocation2 + $0x40] sm:$0xff] %vm467_vm2, %v388_v17  ;;  %477 = vst.msk [vmem:[#allocation2 + $0x48] sm:$0xff] %vm467_vm2, %v390_v54 }
  0xe1   : > { %1730 = vrot.lane.b32.xlu0 %v2791_v6, %s3251_s18  ;;  %576 = vrot.lane.b32.xlu1 %v2790_v14, %s3245_s20 }
  0xe3   : > { %v392_v55 = vpop.permute.xlu0 %391  ;;  %v394_v56 = vpop.permute.xlu1 %393 }
  0xe4   : > { %478 = vst.msk [vmem:[#allocation2 + $0x50] sm:$0xff] %vm467_vm2, %v392_v55  ;;  %479 = vst.msk [vmem:[#allocation2 + $0x58] sm:$0xff] %vm467_vm2, %v394_v56 }
  0xe5   : > { %1154 = vrot.lane.b32.xlu0 %v2791_v6, %s3248_s11  ;;  %1346 = vrot.lane.b32.xlu1 %v3523_v19, %s3249_s7 }
  0xe7   : > { %v396_v7 = vpop.permute.xlu0 %395  ;;  %v398_v57 = vpop.permute.xlu1 %397 }
  0xe8   : > { %480 = vst.msk [vmem:[#allocation2 + $0x60] sm:$0xff] %vm467_vm2, %v396_v7  ;;  %481 = vst.msk [vmem:[#allocation2 + $0x68] sm:$0xff] %vm467_vm2, %v398_v57 }
  0xe9   : > { %578 = vrot.lane.b32.xlu0 %v2791_v6, %s3245_s20  ;;  %770 = vrot.lane.b32.xlu1 %v3523_v19, %s3246_s24  ;;  %v2792_v19 = vld [vmem:[%s3431_s9 + $0x62] sm:$0xff] }
  0xeb   : > { %v400_v58 = vpop.permute.xlu0 %399  ;;  %v402_v59 = vpop.permute.xlu1 %401 }
  0xec   : > { %482 = vst.msk [vmem:[#allocation2 + $0x70] sm:$0xff] %vm467_vm2, %v400_v58  ;;  %483 = vst.msk [vmem:[#allocation2 + $0x78] sm:$0xff] %vm467_vm2, %v402_v59 }
  0xed   : > { %1348 = vrot.lane.b32.xlu0 %v3526_v20, %s3249_s7  ;;  %1539 = vrot.lane.b32.xlu1 %v3482_v10, %s3250_s8 }
  0xef   : > { %v404_v60 = vpop.permute.xlu0 %403  ;;  %v406_v61 = vpop.permute.xlu1 %405 }
  0xf0   : > { %484 = vst.msk [vmem:[#allocation2 + $0x80] sm:$0xff] %vm467_vm2, %v404_v60  ;;  %485 = vst.msk [vmem:[#allocation2 + $0x88] sm:$0xff] %vm467_vm2, %v406_v61 }
  0xf1   : > { %772 = vrot.lane.b32.xlu0 %v3526_v20, %s3246_s24  ;;  %963 = vrot.lane.b32.xlu1 %v3482_v10, %s3247_s10  ;;  %v2793_v10 = vld [vmem:[%s3431_s9 + $0x6a] sm:$0xff] }
  0xf3   : > { %v408_v62 = vpop.permute.xlu0 %407  ;;  %v410_v63 = vpop.permute.xlu1 %409 }
  0xf4   : > { %486 = vst.msk [vmem:[#allocation2 + $0x90] sm:$0xff] %vm467_vm2, %v408_v62  ;;  %487 = vst.msk [vmem:[#allocation2 + $0x98] sm:$0xff] %vm467_vm2, %v410_v63 }
  0xf5   : > { %1541 = vrot.lane.b32.xlu0 %v3489_v11, %s3250_s8  ;;  %1732 = vrot.lane.b32.xlu1 %v2792_v19, %s3251_s18 }
  0xf7   : > { %v412_v0 = vpop.permute.xlu0 %411  ;;  %v414_v2 = vpop.permute.xlu1 %413 }
  0xf8   : > { %488 = vst.msk [vmem:[#allocation2 + $0xa0] sm:$0xff] %vm467_vm2, %v412_v0  ;;  %489 = vst.msk [vmem:[#allocation2 + $0xa8] sm:$0xff] %vm467_vm2, %v414_v2 }
  0xf9   : > { %965 = vrot.lane.b32.xlu0 %v3489_v11, %s3247_s10  ;;  %1156 = vrot.lane.b32.xlu1 %v2792_v19, %s3248_s11 }
  0xfb   : > { %v416_v20 = vpop.permute.xlu0 %415  ;;  %v418_v15 = vpop.permute.xlu1 %417 }
  0xfc   : > { %490 = vst.msk [vmem:[#allocation2 + $0xb0] sm:$0xff] %vm467_vm2, %v416_v20  ;;  %491 = vst.msk [vmem:[#allocation2 + $0xb8] sm:$0xff] %vm467_vm2, %v418_v15 }
  0xfd   : > { %1734 = vrot.lane.b32.xlu0 %v2793_v10, %s3251_s18  ;;  %580 = vrot.lane.b32.xlu1 %v2792_v19, %s3245_s20 }
  0xff   : > { %v420_v18 = vpop.permute.xlu0 %419  ;;  %v422_v1 = vpop.permute.xlu1 %421 }
 0x100   : > { %492 = vst.msk [vmem:[#allocation2 + $0xc0] sm:$0xff] %vm467_vm2, %v420_v18  ;;  %493 = vst.msk [vmem:[#allocation2 + $0xc8] sm:$0xff] %vm467_vm2, %v422_v1 }
 0x101   : > { %1158 = vrot.lane.b32.xlu0 %v2793_v10, %s3248_s11  ;;  %1350 = vrot.lane.b32.xlu1 %v3536_v22, %s3249_s7 }
 0x103   : > { %v424_v11 = vpop.permute.xlu0 %423  ;;  %v426_v3 = vpop.permute.xlu1 %425 }
 0x104   : > { %494 = vst.msk [vmem:[#allocation2 + $0xd0] sm:$0xff] %vm467_vm2, %v424_v11  ;;  %495 = vst.msk [vmem:[#allocation2 + $0xd8] sm:$0xff] %vm467_vm2, %v426_v3 }
 0x105   : > { %582 = vrot.lane.b32.xlu0 %v2793_v10, %s3245_s20  ;;  %774 = vrot.lane.b32.xlu1 %v3536_v22, %s3246_s24  ;;  %v2794_v22 = vld [vmem:[%s3431_s9 + $0x7a] sm:$0xff] }
 0x107   : > { %v428_v8 = vpop.permute.xlu0 %427  ;;  %v430_v9 = vpop.permute.xlu1 %429 }
 0x108   : > { %496 = vst.msk [vmem:[#allocation2 + $0xe0] sm:$0xff] %vm467_vm2, %v428_v8  ;;  %497 = vst.msk [vmem:[#allocation2 + $0xe8] sm:$0xff] %vm467_vm2, %v430_v9 }
 0x109   : > { %1352 = vrot.lane.b32.xlu0 %v3539_v23, %s3249_s7  ;;  %1543 = vrot.lane.b32.xlu1 %v3506_v16, %s3250_s8 }
 0x10b   : > { %v432_v42 = vpop.permute.xlu0 %431  ;;  %v434_v43 = vpop.permute.xlu1 %433 }
 0x10c   : > { %498 = vst.msk [vmem:[#allocation2 + $0xf0] sm:$0xff] %vm467_vm2, %v432_v42  ;;  %499 = vst.msk [vmem:[#allocation2 + $0xf8] sm:$0xff] %vm467_vm2, %v434_v43 }
 0x10d   : > { %776 = vrot.lane.b32.xlu0 %v3539_v23, %s3246_s24  ;;  %967 = vrot.lane.b32.xlu1 %v3506_v16, %s3247_s10  ;;  %v2795_v16 = vld [vmem:[%s3431_s9 + $0x82] sm:$0xff] }
 0x10f   : > { %v565_v12 = vpop.permute.xlu0 %564  ;;  %v567_v46 = vpop.permute.xlu1 %566 }
 0x110   : > { %661 = vst.msk [vmem:[#allocation2] sm:$0xff] %vm660_vm3, %v565_v12  ;;  %662 = vst.msk [vmem:[#allocation2 + $0x8] sm:$0xff] %vm660_vm3, %v567_v46 }
 0x111   : > { %1545 = vrot.lane.b32.xlu0 %v3529_v21, %s3250_s8  ;;  %1736 = vrot.lane.b32.xlu1 %v2794_v22, %s3251_s18 }
 0x113   : > { %v759_v4 = vpop.permute.xlu0 %758  ;;  %v761_v23 = vpop.permute.xlu1 %760 }
 0x114   : > { %855 = vst.msk [vmem:[#allocation2] sm:$0xff] %vm854_vm4, %v759_v4  ;;  %856 = vst.msk [vmem:[#allocation2 + $0x8] sm:$0xff] %vm854_vm4, %v761_v23 }
 0x115   : > { %969 = vrot.lane.b32.xlu0 %v3529_v21, %s3247_s10  ;;  %1160 = vrot.lane.b32.xlu1 %v2794_v22, %s3248_s11 }
 0x117   : > { %v952_v5 = vpop.permute.xlu0 %951  ;;  %v954_v13 = vpop.permute.xlu1 %953 }
 0x118   : > { %1048 = vst.msk [vmem:[#allocation2] sm:$0xff] %vm1047_vm5, %v952_v5  ;;  %1049 = vst.msk [vmem:[#allocation2 + $0x8] sm:$0xff] %vm1047_vm5, %v954_v13 }
 0x119   : > { %1738 = vrot.lane.b32.xlu0 %v2795_v16, %s3251_s18  ;;  %584 = vrot.lane.b32.xlu1 %v2794_v22, %s3245_s20 }
 0x11b   : > { %v1145_v47 = vpop.permute.xlu0 %1144  ;;  %v569_v49 = vpop.permute.xlu1 %568 }
 0x11c   : > { %1241 = vst.msk [vmem:[#allocation2] sm:$0xff] %vm1240_vm6, %v1145_v47 }
 0x11d   : > { %663 = vst.msk [vmem:[#allocation2 + $0x10] sm:$0xff] %vm660_vm3, %v569_v49  ;;  %1162 = vrot.lane.b32.xlu0 %v2795_v16, %s3248_s11  ;;  %1354 = vrot.lane.b32.xlu1 %v3546_v24, %s3249_s7 }
 0x11f   : > { %v1147_v21 = vpop.permute.xlu0 %1146  ;;  %v1339_v14 = vpop.permute.xlu1 %1338 }
 0x120   : > { %1242 = vst.msk [vmem:[#allocation2 + $0x8] sm:$0xff] %vm1240_vm6, %v1147_v21  ;;  %v2770_v21 = vld [vmem:[%s3431_s9 + $0xd9] sm:$0xff] }
 0x121   : > { %1435 = vst.msk [vmem:[#allocation2] sm:$0xff] %vm1434_vm7, %v1339_v14  ;;  %586 = vrot.lane.b32.xlu0 %v2795_v16, %s3245_s20  ;;  %778 = vrot.lane.b32.xlu1 %v3546_v24, %s3246_s24  ;;  %v2796_v24 = vld [vmem:[%s3431_s9 + $0x92] sm:$0xff] }
 0x123   : > { %v571_v50 = vpop.permute.xlu0 %570  ;;  %v763_v51 = vpop.permute.xlu1 %762 }
 0x124   : > { %664 = vst.msk [vmem:[#allocation2 + $0x18] sm:$0xff] %vm660_vm3, %v571_v50 }
 0x125   : > { %857 = vst.msk [vmem:[#allocation2 + $0x10] sm:$0xff] %vm854_vm4, %v763_v51  ;;  %1356 = vrot.lane.b32.xlu0 %v3549_v25, %s3249_s7  ;;  %1547 = vrot.lane.b32.xlu1 %v3580_v30, %s3250_s8 }
 0x127   : > { %v1341_v52 = vpop.permute.xlu0 %1340  ;;  %v1532_v53 = vpop.permute.xlu1 %1531 }
 0x128   : > { %1436 = vst.msk [vmem:[#allocation2 + $0x8] sm:$0xff] %vm1434_vm7, %v1341_v52 }
 0x129   : > { %1628 = vst.msk [vmem:[#allocation2] sm:$0xff] %vm1627_vm8, %v1532_v53  ;;  %780 = vrot.lane.b32.xlu0 %v3549_v25, %s3246_s24  ;;  %971 = vrot.lane.b32.xlu1 %v3580_v30, %s3247_s10  ;;  %v2797_v25 = vld [vmem:[%s3431_s9 + $0x9a] sm:$0xff] }
 0x12b   : > { %v765_v6 = vpop.permute.xlu0 %764  ;;  %v956_v17 = vpop.permute.xlu1 %955 }
 0x12c   : > { %858 = vst.msk [vmem:[#allocation2 + $0x18] sm:$0xff] %vm854_vm4, %v765_v6 }
 0x12d   : > { %1050 = vst.msk [vmem:[#allocation2 + $0x10] sm:$0xff] %vm1047_vm5, %v956_v17  ;;  %1549 = vrot.lane.b32.xlu0 %v3583_v31, %s3250_s8  ;;  %1740 = vrot.lane.b32.xlu1 %v2796_v24, %s3251_s18 }
 0x12f   : > { %v1534_v54 = vpop.permute.xlu0 %1533  ;;  %v1725_v55 = vpop.permute.xlu1 %1724 }
 0x130   : > { %1629 = vst.msk [vmem:[#allocation2 + $0x8] sm:$0xff] %vm1627_vm8, %v1534_v54 }
 0x131   : > { %1821 = vst.msk [vmem:[#allocation2] sm:$0xff] %vm1820_vm9, %v1725_v55  ;;  %973 = vrot.lane.b32.xlu0 %v3583_v31, %s3247_s10  ;;  %1164 = vrot.lane.b32.xlu1 %v2796_v24, %s3248_s11 }
 0x133   : > { %v958_v30 = vpop.permute.xlu0 %957  ;;  %v1149_v56 = vpop.permute.xlu1 %1148 }
 0x134   : > { %1051 = vst.msk [vmem:[#allocation2 + $0x18] sm:$0xff] %vm1047_vm5, %v958_v30 }
 0x135   : > { %1243 = vst.msk [vmem:[#allocation2 + $0x10] sm:$0xff] %vm1240_vm6, %v1149_v56  ;;  %1742 = vrot.lane.b32.xlu0 %v2797_v25, %s3251_s18  ;;  %588 = vrot.lane.b32.xlu1 %v2796_v24, %s3245_s20  ;;  %v2802_v24 = vld [vmem:[%s3431_s9 + $0xda] sm:$0xff] }
 0x137   : > { %v1727_v7 = vpop.permute.xlu0 %1726  ;;  %v573_v57 = vpop.permute.xlu1 %572 }
 0x138   : > { %v1853_v58 = vld [vmem:[#allocation2] sm:$0xff]  ;;  %1822 = vst.msk [vmem:[#allocation2 + $0x8] sm:$0xff] %vm1820_vm9, %v1727_v7 }
 0x139   : > { %665 = vst.msk [vmem:[#allocation2 + $0x20] sm:$0xff] %vm660_vm3, %v573_v57  ;;  %2908 = vmatprep.mubr.msk.f32.mxu0 %vm1890_vm10, %v1853_v58  ;;  %1166 = vrot.lane.b32.xlu0 %v2797_v25, %s3248_s11 }
 0x13a   : > { %1358 = vrot.lane.b32.xlu1 %v3552_v26, %s3249_s7 }
 0x13b   : > { %v1151_v31 = vpop.permute.xlu0 %1150  ;;  %v1343_v59 = vpop.permute.xlu1 %1342 }
 0x13c   : > { %1244 = vst.msk [vmem:[#allocation2 + $0x18] sm:$0xff] %vm1240_vm6, %v1151_v31 }
 0x13d   : > { %1437 = vst.msk [vmem:[#allocation2 + $0x10] sm:$0xff] %vm1434_vm7, %v1343_v59  ;;  %590 = vrot.lane.b32.xlu0 %v2797_v25, %s3245_s20  ;;  %v2772_v59 = vld [vmem:[%s3431_s9 + $0xf1] sm:$0xff] }
 0x13e   : > { %782 = vrot.lane.b32.xlu1 %v3552_v26, %s3246_s24  ;;  %v2798_v26 = vld [vmem:[%s3431_s9 + $0xaa] sm:$0xff] }
 0x13f   : > { %v575_v60 = vpop.permute.xlu0 %574  ;;  %v767_v61 = vpop.permute.xlu1 %766  ;;  %v1854_v19 = vld [vmem:[#allocation2 + $0x8] sm:$0xff] }
 0x140   : > { %666 = vst.msk [vmem:[#allocation2 + $0x28] sm:$0xff] %vm660_vm3, %v575_v60  ;;  %2909 = vmatmul.mubr.msk.f32.vlgmr.msra.gmra.mrb[0].mxu0 %vm1890_vm10, %v1854_v19 }
 0x141   : > { %859 = vst.msk [vmem:[#allocation2 + $0x20] sm:$0xff] %vm854_vm4, %v767_v61  ;;  %1360 = vrot.lane.b32.xlu0 %v3561_v27, %s3249_s7 }
 0x142   : > { %1551 = vrot.lane.b32.xlu1 %v3600_v34, %s3250_s8 }
 0x143   : > { %v1345_v62 = vpop.permute.xlu0 %1344  ;;  %v1536_v63 = vpop.permute.xlu1 %1535 }
 0x144   : > { %1438 = vst.msk [vmem:[#allocation2 + $0x18] sm:$0xff] %vm1434_vm7, %v1345_v62 }
 0x145   : > { %1630 = vst.msk [vmem:[#allocation2 + $0x10] sm:$0xff] %vm1627_vm8, %v1536_v63  ;;  %784 = vrot.lane.b32.xlu0 %v3561_v27, %s3246_s24  ;;  %v2799_v27 = vld [vmem:[%s3431_s9 + $0xb2] sm:$0xff] }
 0x146   : > { %975 = vrot.lane.b32.xlu1 %v3600_v34, %s3247_s10 }
 0x147   : > { %v769_v0 = vpop.permute.xlu0 %768  ;;  %v960_v2 = vpop.permute.xlu1 %959 }
 0x148   : > { %860 = vst.msk [vmem:[#allocation2 + $0x28] sm:$0xff] %vm854_vm4, %v769_v0 }
 0x149   : > { %1052 = vst.msk [vmem:[#allocation2 + $0x20] sm:$0xff] %vm1047_vm5, %v960_v2  ;;  %1553 = vrot.lane.b32.xlu0 %v3603_v35, %s3250_s8 }
 0x14a   : > { %1744 = vrot.lane.b32.xlu1 %v2798_v26, %s3251_s18 }
 0x14b   : > { %v1538_v10 = vpop.permute.xlu0 %1537  ;;  %v1729_v20 = vpop.permute.xlu1 %1728 }
 0x14c   : > { %1631 = vst.msk [vmem:[#allocation2 + $0x18] sm:$0xff] %vm1627_vm8, %v1538_v10 }
 0x14d   : > { %1823 = vst.msk [vmem:[#allocation2 + $0x10] sm:$0xff] %vm1820_vm9, %v1729_v20  ;;  %977 = vrot.lane.b32.xlu0 %v3603_v35, %s3247_s10 }
 0x14e   : > { %1168 = vrot.lane.b32.xlu1 %v2798_v26, %s3248_s11 }
 0x14f   : > { %v962_v34 = vpop.permute.xlu0 %961  ;;  %v1153_v15 = vpop.permute.xlu1 %1152 }
 0x150   : > { %1053 = vst.msk [vmem:[#allocation2 + $0x28] sm:$0xff] %vm1047_vm5, %v962_v34 }
 0x151   : > { %1245 = vst.msk [vmem:[#allocation2 + $0x20] sm:$0xff] %vm1240_vm6, %v1153_v15  ;;  %1746 = vrot.lane.b32.xlu0 %v2799_v27, %s3251_s18 }
 0x152   : > { %592 = vrot.lane.b32.xlu1 %v2798_v26, %s3245_s20  ;;  %v2804_v26 = vld [vmem:[%s3431_s9 + $0xf2] sm:$0xff] }
 0x153   : > { %v1731_v18 = vpop.permute.xlu0 %1730  ;;  %v577_v1 = vpop.permute.xlu1 %576 }
 0x154   : > { %v1855_v11 = vld [vmem:[#allocation2 + $0x10] sm:$0xff]  ;;  %1824 = vst.msk [vmem:[#allocation2 + $0x18] sm:$0xff] %vm1820_vm9, %v1731_v18 }
 0x155   : > { %667 = vst.msk [vmem:[#allocation2 + $0x30] sm:$0xff] %vm660_vm3, %v577_v1  ;;  %2911 = vmatprep.mubr.msk.f32.mxu0 %vm1890_vm10, %v1855_v11  ;;  %1170 = vrot.lane.b32.xlu0 %v2799_v27, %s3248_s11 }
 0x156   : > { %1362 = vrot.lane.b32.xlu1 %v3564_v28, %s3249_s7 }
 0x157   : > { %v1155_v35 = vpop.permute.xlu0 %1154  ;;  %v1347_v3 = vpop.permute.xlu1 %1346 }
 0x158   : > { %1246 = vst.msk [vmem:[#allocation2 + $0x28] sm:$0xff] %vm1240_vm6, %v1155_v35 }
 0x159   : > { %1439 = vst.msk [vmem:[#allocation2 + $0x20] sm:$0xff] %vm1434_vm7, %v1347_v3  ;;  %594 = vrot.lane.b32.xlu0 %v2799_v27, %s3245_s20  ;;  %v2774_v3 = vld [vmem:[%s3431_s9 + $0x109] sm:$0xff] }
 0x15a   : > { %786 = vrot.lane.b32.xlu1 %v3564_v28, %s3246_s24  ;;  %v2800_v28 = vld [vmem:[%s3431_s9 + $0xc2] sm:$0xff] }
 0x15b   : > { %v579_v8 = vpop.permute.xlu0 %578  ;;  %v771_v9 = vpop.permute.xlu1 %770  ;;  %v1856_v42 = vld [vmem:[#allocation2 + $0x18] sm:$0xff] }
 0x15c   : > { %668 = vst.msk [vmem:[#allocation2 + $0x38] sm:$0xff] %vm660_vm3, %v579_v8  ;;  %2912 = vmatmul.mubr.msk.f32.gmra.mrb[2].mxu0 %vm1890_vm10, %v1856_v42 }
 0x15d   : > { %861 = vst.msk [vmem:[#allocation2 + $0x30] sm:$0xff] %vm854_vm4, %v771_v9  ;;  %1364 = vrot.lane.b32.xlu0 %v3567_v29, %s3249_s7 }
 0x15e   : > { %1555 = vrot.lane.b32.xlu1 %v3620_v38, %s3250_s8 }
 0x15f   : > { %v1349_v43 = vpop.permute.xlu0 %1348  ;;  %v1540_v22 = vpop.permute.xlu1 %1539 }
 0x160   : > { %1440 = vst.msk [vmem:[#allocation2 + $0x28] sm:$0xff] %vm1434_vm7, %v1349_v43 }
 0x161   : > { %1632 = vst.msk [vmem:[#allocation2 + $0x20] sm:$0xff] %vm1627_vm8, %v1540_v22  ;;  %788 = vrot.lane.b32.xlu0 %v3567_v29, %s3246_s24  ;;  %v2801_v29 = vld [vmem:[%s3431_s9 + $0xca] sm:$0xff] }
 0x162   : > { %979 = vrot.lane.b32.xlu1 %v3620_v38, %s3247_s10 }
 0x163   : > { %v773_v12 = vpop.permute.xlu0 %772  ;;  %v964_v46 = vpop.permute.xlu1 %963 }
 0x164   : > { %862 = vst.msk [vmem:[#allocation2 + $0x38] sm:$0xff] %vm854_vm4, %v773_v12 }
 0x165   : > { %1054 = vst.msk [vmem:[#allocation2 + $0x30] sm:$0xff] %vm1047_vm5, %v964_v46  ;;  %1557 = vrot.lane.b32.xlu0 %v3623_v39, %s3250_s8 }
 0x166   : > { %1748 = vrot.lane.b32.xlu1 %v2800_v28, %s3251_s18 }
 0x167   : > { %v1542_v4 = vpop.permute.xlu0 %1541  ;;  %v1733_v23 = vpop.permute.xlu1 %1732 }
 0x168   : > { %1633 = vst.msk [vmem:[#allocation2 + $0x28] sm:$0xff] %vm1627_vm8, %v1542_v4 }
 0x169   : > { %1825 = vst.msk [vmem:[#allocation2 + $0x20] sm:$0xff] %vm1820_vm9, %v1733_v23  ;;  %981 = vrot.lane.b32.xlu0 %v3623_v39, %s3247_s10 }
 0x16a   : > { %1172 = vrot.lane.b32.xlu1 %v2800_v28, %s3248_s11 }
 0x16b   : > { %v966_v38 = vpop.permute.xlu0 %965  ;;  %v1157_v16 = vpop.permute.xlu1 %1156 }
 0x16c   : > { %1055 = vst.msk [vmem:[#allocation2 + $0x38] sm:$0xff] %vm1047_vm5, %v966_v38 }
 0x16d   : > { %1247 = vst.msk [vmem:[#allocation2 + $0x30] sm:$0xff] %vm1240_vm6, %v1157_v16  ;;  %1750 = vrot.lane.b32.xlu0 %v2801_v29, %s3251_s18 }
 0x16e   : > { %596 = vrot.lane.b32.xlu1 %v2800_v28, %s3245_s20  ;;  %v2806_v28 = vld [vmem:[%s3431_s9 + $0x10a] sm:$0xff] }
 0x16f   : > { %v1735_v5 = vpop.permute.xlu0 %1734  ;;  %v581_v13 = vpop.permute.xlu1 %580 }
 0x170   : > { %v1857_v47 = vld [vmem:[#allocation2 + $0x20] sm:$0xff]  ;;  %1826 = vst.msk [vmem:[#allocation2 + $0x28] sm:$0xff] %vm1820_vm9, %v1735_v5 }
 0x171   : > { %669 = vst.msk [vmem:[#allocation2 + $0x40] sm:$0xff] %vm660_vm3, %v581_v13  ;;  %2914 = vmatprep.mubr.msk.f32.mxu0 %vm1890_vm10, %v1857_v47  ;;  %1174 = vrot.lane.b32.xlu0 %v2801_v29, %s3248_s11 }
 0x172   : > { %1366 = vrot.lane.b32.xlu1 %v3586_v32, %s3249_s7 }
 0x173   : > { %v1159_v39 = vpop.permute.xlu0 %1158  ;;  %v1351_v49 = vpop.permute.xlu1 %1350 }
 0x174   : > { %1248 = vst.msk [vmem:[#allocation2 + $0x38] sm:$0xff] %vm1240_vm6, %v1159_v39 }
 0x175   : > { %1441 = vst.msk [vmem:[#allocation2 + $0x30] sm:$0xff] %vm1434_vm7, %v1351_v49  ;;  %598 = vrot.lane.b32.xlu0 %v2801_v29, %s3245_s20  ;;  %v2776_v49 = vld [vmem:[%s3431_s9 + $0x121] sm:$0xff] }
 0x176   : > { %790 = vrot.lane.b32.xlu1 %v3586_v32, %s3246_s24  ;;  %v2771_v32 = vld [vmem:[%s3431_s9 + $0xe1] sm:$0xff] }
 0x177   : > { %v583_v14 = vpop.permute.xlu0 %582  ;;  %v775_v50 = vpop.permute.xlu1 %774  ;;  %v1858_v51 = vld [vmem:[#allocation2 + $0x28] sm:$0xff] }
 0x178   : > { %670 = vst.msk [vmem:[#allocation2 + $0x48] sm:$0xff] %vm660_vm3, %v583_v14  ;;  %2915 = vmatmul.mubr.msk.f32.gmra.mrb[4].mxu0 %vm1890_vm10, %v1858_v51 }
 0x179   : > { %863 = vst.msk [vmem:[#allocation2 + $0x40] sm:$0xff] %vm854_vm4, %v775_v50  ;;  %1368 = vrot.lane.b32.xlu0 %v3591_v33, %s3249_s7 }
 0x17a   : > { %1559 = vrot.lane.b32.xlu1 %v2770_v21, %s3250_s8 }
 0x17b   : > { %v1353_v52 = vpop.permute.xlu0 %1352  ;;  %v1544_v53 = vpop.permute.xlu1 %1543 }
 0x17c   : > { %1442 = vst.msk [vmem:[#allocation2 + $0x38] sm:$0xff] %vm1434_vm7, %v1353_v52 }
 0x17d   : > { %1634 = vst.msk [vmem:[#allocation2 + $0x30] sm:$0xff] %vm1627_vm8, %v1544_v53  ;;  %792 = vrot.lane.b32.xlu0 %v3591_v33, %s3246_s24  ;;  %v2803_v33 = vld [vmem:[%s3431_s9 + $0xe2] sm:$0xff] }
 0x17e   : > { %983 = vrot.lane.b32.xlu1 %v2770_v21, %s3247_s10  ;;  %v2808_v53 = vld [vmem:[%s3431_s9 + $0x122] sm:$0xff] }
 0x17f   : > { %v777_v6 = vpop.permute.xlu0 %776  ;;  %v968_v17 = vpop.permute.xlu1 %967 }
 0x180   : > { %864 = vst.msk [vmem:[#allocation2 + $0x48] sm:$0xff] %vm854_vm4, %v777_v6 }
 0x181   : > { %1056 = vst.msk [vmem:[#allocation2 + $0x40] sm:$0xff] %vm1047_vm5, %v968_v17  ;;  %1561 = vrot.lane.b32.xlu0 %v2771_v32, %s3250_s8 }
 0x182   : > { %1752 = vrot.lane.b32.xlu1 %v2802_v24, %s3251_s18 }
 0x183   : > { %v1546_v54 = vpop.permute.xlu0 %1545  ;;  %v1737_v55 = vpop.permute.xlu1 %1736 }
 0x184   : > { %1635 = vst.msk [vmem:[#allocation2 + $0x38] sm:$0xff] %vm1627_vm8, %v1546_v54 }
 0x185   : > { %1827 = vst.msk [vmem:[#allocation2 + $0x30] sm:$0xff] %vm1820_vm9, %v1737_v55  ;;  %985 = vrot.lane.b32.xlu0 %v2771_v32, %s3247_s10 }
 0x186   : > { %1176 = vrot.lane.b32.xlu1 %v2802_v24, %s3248_s11 }
 0x187   : > { %v970_v25 = vpop.permute.xlu0 %969  ;;  %v1161_v30 = vpop.permute.xlu1 %1160 }
 0x188   : > { %1057 = vst.msk [vmem:[#allocation2 + $0x48] sm:$0xff] %vm1047_vm5, %v970_v25 }
 0x189   : > { %1249 = vst.msk [vmem:[#allocation2 + $0x40] sm:$0xff] %vm1240_vm6, %v1161_v30  ;;  %1754 = vrot.lane.b32.xlu0 %v2803_v33, %s3251_s18 }
 0x18a   : > { %600 = vrot.lane.b32.xlu1 %v2802_v24, %s3245_s20 }
 0x18b   : > { %v1739_v56 = vpop.permute.xlu0 %1738  ;;  %v585_v7 = vpop.permute.xlu1 %584 }
 0x18c   : > { %v1859_v57 = vld [vmem:[#allocation2 + $0x30] sm:$0xff]  ;;  %1828 = vst.msk [vmem:[#allocation2 + $0x38] sm:$0xff] %vm1820_vm9, %v1739_v56  ;;  %v2652_v56 = vld [vmem:[%s3431_s9 + $0x138] sm:$0xff] }
 0x18d   : > { %671 = vst.msk [vmem:[#allocation2 + $0x50] sm:$0xff] %vm660_vm3, %v585_v7  ;;  %2917 = vmatprep.mubr.msk.f32.mxu0 %vm1890_vm10, %v1859_v57  ;;  %1178 = vrot.lane.b32.xlu0 %v2803_v33, %s3248_s11 }
 0x18e   : > { %1370 = vrot.lane.b32.xlu1 %v3606_v36, %s3249_s7 }
 0x18f   : > { %v1163_v58 = vpop.permute.xlu0 %1162  ;;  %v1355_v31 = vpop.permute.xlu1 %1354 }
 0x190   : > { %1250 = vst.msk [vmem:[#allocation2 + $0x48] sm:$0xff] %vm1240_vm6, %v1163_v58  ;;  %v2747_v58 = vld [vmem:[%s3431_s9 + $0x140] sm:$0xff] }
 0x191   : > { %1443 = vst.msk [vmem:[#allocation2 + $0x40] sm:$0xff] %vm1434_vm7, %v1355_v31  ;;  %602 = vrot.lane.b32.xlu0 %v2803_v33, %s3245_s20  ;;  %v2778_v31 = vld [vmem:[%s3431_s9 + $0x139] sm:$0xff] }
 0x192   : > { %794 = vrot.lane.b32.xlu1 %v3606_v36, %s3246_s24  ;;  %v2773_v36 = vld [vmem:[%s3431_s9 + $0xf9] sm:$0xff] }
 0x193   : > { %v587_v60 = vpop.permute.xlu0 %586  ;;  %v779_v61 = vpop.permute.xlu1 %778  ;;  %v1860_v19 = vld [vmem:[#allocation2 + $0x38] sm:$0xff] }
 0x194   : > { %672 = vst.msk [vmem:[#allocation2 + $0x58] sm:$0xff] %vm660_vm3, %v587_v60  ;;  %2918 = vmatmul.mubr.msk.f32.gmra.mrb[6].mxu0 %vm1890_vm10, %v1860_v19 }
 0x195   : > { %865 = vst.msk [vmem:[#allocation2 + $0x50] sm:$0xff] %vm854_vm4, %v779_v61  ;;  %1372 = vrot.lane.b32.xlu0 %v3611_v37, %s3249_s7 }
 0x196   : > { %1563 = vrot.lane.b32.xlu1 %v2772_v59, %s3250_s8 }
 0x197   : > { %v1357_v62 = vpop.permute.xlu0 %1356  ;;  %v1548_v63 = vpop.permute.xlu1 %1547 }
 0x198   : > { %1444 = vst.msk [vmem:[#allocation2 + $0x48] sm:$0xff] %vm1434_vm7, %v1357_v62  ;;  %v2779_v62 = vld [vmem:[%s3431_s9 + $0x141] sm:$0xff] }
 0x199   : > { %1636 = vst.msk [vmem:[#allocation2 + $0x40] sm:$0xff] %vm1627_vm8, %v1548_v63  ;;  %796 = vrot.lane.b32.xlu0 %v3611_v37, %s3246_s24  ;;  %v2805_v37 = vld [vmem:[%s3431_s9 + $0xfa] sm:$0xff] }
 0x19a   : > { %987 = vrot.lane.b32.xlu1 %v2772_v59, %s3247_s10  ;;  %v2810_v63 = vld [vmem:[%s3431_s9 + $0x13a] sm:$0xff] }
 0x19b   : > { %v781_v0 = vpop.permute.xlu0 %780  ;;  %v972_v2 = vpop.permute.xlu1 %971 }
 0x19c   : > { %866 = vst.msk [vmem:[#allocation2 + $0x58] sm:$0xff] %vm854_vm4, %v781_v0 }
 0x19d   : > { %1058 = vst.msk [vmem:[#allocation2 + $0x50] sm:$0xff] %vm1047_vm5, %v972_v2  ;;  %1565 = vrot.lane.b32.xlu0 %v2773_v36, %s3250_s8 }
 0x19e   : > { %1756 = vrot.lane.b32.xlu1 %v2804_v26, %s3251_s18 }
 0x19f   : > { %v1550_v10 = vpop.permute.xlu0 %1549  ;;  %v1741_v20 = vpop.permute.xlu1 %1740 }
 0x1a0   : > { %1637 = vst.msk [vmem:[#allocation2 + $0x48] sm:$0xff] %vm1627_vm8, %v1550_v10  ;;  %v2811_v10 = vld [vmem:[%s3431_s9 + $0x142] sm:$0xff] }
 0x1a1   : > { %1829 = vst.msk [vmem:[#allocation2 + $0x40] sm:$0xff] %vm1820_vm9, %v1741_v20  ;;  %989 = vrot.lane.b32.xlu0 %v2773_v36, %s3247_s10 }
 0x1a2   : > { %1180 = vrot.lane.b32.xlu1 %v2804_v26, %s3248_s11 }
 0x1a3   : > { %v974_v27 = vpop.permute.xlu0 %973  ;;  %v1165_v34 = vpop.permute.xlu1 %1164 }
 0x1a4   : > { %1059 = vst.msk [vmem:[#allocation2 + $0x58] sm:$0xff] %vm1047_vm5, %v974_v27  ;;  %v2748_v27 = vld [vmem:[%s3431_s9 + $0x150] sm:$0xff] }
 0x1a5   : > { %1251 = vst.msk [vmem:[#allocation2 + $0x50] sm:$0xff] %vm1240_vm6, %v1165_v34  ;;  %1758 = vrot.lane.b32.xlu0 %v2805_v37, %s3251_s18 }
 0x1a6   : > { %604 = vrot.lane.b32.xlu1 %v2804_v26, %s3245_s20 }
 0x1a7   : > { %v1743_v15 = vpop.permute.xlu0 %1742  ;;  %v589_v18 = vpop.permute.xlu1 %588 }
 0x1a8   : > { %v1861_v1 = vld [vmem:[#allocation2 + $0x40] sm:$0xff]  ;;  %1830 = vst.msk [vmem:[#allocation2 + $0x48] sm:$0xff] %vm1820_vm9, %v1743_v15 }
 0x1a9   : > { %673 = vst.msk [vmem:[#allocation2 + $0x60] sm:$0xff] %vm660_vm3, %v589_v18  ;;  %2920 = vmatprep.mubr.msk.f32.mxu0 %vm1890_vm10, %v1861_v1  ;;  %1182 = vrot.lane.b32.xlu0 %v2805_v37, %s3248_s11 }
 0x1aa   : > { %1374 = vrot.lane.b32.xlu1 %v3626_v40, %s3249_s7 }
 0x1ab   : > { %v1167_v11 = vpop.permute.xlu0 %1166 }
 0x1ac   : > { %v1359_v35 = vpop.permute.xlu1 %1358  ;;  %1252 = vst.msk [vmem:[#allocation2 + $0x58] sm:$0xff] %vm1240_vm6, %v1167_v11 }
 0x1ad   : > { %1445 = vst.msk [vmem:[#allocation2 + $0x50] sm:$0xff] %vm1434_vm7, %v1359_v35  ;;  %606 = vrot.lane.b32.xlu0 %v2805_v37, %s3245_s20  ;;  %v2749_v35 = vld [vmem:[%s3431_s9 + $0x158] sm:$0xff] }
 0x1ae   : > { %798 = vrot.lane.b32.xlu1 %v3626_v40, %s3246_s24  ;;  %v2775_v40 = vld [vmem:[%s3431_s9 + $0x111] sm:$0xff] }
 0x1af   : > { %v591_v8 = vpop.permute.xlu0 %590  ;;  %v1862_v42 = vld [vmem:[#allocation2 + $0x48] sm:$0xff] }
 0x1b0   : > { %v783_v9 = vpop.permute.xlu1 %782  ;;  %674 = vst.msk [vmem:[#allocation2 + $0x68] sm:$0xff] %vm660_vm3, %v591_v8  ;;  %2921 = vmatmul.mubr.msk.f32.gmra.mrb[8].mxu0 %vm1890_vm10, %v1862_v42 }
 0x1b1   : > { %867 = vst.msk [vmem:[#allocation2 + $0x60] sm:$0xff] %vm854_vm4, %v783_v9  ;;  %1376 = vrot.lane.b32.xlu0 %v3631_v41, %s3249_s7 }
 0x1b2   : > { %1567 = vrot.lane.b32.xlu1 %v2774_v3, %s3250_s8 }
 0x1b3   : > { %v1361_v43 = vpop.permute.xlu0 %1360 }
 0x1b4   : > { %v1552_v22 = vpop.permute.xlu1 %1551  ;;  %1446 = vst.msk [vmem:[#allocation2 + $0x58] sm:$0xff] %vm1434_vm7, %v1361_v43 }
 0x1b5   : > { %1638 = vst.msk [vmem:[#allocation2 + $0x50] sm:$0xff] %vm1627_vm8, %v1552_v22  ;;  %800 = vrot.lane.b32.xlu0 %v3631_v41, %s3246_s24  ;;  %v2807_v41 = vld [vmem:[%s3431_s9 + $0x112] sm:$0xff] }
 0x1b6   : > { %991 = vrot.lane.b32.xlu1 %v2774_v3, %s3247_s10  ;;  %v2780_v3 = vld [vmem:[%s3431_s9 + $0x151] sm:$0xff] }
 0x1b7   : > { %v785_v12 = vpop.permute.xlu0 %784 }
 0x1b8   : > { %v976_v46 = vpop.permute.xlu1 %975  ;;  %868 = vst.msk [vmem:[#allocation2 + $0x68] sm:$0xff] %vm854_vm4, %v785_v12 }
 0x1b9   : > { %1060 = vst.msk [vmem:[#allocation2 + $0x60] sm:$0xff] %vm1047_vm5, %v976_v46  ;;  %1569 = vrot.lane.b32.xlu0 %v2775_v40, %s3250_s8 }
 0x1ba   : > { %1760 = vrot.lane.b32.xlu1 %v2806_v28, %s3251_s18 }
 0x1bb   : > { %v1554_v4 = vpop.permute.xlu0 %1553 }
 0x1bc   : > { %v1745_v23 = vpop.permute.xlu1 %1744  ;;  %1639 = vst.msk [vmem:[#allocation2 + $0x58] sm:$0xff] %vm1627_vm8, %v1554_v4 }
 0x1bd   : > { %1831 = vst.msk [vmem:[#allocation2 + $0x50] sm:$0xff] %vm1820_vm9, %v1745_v23  ;;  %993 = vrot.lane.b32.xlu0 %v2775_v40, %s3247_s10  ;;  %v2781_v40 = vld [vmem:[%s3431_s9 + $0x159] sm:$0xff] }
 0x1be   : > { %1184 = vrot.lane.b32.xlu1 %v2806_v28, %s3248_s11 }
 0x1bf   : > { %v978_v29 = vpop.permute.xlu0 %977 }
 0x1c0   : > { %v1169_v38 = vpop.permute.xlu1 %1168  ;;  %1061 = vst.msk [vmem:[#allocation2 + $0x68] sm:$0xff] %vm1047_vm5, %v978_v29 }
 0x1c1   : > { %1253 = vst.msk [vmem:[#allocation2 + $0x60] sm:$0xff] %vm1240_vm6, %v1169_v38  ;;  %1762 = vrot.lane.b32.xlu0 %v2807_v41, %s3251_s18 }
 0x1c2   : > { %608 = vrot.lane.b32.xlu1 %v2806_v28, %s3245_s20  ;;  %v2812_v28 = vld [vmem:[%s3431_s9 + $0x152] sm:$0xff] }
 0x1c3   : > { %v1747_v16 = vpop.permute.xlu0 %1746 }
 0x1c4   : > { %v593_v5 = vpop.permute.xlu1 %592  ;;  %v1863_v13 = vld [vmem:[#allocation2 + $0x50] sm:$0xff]  ;;  %1832 = vst.msk [vmem:[#allocation2 + $0x58] sm:$0xff] %vm1820_vm9, %v1747_v16 }
 0x1c5   : > { %675 = vst.msk [vmem:[#allocation2 + $0x70] sm:$0xff] %vm660_vm3, %v593_v5  ;;  %2923 = vmatprep.mubr.msk.f32.mxu0 %vm1890_vm10, %v1863_v13  ;;  %1186 = vrot.lane.b32.xlu0 %v2807_v41, %s3248_s11 }
 0x1c6   : > { %1378 = vrot.lane.b32.xlu1 %v3642_v44, %s3249_s7 }
 0x1c7   : > { %v1171_v47 = vpop.permute.xlu0 %1170 }
 0x1c8   : > { %v1363_v39 = vpop.permute.xlu1 %1362  ;;  %1254 = vst.msk [vmem:[#allocation2 + $0x68] sm:$0xff] %vm1240_vm6, %v1171_v47 }
 0x1c9   : > { %1447 = vst.msk [vmem:[#allocation2 + $0x60] sm:$0xff] %vm1434_vm7, %v1363_v39  ;;  %610 = vrot.lane.b32.xlu0 %v2807_v41, %s3245_s20  ;;  %v2813_v41 = vld [vmem:[%s3431_s9 + $0x15a] sm:$0xff] }
 0x1ca   : > { %802 = vrot.lane.b32.xlu1 %v3642_v44, %s3246_s24  ;;  %v2777_v44 = vld [vmem:[%s3431_s9 + $0x129] sm:$0xff] }
 0x1cb   : > { %v595_v21 = vpop.permute.xlu0 %594  ;;  %v1864_v50 = vld [vmem:[#allocation2 + $0x58] sm:$0xff] }
 0x1cc   : > { %v787_v14 = vpop.permute.xlu1 %786  ;;  %676 = vst.msk [vmem:[#allocation2 + $0x78] sm:$0xff] %vm660_vm3, %v595_v21  ;;  %2924 = vmatmul.mubr.msk.f32.gmra.mrb[10].mxu0 %vm1890_vm10, %v1864_v50 }
 0x1cd   : > { %869 = vst.msk [vmem:[#allocation2 + $0x70] sm:$0xff] %vm854_vm4, %v787_v14  ;;  %1380 = vrot.lane.b32.xlu0 %v3647_v45, %s3249_s7 }
 0x1ce   : > { %1571 = vrot.lane.b32.xlu1 %v2776_v49, %s3250_s8 }
 0x1cf   : > { %v1365_v51 = vpop.permute.xlu0 %1364 }
 0x1d0   : > { %v1556_v52 = vpop.permute.xlu1 %1555  ;;  %1448 = vst.msk [vmem:[#allocation2 + $0x68] sm:$0xff] %vm1434_vm7, %v1365_v51 }
 0x1d1   : > { %1640 = vst.msk [vmem:[#allocation2 + $0x60] sm:$0xff] %vm1627_vm8, %v1556_v52  ;;  %804 = vrot.lane.b32.xlu0 %v3647_v45, %s3246_s24  ;;  %v2809_v45 = vld [vmem:[%s3431_s9 + $0x12a] sm:$0xff] }
 0x1d2   : > { %995 = vrot.lane.b32.xlu1 %v2776_v49, %s3247_s10  ;;  %v2750_v49 = vld [vmem:[%s3431_s9 + $0x168] sm:$0xff] }
 0x1d3   : > { %v789_v32 = vpop.permute.xlu0 %788 }
 0x1d4   : > { %v980_v24 = vpop.permute.xlu1 %979  ;;  %870 = vst.msk [vmem:[#allocation2 + $0x78] sm:$0xff] %vm854_vm4, %v789_v32 }
 0x1d5   : > { %1062 = vst.msk [vmem:[#allocation2 + $0x70] sm:$0xff] %vm1047_vm5, %v980_v24  ;;  %1573 = vrot.lane.b32.xlu0 %v2777_v44, %s3250_s8 }
 0x1d6   : > { %1764 = vrot.lane.b32.xlu1 %v2808_v53, %s3251_s18 }
 0x1d7   : > { %v1558_v6 = vpop.permute.xlu0 %1557 }
 0x1d8   : > { %v1749_v17 = vpop.permute.xlu1 %1748  ;;  %1641 = vst.msk [vmem:[#allocation2 + $0x68] sm:$0xff] %vm1627_vm8, %v1558_v6 }
 0x1d9   : > { %1833 = vst.msk [vmem:[#allocation2 + $0x60] sm:$0xff] %vm1820_vm9, %v1749_v17  ;;  %997 = vrot.lane.b32.xlu0 %v2777_v44, %s3247_s10  ;;  %v2751_v44 = vld [vmem:[%s3431_s9 + $0x170] sm:$0xff] }
 0x1da   : > { %1188 = vrot.lane.b32.xlu1 %v2808_v53, %s3248_s11 }
 0x1db   : > { %v982_v54 = vpop.permute.xlu0 %981 }
 0x1dc   : > { %v1173_v55 = vpop.permute.xlu1 %1172  ;;  %1063 = vst.msk [vmem:[#allocation2 + $0x78] sm:$0xff] %vm1047_vm5, %v982_v54  ;;  %v2783_v54 = vld [vmem:[%s3431_s9 + $0x171] sm:$0xff] }
 0x1dd   : > { %1255 = vst.msk [vmem:[#allocation2 + $0x70] sm:$0xff] %vm1240_vm6, %v1173_v55  ;;  %1766 = vrot.lane.b32.xlu0 %v2809_v45, %s3251_s18  ;;  %v2814_v55 = vld [vmem:[%s3431_s9 + $0x16a] sm:$0xff] }
 0x1de   : > { %612 = vrot.lane.b32.xlu1 %v2808_v53, %s3245_s20  ;;  %v2782_v53 = vld [vmem:[%s3431_s9 + $0x169] sm:$0xff] }
 0x1df   : > { %v1751_v33 = vpop.permute.xlu0 %1750 }
 0x1e0   : > { %v597_v25 = vpop.permute.xlu1 %596  ;;  %v1865_v30 = vld [vmem:[#allocation2 + $0x60] sm:$0xff]  ;;  %1834 = vst.msk [vmem:[#allocation2 + $0x68] sm:$0xff] %vm1820_vm9, %v1751_v33 }
 0x1e1   : > { %677 = vst.msk [vmem:[#allocation2 + $0x80] sm:$0xff] %vm660_vm3, %v597_v25  ;;  %2926 = vmatprep.mubr.msk.f32.mxu0 %vm1890_vm10, %v1865_v30  ;;  %1190 = vrot.lane.b32.xlu0 %v2809_v45, %s3248_s11 }
 0x1e2   : > { %1382 = vrot.lane.b32.xlu1 %v3656_v48, %s3249_s7 }
 0x1e3   : > { %v1175_v7 = vpop.permute.xlu0 %1174 }
 0x1e4   : > { %v1367_v57 = vpop.permute.xlu1 %1366  ;;  %1256 = vst.msk [vmem:[#allocation2 + $0x78] sm:$0xff] %vm1240_vm6, %v1175_v7  ;;  %v2815_v7 = vld [vmem:[%s3431_s9 + $0x172] sm:$0xff] }
 0x1e5   : > { %1449 = vst.msk [vmem:[#allocation2 + $0x70] sm:$0xff] %vm1434_vm7, %v1367_v57  ;;  %614 = vrot.lane.b32.xlu0 %v2809_v45, %s3245_s20 }
 0x1e6   : > { %806 = vrot.lane.b32.xlu1 %v2652_v56, %s3246_s24 }
 0x1e7   : > { %v599_v59 = vpop.permute.xlu0 %598  ;;  %v1866_v61 = vld [vmem:[#allocation2 + $0x68] sm:$0xff] }
 0x1e8   : > { %v791_v60 = vpop.permute.xlu1 %790  ;;  %678 = vst.msk [vmem:[#allocation2 + $0x88] sm:$0xff] %vm660_vm3, %v599_v59  ;;  %2927 = vmatmul.mubr.msk.f32.gmra.mrb[12].mxu0 %vm1890_vm10, %v1866_v61 }
 0x1e9   : > { %871 = vst.msk [vmem:[#allocation2 + $0x80] sm:$0xff] %vm854_vm4, %v791_v60  ;;  %1384 = vrot.lane.b32.xlu0 %v2747_v58, %s3249_s7 }
 0x1ea   : > { %1575 = vrot.lane.b32.xlu1 %v2778_v31, %s3250_s8 }
 0x1eb   : > { %v1369_v48 = vpop.permute.xlu0 %1368 }
 0x1ec   : > { %v1560_v19 = vpop.permute.xlu1 %1559  ;;  %1450 = vst.msk [vmem:[#allocation2 + $0x78] sm:$0xff] %vm1434_vm7, %v1369_v48 }
 0x1ed   : > { %1642 = vst.msk [vmem:[#allocation2 + $0x70] sm:$0xff] %vm1627_vm8, %v1560_v19  ;;  %808 = vrot.lane.b32.xlu0 %v2747_v58, %s3246_s24 }
 0x1ee   : > { %999 = vrot.lane.b32.xlu1 %v2778_v31, %s3247_s10 }
 0x1ef   : > { %v793_v36 = vpop.permute.xlu0 %792 }
 0x1f0   : > { %v984_v26 = vpop.permute.xlu1 %983  ;;  %872 = vst.msk [vmem:[#allocation2 + $0x88] sm:$0xff] %vm854_vm4, %v793_v36 }
 0x1f1   : > { %1064 = vst.msk [vmem:[#allocation2 + $0x80] sm:$0xff] %vm1047_vm5, %v984_v26  ;;  %1577 = vrot.lane.b32.xlu0 %v2779_v62, %s3250_s8 }
 0x1f2   : > { %1768 = vrot.lane.b32.xlu1 %v2810_v63, %s3251_s18 }
 0x1f3   : > { %v1562_v0 = vpop.permute.xlu0 %1561 }
 0x1f4   : > { %v1753_v2 = vpop.permute.xlu1 %1752  ;;  %1643 = vst.msk [vmem:[#allocation2 + $0x78] sm:$0xff] %vm1627_vm8, %v1562_v0 }
 0x1f5   : > { %1835 = vst.msk [vmem:[#allocation2 + $0x70] sm:$0xff] %vm1820_vm9, %v1753_v2  ;;  %1001 = vrot.lane.b32.xlu0 %v2779_v62, %s3247_s10  ;;  %v2752_v62 = vld [vmem:[%s3431_s9 + $0x180] sm:$0xff] }
 0x1f6   : > { %1192 = vrot.lane.b32.xlu1 %v2810_v63, %s3248_s11 }
 0x1f7   : > { %v986_v20 = vpop.permute.xlu0 %985 }
 0x1f8   : > { %v1177_v37 = vpop.permute.xlu1 %1176  ;;  %1065 = vst.msk [vmem:[#allocation2 + $0x88] sm:$0xff] %vm1047_vm5, %v986_v20 }
 0x1f9   : > { %1257 = vst.msk [vmem:[#allocation2 + $0x80] sm:$0xff] %vm1240_vm6, %v1177_v37  ;;  %1770 = vrot.lane.b32.xlu0 %v2811_v10, %s3251_s18 }
 0x1fa   : > { %616 = vrot.lane.b32.xlu1 %v2810_v63, %s3245_s20 }
 0x1fb   : > { %v1755_v34 = vpop.permute.xlu0 %1754 }
 0x1fc   : > { %v601_v15 = vpop.permute.xlu1 %600  ;;  %v1867_v18 = vld [vmem:[#allocation2 + $0x70] sm:$0xff]  ;;  %1836 = vst.msk [vmem:[#allocation2 + $0x78] sm:$0xff] %vm1820_vm9, %v1755_v34 }
 0x1fd   : > { %679 = vst.msk [vmem:[#allocation2 + $0x90] sm:$0xff] %vm660_vm3, %v601_v15  ;;  %2929 = vmatprep.mubr.msk.f32.mxu0 %vm1890_vm10, %v1867_v18  ;;  %1194 = vrot.lane.b32.xlu0 %v2811_v10, %s3248_s11 }
 0x1fe   : > { %1386 = vrot.lane.b32.xlu1 %v2748_v27, %s3249_s7 }
 0x1ff   : > { %v1179_v1 = vpop.permute.xlu0 %1178 }
 0x200   : > { %v1371_v11 = vpop.permute.xlu1 %1370  ;;  %1258 = vst.msk [vmem:[#allocation2 + $0x88] sm:$0xff] %vm1240_vm6, %v1179_v1  ;;  %v2785_v1 = vld [vmem:[%s3431_s9 + $0x189] sm:$0xff] }
 0x201   : > { %1451 = vst.msk [vmem:[#allocation2 + $0x80] sm:$0xff] %vm1434_vm7, %v1371_v11  ;;  %618 = vrot.lane.b32.xlu0 %v2811_v10, %s3245_s20  ;;  %v2753_v10 = vld [vmem:[%s3431_s9 + $0x188] sm:$0xff] }
 0x202   : > { %810 = vrot.lane.b32.xlu1 %v2748_v27, %s3246_s24  ;;  %v2784_v27 = vld [vmem:[%s3431_s9 + $0x181] sm:$0xff] }
 0x203   : > { %v603_v8 = vpop.permute.xlu0 %602  ;;  %v1868_v42 = vld [vmem:[#allocation2 + $0x78] sm:$0xff] }
 0x204   : > { %v795_v9 = vpop.permute.xlu1 %794  ;;  %680 = vst.msk [vmem:[#allocation2 + $0x98] sm:$0xff] %vm660_vm3, %v603_v8  ;;  %2930 = vmatmul.mubr.msk.f32.gmra.mrb[14].mxu0 %vm1890_vm10, %v1868_v42  ;;  %v2817_v42 = vld [vmem:[%s3431_s9 + $0x18a] sm:$0xff] }
 0x205   : > { %873 = vst.msk [vmem:[#allocation2 + $0x90] sm:$0xff] %vm854_vm4, %v795_v9  ;;  %1388 = vrot.lane.b32.xlu0 %v2749_v35, %s3249_s7 }
 0x206   : > { %1579 = vrot.lane.b32.xlu1 %v2780_v3, %s3250_s8 }
 0x207   : > { %v1373_v43 = vpop.permute.xlu0 %1372 }
 0x208   : > { %v1564_v22 = vpop.permute.xlu1 %1563  ;;  %1452 = vst.msk [vmem:[#allocation2 + $0x88] sm:$0xff] %vm1434_vm7, %v1373_v43 }
 0x209   : > { %1644 = vst.msk [vmem:[#allocation2 + $0x80] sm:$0xff] %vm1627_vm8, %v1564_v22  ;;  %812 = vrot.lane.b32.xlu0 %v2749_v35, %s3246_s24  ;;  %v2816_v35 = vld [vmem:[%s3431_s9 + $0x182] sm:$0xff] }
 0x20a   : > { %1003 = vrot.lane.b32.xlu1 %v2780_v3, %s3247_s10 }
 0x20b   : > { %v797_v12 = vpop.permute.xlu0 %796 }
 0x20c   : > { %v988_v46 = vpop.permute.xlu1 %987  ;;  %874 = vst.msk [vmem:[#allocation2 + $0x98] sm:$0xff] %vm854_vm4, %v797_v12 }
 0x20d   : > { %1066 = vst.msk [vmem:[#allocation2 + $0x90] sm:$0xff] %vm1047_vm5, %v988_v46  ;;  %1581 = vrot.lane.b32.xlu0 %v2781_v40, %s3250_s8 }
 0x20e   : > { %1772 = vrot.lane.b32.xlu1 %v2812_v28, %s3251_s18 }
 0x20f   : > { %v1566_v4 = vpop.permute.xlu0 %1565 }
 0x210   : > { %v1757_v23 = vpop.permute.xlu1 %1756  ;;  %1645 = vst.msk [vmem:[#allocation2 + $0x88] sm:$0xff] %vm1627_vm8, %v1566_v4  ;;  %v2754_v4 = vld [vmem:[%s3431_s9 + $0x198] sm:$0xff] }
 0x211   : > { %1837 = vst.msk [vmem:[#allocation2 + $0x80] sm:$0xff] %vm1820_vm9, %v1757_v23  ;;  %1005 = vrot.lane.b32.xlu0 %v2781_v40, %s3247_s10 }
 0x212   : > { %1196 = vrot.lane.b32.xlu1 %v2812_v28, %s3248_s11 }
 0x213   : > { %v990_v29 = vpop.permute.xlu0 %989  ;;  %v4182_v38 = vpop.f32.mrb[0].mxu0 }
 0x214   : > { %1067 = vst.msk [vmem:[#allocation2 + $0x98] sm:$0xff] %vm1047_vm5, %v990_v29  ;;  %v2250_v16 = vsel %vm2216_vm11, %v4182_v38, 0.0  ;;  %v1181_v5 = vpop.permute.xlu1 %1180  ;;  %v4192_v13 = vpop.f32.mrb[1].mxu0  ;;  %v2755_v29 = vld [vmem:[%s3431_s9 + $0x1a0] sm:$0xff] }
 0x215   : > { %2218 = vst.msk [vmem:[%s4185_s30 + $0x8] sm:$0xff] %vm2216_vm11, %v4182_v38  ;;  %2217 = vst.msk [vmem:[%s4185_s30] sm:$0xff] %vm2216_vm11, %v4192_v13  ;;  %v2249_v47 = vsel %vm2216_vm11, %v4192_v13, 0.0  ;;  %1774 = vrot.lane.b32.xlu0 %v2813_v41, %s3251_s18 }
 0x216   : > { %1259 = vst.msk [vmem:[#allocation2 + $0x90] sm:$0xff] %vm1240_vm6, %v1181_v5  ;;  %620 = vrot.lane.b32.xlu1 %v2812_v28, %s3245_s20  ;;  %v2251_v39 = vadd.f32 %v2250_v16, %v2249_v47 }
 0x217   : > { %v1759_v21 = vpop.permute.xlu0 %1758 }
 0x218   : > { %v1869_v14 = vld [vmem:[#allocation2 + $0x80] sm:$0xff]  ;;  %1838 = vst.msk [vmem:[#allocation2 + $0x88] sm:$0xff] %vm1820_vm9, %v1759_v21  ;;  %v605_v50 = vpop.permute.xlu1 %604 }
 0x219   : > { %2932 = vmatprep.mubr.msk.f32.mxu1 %vm1890_vm10, %v1869_v14  ;;  %681 = vst.msk [vmem:[#allocation2 + $0xa0] sm:$0xff] %vm660_vm3, %v605_v50  ;;  %1198 = vrot.lane.b32.xlu0 %v2813_v41, %s3248_s11  ;;  %v2787_v21 = vld [vmem:[%s3431_s9 + $0x1a1] sm:$0xff] }
 0x21a   : > { %1390 = vrot.lane.b32.xlu1 %v2750_v49, %s3249_s7  ;;  %v2818_v50 = vld [vmem:[%s3431_s9 + $0x19a] sm:$0xff] }
 0x21b   : > { %v1183_v51 = vpop.permute.xlu0 %1182 }
 0x21c   : > { %1260 = vst.msk [vmem:[#allocation2 + $0x98] sm:$0xff] %vm1240_vm6, %v1183_v51  ;;  %v1375_v52 = vpop.permute.xlu1 %1374 }
 0x21d   : > { %1453 = vst.msk [vmem:[#allocation2 + $0x90] sm:$0xff] %vm1434_vm7, %v1375_v52  ;;  %622 = vrot.lane.b32.xlu0 %v2813_v41, %s3245_s20 }
 0x21e   : > { %814 = vrot.lane.b32.xlu1 %v2750_v49, %s3246_s24 }
 0x21f   : > { %v607_v32 = vpop.permute.xlu0 %606  ;;  %v1870_v24 = vld [vmem:[#allocation2 + $0x88] sm:$0xff] }
 0x220   : > { %682 = vst.msk [vmem:[#allocation2 + $0xa8] sm:$0xff] %vm660_vm3, %v607_v32  ;;  %v799_v6 = vpop.permute.xlu1 %798  ;;  %2933 = vmatmul.mubr.msk.f32.vlgmr.msra.gmra.mrb[0].mxu1 %vm1890_vm10, %v1870_v24 }
 0x221   : > { %875 = vst.msk [vmem:[#allocation2 + $0xa0] sm:$0xff] %vm854_vm4, %v799_v6  ;;  %1392 = vrot.lane.b32.xlu0 %v2751_v44, %s3249_s7 }
 0x222   : > { %1583 = vrot.lane.b32.xlu1 %v2782_v53, %s3250_s8 }
 0x223   : > { %v1377_v17 = vpop.permute.xlu0 %1376 }
 0x224   : > { %1454 = vst.msk [vmem:[#allocation2 + $0x98] sm:$0xff] %vm1434_vm7, %v1377_v17  ;;  %v1568_v45 = vpop.permute.xlu1 %1567 }
 0x225   : > { %1646 = vst.msk [vmem:[#allocation2 + $0x90] sm:$0xff] %vm1627_vm8, %v1568_v45  ;;  %816 = vrot.lane.b32.xlu0 %v2751_v44, %s3246_s24  ;;  %v2819_v44 = vld [vmem:[%s3431_s9 + $0x1a2] sm:$0xff] }
 0x226   : > { %1007 = vrot.lane.b32.xlu1 %v2782_v53, %s3247_s10 }
 0x227   : > { %v801_v33 = vpop.permute.xlu0 %800 }
 0x228   : > { %876 = vst.msk [vmem:[#allocation2 + $0xa8] sm:$0xff] %vm854_vm4, %v801_v33  ;;  %v992_v25 = vpop.permute.xlu1 %991 }
 0x229   : > { %1068 = vst.msk [vmem:[#allocation2 + $0xa0] sm:$0xff] %vm1047_vm5, %v992_v25  ;;  %1585 = vrot.lane.b32.xlu0 %v2783_v54, %s3250_s8 }
 0x22a   : > { %1776 = vrot.lane.b32.xlu1 %v2814_v55, %s3251_s18 }
 0x22b   : > { %v1570_v30 = vpop.permute.xlu0 %1569 }
 0x22c   : > { %1647 = vst.msk [vmem:[#allocation2 + $0x98] sm:$0xff] %vm1627_vm8, %v1570_v30  ;;  %v1761_v56 = vpop.permute.xlu1 %1760 }
 0x22d   : > { %1839 = vst.msk [vmem:[#allocation2 + $0x90] sm:$0xff] %vm1820_vm9, %v1761_v56  ;;  %1009 = vrot.lane.b32.xlu0 %v2783_v54, %s3247_s10 }
 0x22e   : > { %1200 = vrot.lane.b32.xlu1 %v2814_v55, %s3248_s11 }
 0x22f   : > { %v994_v57 = vpop.permute.xlu0 %993  ;;  %v4234_v58 = vpop.f32.mrb[2].mxu0 }
 0x230   : > { %1069 = vst.msk [vmem:[#allocation2 + $0xa8] sm:$0xff] %vm1047_vm5, %v994_v57  ;;  %v1185_v31 = vpop.permute.xlu1 %1184  ;;  %v4240_v59 = vpop.f32.mrb[3].mxu0  ;;  %v2254_v48 = vsel %vm2216_vm11, %v4234_v58, 0.0 }
 0x231   : > { %2220 = vst.msk [vmem:[%s4185_s30 + $0x18] sm:$0xff] %vm2216_vm11, %v4234_v58  ;;  %2219 = vst.msk [vmem:[%s4185_s30 + $0x10] sm:$0xff] %vm2216_vm11, %v4240_v59  ;;  %v2252_v60 = vsel %vm2216_vm11, %v4240_v59, 0.0  ;;  %1778 = vrot.lane.b32.xlu0 %v2815_v7, %s3251_s18 }
 0x232   : > { %1261 = vst.msk [vmem:[#allocation2 + $0xa0] sm:$0xff] %vm1240_vm6, %v1185_v31  ;;  %624 = vrot.lane.b32.xlu1 %v2814_v55, %s3245_s20  ;;  %v2253_v61 = vadd.f32 %v2252_v60, %v2251_v39  ;;  %v2786_v39 = vld [vmem:[%s3431_s9 + $0x199] sm:$0xff]  ;;  %s2457_s9 = scalar_lea.sflag [#allocation5], %s3427_s25 }
 0x233   : > { %v1763_v19 = vpop.permute.xlu0 %1762 }
 0x234   : > { %1840 = vst.msk [vmem:[#allocation2 + $0x98] sm:$0xff] %vm1820_vm9, %v1763_v19  ;;  %v609_v63 = vpop.permute.xlu1 %608  ;;  %v1871_v36 = vld [vmem:[#allocation2 + $0x90] sm:$0xff]  ;;  %v2255_v26 = vadd.f32 %v2254_v48, %v2253_v61 }
 0x235   : > { %683 = vst.msk [vmem:[#allocation2 + $0xb0] sm:$0xff] %vm660_vm3, %v609_v63  ;;  %1202 = vrot.lane.b32.xlu0 %v2815_v7, %s3248_s11  ;;  %2935 = vmatprep.mubr.msk.f32.mxu1 %vm1890_vm10, %v1871_v36 }
 0x236   : > { %1394 = vrot.lane.b32.xlu1 %v2752_v62, %s3249_s7 }
 0x237   : > { %v1187_v0 = vpop.permute.xlu0 %1186 }
 0x238   : > { %1262 = vst.msk [vmem:[#allocation2 + $0xa8] sm:$0xff] %vm1240_vm6, %v1187_v0  ;;  %v1379_v2 = vpop.permute.xlu1 %1378 }
 0x239   : > { %1455 = vst.msk [vmem:[#allocation2 + $0xa0] sm:$0xff] %vm1434_vm7, %v1379_v2  ;;  %626 = vrot.lane.b32.xlu0 %v2815_v7, %s3245_s20 }
 0x23a   : > { %818 = vrot.lane.b32.xlu1 %v2752_v62, %s3246_s24 }
 0x23b   : > { %v611_v20 = vpop.permute.xlu0 %610  ;;  %v1872_v37 = vld [vmem:[#allocation2 + $0x98] sm:$0xff] }
 0x23c   : > { %684 = vst.msk [vmem:[#allocation2 + $0xb8] sm:$0xff] %vm660_vm3, %v611_v20  ;;  %v803_v34 = vpop.permute.xlu1 %802  ;;  %2936 = vmatmul.mubr.msk.f32.gmra.mrb[2].mxu1 %vm1890_vm10, %v1872_v37 }
 0x23d   : > { %877 = vst.msk [vmem:[#allocation2 + $0xb0] sm:$0xff] %vm854_vm4, %v803_v34  ;;  %1396 = vrot.lane.b32.xlu0 %v2753_v10, %s3249_s7 }
 0x23e   : > { %1587 = vrot.lane.b32.xlu1 %v2784_v27, %s3250_s8 }
 0x23f   : > { %v1381_v15 = vpop.permute.xlu0 %1380 }
 0x240   : > { %1456 = vst.msk [vmem:[#allocation2 + $0xa8] sm:$0xff] %vm1434_vm7, %v1381_v15  ;;  %v1572_v18 = vpop.permute.xlu1 %1571 }
 0x241   : > { %1648 = vst.msk [vmem:[#allocation2 + $0xa0] sm:$0xff] %vm1627_vm8, %v1572_v18  ;;  %820 = vrot.lane.b32.xlu0 %v2753_v10, %s3246_s24  ;;  %s3252_s24 = smov [#allocation8]  }
 0x242   : > { %1011 = vrot.lane.b32.xlu1 %v2784_v27, %s3247_s10 }
 0x243   : > { %v805_v11 = vpop.permute.xlu0 %804 }
 0x244   : > { %878 = vst.msk [vmem:[#allocation2 + $0xb8] sm:$0xff] %vm854_vm4, %v805_v11  ;;  %v996_v3 = vpop.permute.xlu1 %995 }
 0x245   : > { %1070 = vst.msk [vmem:[#allocation2 + $0xb0] sm:$0xff] %vm1047_vm5, %v996_v3  ;;  %1589 = vrot.lane.b32.xlu0 %v2785_v1, %s3250_s8 }
 0x246   : > { %1780 = vrot.lane.b32.xlu1 %v2816_v35, %s3251_s18 }
 0x247   : > { %v1574_v8 = vpop.permute.xlu0 %1573 }
 0x248   : > { %1649 = vst.msk [vmem:[#allocation2 + $0xa8] sm:$0xff] %vm1627_vm8, %v1574_v8  ;;  %v1765_v9 = vpop.permute.xlu1 %1764 }
 0x249   : > { %1841 = vst.msk [vmem:[#allocation2 + $0xa0] sm:$0xff] %vm1820_vm9, %v1765_v9  ;;  %1013 = vrot.lane.b32.xlu0 %v2785_v1, %s3247_s10  ;;  %s3124_s10 = sshll.u32 %s3252_s24, 4  ;;  %s3125_s10 = int_to_ptr.vmem [resolvable:$false] %s3124_s10 }
 0x24a   : > { %1204 = vrot.lane.b32.xlu1 %v2816_v35, %s3248_s11  ;;  %p3127_p12 = scmp.lt.s32.totalorder %s4567_s27, %s3125_s10 }
 0x24b   : > { %v998_v43 = vpop.permute.xlu0 %997  ;;  %v4284_v22 = vpop.f32.mrb[4].mxu0 }
 0x24c   : > { %1071 = vst.msk [vmem:[#allocation2 + $0xb8] sm:$0xff] %vm1047_vm5, %v998_v43  ;;  %v1189_v40 = vpop.permute.xlu1 %1188  ;;  %v4290_v28 = vpop.f32.mrb[5].mxu0  ;;  %v2258_v23 = vsel %vm2216_vm11, %v4284_v22, 0.0 }
 0x24d   : > { %2222 = vst.msk [vmem:[%s4185_s30 + $0x28] sm:$0xff] %vm2216_vm11, %v4284_v22  ;;  %2221 = vst.msk [vmem:[%s4185_s30 + $0x20] sm:$0xff] %vm2216_vm11, %v4290_v28  ;;  %v2256_v12 = vsel %vm2216_vm11, %v4290_v28, 0.0  ;;  %1782 = vrot.lane.b32.xlu0 %v2817_v42, %s3251_s18 }
 0x24e   : > { %1263 = vst.msk [vmem:[#allocation2 + $0xb0] sm:$0xff] %vm1240_vm6, %v1189_v40  ;;  %v2257_v46 = vadd.f32 %v2256_v12, %v2255_v26  ;;  %1206 = vrot.lane.b32.xlu1 %v2817_v42, %s3248_s11  ;;  %s3126_s11 = scalar_lea.vmem %s3125_s10, 8192 }
 0x24f   : > { %v1767_v41 = vpop.permute.xlu0 %1766  ;;  %p3128_p13 = scmp.lt.s32.totalorder %s3126_s11, %s3120_s22 }
 0x250   : > { %1842 = vst.msk [vmem:[#allocation2 + $0xa8] sm:$0xff] %vm1820_vm9, %v1767_v41  ;;  %v613_v16 = vpop.permute.xlu1 %612  ;;  %v1873_v5 = vld [vmem:[#allocation2 + $0xa0] sm:$0xff]  ;;  %v2259_v47 = vadd.f32 %v2258_v23, %v2257_v46 }
 0x251   : > { %685 = vst.msk [vmem:[#allocation2 + $0xc0] sm:$0xff] %vm660_vm3, %v613_v16  ;;  %1398 = vrot.lane.b32.xlu0 %v2754_v4, %s3249_s7  ;;  %2938 = vmatprep.mubr.msk.f32.mxu1 %vm1890_vm10, %v1873_v5  ;;  %p3129_p0 = por %p3128_p13, %p3127_p12 }
 0x252   : > { %1400 = vrot.lane.b32.xlu1 %v2755_v29, %s3249_s7 }
 0x253   : > { %v1191_v49 = vpop.permute.xlu0 %1190  ;;  %p3130_p5 = pnand %p3129_p0, %p3123_p8 }
 0x254   : > { %1264 = vst.msk [vmem:[#allocation2 + $0xb8] sm:$0xff] %vm1240_vm6, %v1191_v49  ;;  %v1383_v14 = vpop.permute.xlu1 %1382 }
 0x255   : > { %1457 = vst.msk [vmem:[#allocation2 + $0xb0] sm:$0xff] %vm1434_vm7, %v1383_v14  ;;  %1591 = vrot.lane.b32.xlu0 %v2786_v39, %s3250_s8 }
 0x256   : > { %1593 = vrot.lane.b32.xlu1 %v2787_v21, %s3250_s8 }
 0x257   : > { %v615_v51 = vpop.permute.xlu0 %614  ;;  %v1874_v52 = vld [vmem:[#allocation2 + $0xa8] sm:$0xff] }
 0x258   : > { %686 = vst.msk [vmem:[#allocation2 + $0xc8] sm:$0xff] %vm660_vm3, %v615_v51  ;;  %v807_v53 = vpop.permute.xlu1 %806  ;;  %2939 = vmatmul.mubr.msk.f32.gmra.mrb[4].mxu1 %vm1890_vm10, %v1874_v52 }
 0x259   : > { %879 = vst.msk [vmem:[#allocation2 + $0xc0] sm:$0xff] %vm854_vm4, %v807_v53  ;;  %1784 = vrot.lane.b32.xlu0 %v2818_v50, %s3251_s18 }
 0x25a   : > { %1786 = vrot.lane.b32.xlu1 %v2819_v44, %s3251_s18 }
 0x25b   : > { %v1385_v32 = vpop.permute.xlu0 %1384 }
 0x25c   : > { %1458 = vst.msk [vmem:[#allocation2 + $0xb8] sm:$0xff] %vm1434_vm7, %v1385_v32  ;;  %v1576_v24 = vpop.permute.xlu1 %1575 }
 0x25d   : > { %1650 = vst.msk [vmem:[#allocation2 + $0xb0] sm:$0xff] %vm1627_vm8, %v1576_v24 }
 0x25f   : > { %v809_v6 = vpop.permute.xlu0 %808 }
 0x260   : > { %880 = vst.msk [vmem:[#allocation2 + $0xc8] sm:$0xff] %vm854_vm4, %v809_v6  ;;  %v1000_v17 = vpop.permute.xlu1 %999 }
 0x261   : > { %1072 = vst.msk [vmem:[#allocation2 + $0xc0] sm:$0xff] %vm1047_vm5, %v1000_v17 }
 0x263   : > { %v1578_v45 = vpop.permute.xlu0 %1577 }
 0x264   : > { %1651 = vst.msk [vmem:[#allocation2 + $0xb8] sm:$0xff] %vm1627_vm8, %v1578_v45  ;;  %v1769_v54 = vpop.permute.xlu1 %1768 }
 0x265   : > { %1843 = vst.msk [vmem:[#allocation2 + $0xb0] sm:$0xff] %vm1820_vm9, %v1769_v54 }
 0x267   : > { %v1002_v55 = vpop.permute.xlu0 %1001  ;;  %v4328_v33 = vpop.f32.mrb[6].mxu0 }
 0x268   : > { %1073 = vst.msk [vmem:[#allocation2 + $0xc8] sm:$0xff] %vm1047_vm5, %v1002_v55  ;;  %v1193_v25 = vpop.permute.xlu1 %1192  ;;  %v4334_v30 = vpop.f32.mrb[7].mxu0  ;;  %v2262_v57 = vsel %vm2216_vm11, %v4328_v33, 0.0 }
 0x269   : > { %2224 = vst.msk [vmem:[%s4185_s30 + $0x38] sm:$0xff] %vm2216_vm11, %v4328_v33  ;;  %2223 = vst.msk [vmem:[%s4185_s30 + $0x30] sm:$0xff] %vm2216_vm11, %v4334_v30  ;;  %v2260_v56 = vsel %vm2216_vm11, %v4334_v30, 0.0 }
 0x26a   : > { %1265 = vst.msk [vmem:[#allocation2 + $0xc0] sm:$0xff] %vm1240_vm6, %v1193_v25  ;;  %v2261_v7 = vadd.f32 %v2260_v56, %v2259_v47 }
 0x26b   : > { %v1771_v31 = vpop.permute.xlu0 %1770 }
 0x26c   : > { %1844 = vst.msk [vmem:[#allocation2 + $0xb8] sm:$0xff] %vm1820_vm9, %v1771_v31  ;;  %v617_v60 = vpop.permute.xlu1 %616  ;;  %v1875_v61 = vld [vmem:[#allocation2 + $0xb0] sm:$0xff]  ;;  %v2263_v48 = vadd.f32 %v2262_v57, %v2261_v7 }
 0x26d   : > { %687 = vst.msk [vmem:[#allocation2 + $0xd0] sm:$0xff] %vm660_vm3, %v617_v60  ;;  %2941 = vmatprep.mubr.msk.f32.mxu1 %vm1890_vm10, %v1875_v61 }
 0x26f   : > { %v1195_v19 = vpop.permute.xlu0 %1194 }
 0x270   : > { %1266 = vst.msk [vmem:[#allocation2 + $0xc8] sm:$0xff] %vm1240_vm6, %v1195_v19  ;;  %v1387_v62 = vpop.permute.xlu1 %1386 }
 0x271   : > { %1459 = vst.msk [vmem:[#allocation2 + $0xc0] sm:$0xff] %vm1434_vm7, %v1387_v62 }
 0x273   : > { %v619_v63 = vpop.permute.xlu0 %618  ;;  %v1876_v36 = vld [vmem:[#allocation2 + $0xb8] sm:$0xff] }
 0x274   : > { %688 = vst.msk [vmem:[#allocation2 + $0xd8] sm:$0xff] %vm660_vm3, %v619_v63  ;;  %v811_v26 = vpop.permute.xlu1 %810  ;;  %2942 = vmatmul.mubr.msk.f32.gmra.mrb[6].mxu1 %vm1890_vm10, %v1876_v36 }
 0x275   : > { %881 = vst.msk [vmem:[#allocation2 + $0xd0] sm:$0xff] %vm854_vm4, %v811_v26 }
 0x277   : > { %v1389_v0 = vpop.permute.xlu0 %1388 }
 0x278   : > { %1460 = vst.msk [vmem:[#allocation2 + $0xc8] sm:$0xff] %vm1434_vm7, %v1389_v0  ;;  %v1580_v2 = vpop.permute.xlu1 %1579 }
 0x279   : > { %1652 = vst.msk [vmem:[#allocation2 + $0xc0] sm:$0xff] %vm1627_vm8, %v1580_v2 }
 0x27b   : > { %v813_v10 = vpop.permute.xlu0 %812 }
 0x27c   : > { %882 = vst.msk [vmem:[#allocation2 + $0xd8] sm:$0xff] %vm854_vm4, %v813_v10  ;;  %v1004_v20 = vpop.permute.xlu1 %1003 }
 0x27d   : > { %1074 = vst.msk [vmem:[#allocation2 + $0xd0] sm:$0xff] %vm1047_vm5, %v1004_v20 }
 0x27f   : > { %v1582_v37 = vpop.permute.xlu0 %1581 }
 0x280   : > { %1653 = vst.msk [vmem:[#allocation2 + $0xc8] sm:$0xff] %vm1627_vm8, %v1582_v37  ;;  %v1773_v27 = vpop.permute.xlu1 %1772 }
 0x281   : > { %1845 = vst.msk [vmem:[#allocation2 + $0xc0] sm:$0xff] %vm1820_vm9, %v1773_v27 }
 0x283   : > { %v1006_v34 = vpop.permute.xlu0 %1005  ;;  %v4358_v15 = vpop.f32.mrb[8].mxu0 }
 0x284   : > { %1075 = vst.msk [vmem:[#allocation2 + $0xd8] sm:$0xff] %vm1047_vm5, %v1006_v34  ;;  %v1197_v18 = vpop.permute.xlu1 %1196  ;;  %v4364_v1 = vpop.f32.mrb[9].mxu0  ;;  %v2266_v3 = vsel %vm2216_vm11, %v4358_v15, 0.0 }
 0x285   : > { %2226 = vst.msk [vmem:[%s4185_s30 + $0x48] sm:$0xff] %vm2216_vm11, %v4358_v15  ;;  %2225 = vst.msk [vmem:[%s4185_s30 + $0x40] sm:$0xff] %vm2216_vm11, %v4364_v1  ;;  %v2264_v11 = vsel %vm2216_vm11, %v4364_v1, 0.0 }
 0x286   : > { %1267 = vst.msk [vmem:[#allocation2 + $0xd0] sm:$0xff] %vm1240_vm6, %v1197_v18  ;;  %v2265_v35 = vadd.f32 %v2264_v11, %v2263_v48 }
 0x287   : > { %v1775_v8 = vpop.permute.xlu0 %1774 }
 0x288   : > { %1846 = vst.msk [vmem:[#allocation2 + $0xc8] sm:$0xff] %vm1820_vm9, %v1775_v8  ;;  %v621_v9 = vpop.permute.xlu1 %620  ;;  %v1877_v42 = vld [vmem:[#allocation2 + $0xc0] sm:$0xff]  ;;  %v2267_v43 = vadd.f32 %v2266_v3, %v2265_v35 }
 0x289   : > { %689 = vst.msk [vmem:[#allocation2 + $0xe0] sm:$0xff] %vm660_vm3, %v621_v9  ;;  %2944 = vmatprep.mubr.msk.f32.mxu1 %vm1890_vm10, %v1877_v42 }
 0x28b   : > { %v1199_v40 = vpop.permute.xlu0 %1198 }
 0x28c   : > { %1268 = vst.msk [vmem:[#allocation2 + $0xd8] sm:$0xff] %vm1240_vm6, %v1199_v40  ;;  %v1391_v12 = vpop.permute.xlu1 %1390 }
 0x28d   : > { %1461 = vst.msk [vmem:[#allocation2 + $0xd0] sm:$0xff] %vm1434_vm7, %v1391_v12 }
 0x28f   : > { %v623_v46 = vpop.permute.xlu0 %622  ;;  %v1878_v4 = vld [vmem:[#allocation2 + $0xc8] sm:$0xff] }
 0x290   : > { %690 = vst.msk [vmem:[#allocation2 + $0xe8] sm:$0xff] %vm660_vm3, %v623_v46  ;;  %v815_v23 = vpop.permute.xlu1 %814  ;;  %2945 = vmatmul.mubr.msk.f32.gmra.mrb[8].mxu1 %vm1890_vm10, %v1878_v4 }
 0x291   : > { %883 = vst.msk [vmem:[#allocation2 + $0xe0] sm:$0xff] %vm854_vm4, %v815_v23 }
 0x293   : > { %v1393_v41 = vpop.permute.xlu0 %1392 }
 0x294   : > { %1462 = vst.msk [vmem:[#allocation2 + $0xd8] sm:$0xff] %vm1434_vm7, %v1393_v41  ;;  %v1584_v29 = vpop.permute.xlu1 %1583 }
 0x295   : > { %1654 = vst.msk [vmem:[#allocation2 + $0xd0] sm:$0xff] %vm1627_vm8, %v1584_v29 }
 0x297   : > { %v817_v16 = vpop.permute.xlu0 %816 }
 0x298   : > { %884 = vst.msk [vmem:[#allocation2 + $0xe8] sm:$0xff] %vm854_vm4, %v817_v16  ;;  %v1008_v5 = vpop.permute.xlu1 %1007 }
 0x299   : > { %1076 = vst.msk [vmem:[#allocation2 + $0xe0] sm:$0xff] %vm1047_vm5, %v1008_v5 }
 0x29b   : > { %v1586_v47 = vpop.permute.xlu0 %1585 }
 0x29c   : > { %1655 = vst.msk [vmem:[#allocation2 + $0xd8] sm:$0xff] %vm1627_vm8, %v1586_v47  ;;  %v1777_v39 = vpop.permute.xlu1 %1776 }
 0x29d   : > { %1847 = vst.msk [vmem:[#allocation2 + $0xd0] sm:$0xff] %vm1820_vm9, %v1777_v39 }
 0x29f   : > { %v1010_v49 = vpop.permute.xlu0 %1009  ;;  %v4388_v21 = vpop.f32.mrb[10].mxu0 }
 0x2a0   : > { %1077 = vst.msk [vmem:[#allocation2 + $0xe8] sm:$0xff] %vm1047_vm5, %v1010_v49  ;;  %v1201_v14 = vpop.permute.xlu1 %1200  ;;  %v4394_v50 = vpop.f32.mrb[11].mxu0  ;;  %v2270_v44 = vsel %vm2216_vm11, %v4388_v21, 0.0 }
 0x2a1   : > { %2228 = vst.msk [vmem:[%s4185_s30 + $0x58] sm:$0xff] %vm2216_vm11, %v4388_v21  ;;  %2227 = vst.msk [vmem:[%s4185_s30 + $0x50] sm:$0xff] %vm2216_vm11, %v4394_v50  ;;  %v2268_v51 = vsel %vm2216_vm11, %v4394_v50, 0.0 }
 0x2a2   : > { %1269 = vst.msk [vmem:[#allocation2 + $0xe0] sm:$0xff] %vm1240_vm6, %v1201_v14  ;;  %v2269_v52 = vadd.f32 %v2268_v51, %v2267_v43 }
 0x2a3   : > { %v1779_v53 = vpop.permute.xlu0 %1778 }
 0x2a4   : > { %1848 = vst.msk [vmem:[#allocation2 + $0xd8] sm:$0xff] %vm1820_vm9, %v1779_v53  ;;  %v625_v32 = vpop.permute.xlu1 %624  ;;  %v1879_v24 = vld [vmem:[#allocation2 + $0xd0] sm:$0xff]  ;;  %v2271_v6 = vadd.f32 %v2270_v44, %v2269_v52 }
 0x2a5   : > { %691 = vst.msk [vmem:[#allocation2 + $0xf0] sm:$0xff] %vm660_vm3, %v625_v32  ;;  %2947 = vmatprep.mubr.msk.f32.mxu1 %vm1890_vm10, %v1879_v24 }
 0x2a7   : > { %v1203_v17 = vpop.permute.xlu0 %1202 }
 0x2a8   : > { %1270 = vst.msk [vmem:[#allocation2 + $0xe8] sm:$0xff] %vm1240_vm6, %v1203_v17  ;;  %v1395_v45 = vpop.permute.xlu1 %1394 }
 0x2a9   : > { %1463 = vst.msk [vmem:[#allocation2 + $0xe0] sm:$0xff] %vm1434_vm7, %v1395_v45 }
 0x2ab   : > { %v627_v54 = vpop.permute.xlu0 %626  ;;  %v1880_v55 = vld [vmem:[#allocation2 + $0xd8] sm:$0xff] }
 0x2ac   : > { %692 = vst.msk [vmem:[#allocation2 + $0xf8] sm:$0xff] %vm660_vm3, %v627_v54  ;;  %v819_v25 = vpop.permute.xlu1 %818  ;;  %2948 = vmatmul.mubr.msk.f32.gmra.mrb[10].mxu1 %vm1890_vm10, %v1880_v55 }
 0x2ad   : > { %885 = vst.msk [vmem:[#allocation2 + $0xf0] sm:$0xff] %vm854_vm4, %v819_v25 }
 0x2af   : > { %v1397_v56 = vpop.permute.xlu0 %1396 }
 0x2b0   : > { %1464 = vst.msk [vmem:[#allocation2 + $0xe8] sm:$0xff] %vm1434_vm7, %v1397_v56  ;;  %v1588_v7 = vpop.permute.xlu1 %1587 }
 0x2b1   : > { %1656 = vst.msk [vmem:[#allocation2 + $0xe0] sm:$0xff] %vm1627_vm8, %v1588_v7 }
 0x2b3   : > { %v821_v57 = vpop.permute.xlu0 %820 }
 0x2b4   : > { %886 = vst.msk [vmem:[#allocation2 + $0xf8] sm:$0xff] %vm854_vm4, %v821_v57  ;;  %v1012_v31 = vpop.permute.xlu1 %1011 }
 0x2b5   : > { %1078 = vst.msk [vmem:[#allocation2 + $0xf0] sm:$0xff] %vm1047_vm5, %v1012_v31 }
 0x2b7   : > { %v1590_v60 = vpop.permute.xlu0 %1589 }
 0x2b8   : > { %1657 = vst.msk [vmem:[#allocation2 + $0xe8] sm:$0xff] %vm1627_vm8, %v1590_v60  ;;  %v1781_v61 = vpop.permute.xlu1 %1780 }
 0x2b9   : > { %1849 = vst.msk [vmem:[#allocation2 + $0xe0] sm:$0xff] %vm1820_vm9, %v1781_v61 }
 0x2bb   : > { %v1014_v48 = vpop.permute.xlu0 %1013  ;;  %v4418_v19 = vpop.f32.mrb[12].mxu0 }
 0x2bc   : > { %1079 = vst.msk [vmem:[#allocation2 + $0xf8] sm:$0xff] %vm1047_vm5, %v1014_v48  ;;  %v1205_v62 = vpop.permute.xlu1 %1204  ;;  %v4424_v63 = vpop.f32.mrb[13].mxu0  ;;  %v2274_v0 = vsel %vm2216_vm11, %v4418_v19, 0.0 }
 0x2bd   : > { %2230 = vst.msk [vmem:[%s4185_s30 + $0x68] sm:$0xff] %vm2216_vm11, %v4418_v19  ;;  %2229 = vst.msk [vmem:[%s4185_s30 + $0x60] sm:$0xff] %vm2216_vm11, %v4424_v63  ;;  %v2272_v36 = vsel %vm2216_vm11, %v4424_v63, 0.0 }
 0x2be   : > { %1271 = vst.msk [vmem:[#allocation2 + $0xf0] sm:$0xff] %vm1240_vm6, %v1205_v62  ;;  %v2273_v26 = vadd.f32 %v2272_v36, %v2271_v6 }
 0x2bf   : > { %v1783_v2 = vpop.permute.xlu0 %1782 }
 0x2c0   : > { %1850 = vst.msk [vmem:[#allocation2 + $0xe8] sm:$0xff] %vm1820_vm9, %v1783_v2  ;;  %v1207_v10 = vpop.permute.xlu1 %1206  ;;  %v1881_v20 = vld [vmem:[#allocation2 + $0xe0] sm:$0xff]  ;;  %v2275_v37 = vadd.f32 %v2274_v0, %v2273_v26 }
 0x2c1   : > { %1272 = vst.msk [vmem:[#allocation2 + $0xf8] sm:$0xff] %vm1240_vm6, %v1207_v10  ;;  %2950 = vmatprep.mubr.msk.f32.mxu1 %vm1890_vm10, %v1881_v20 }
 0x2c3   : > { %v1399_v27 = vpop.permute.xlu0 %1398 }
 0x2c4   : > { %1465 = vst.msk [vmem:[#allocation2 + $0xf0] sm:$0xff] %vm1434_vm7, %v1399_v27  ;;  %v1401_v34 = vpop.permute.xlu1 %1400 }
 0x2c5   : > { %1466 = vst.msk [vmem:[#allocation2 + $0xf8] sm:$0xff] %vm1434_vm7, %v1401_v34 }
 0x2c7   : > { %v1592_v18 = vpop.permute.xlu0 %1591  ;;  %v1882_v11 = vld [vmem:[#allocation2 + $0xe8] sm:$0xff] }
 0x2c8   : > { %1658 = vst.msk [vmem:[#allocation2 + $0xf0] sm:$0xff] %vm1627_vm8, %v1592_v18  ;;  %v1594_v35 = vpop.permute.xlu1 %1593  ;;  %2951 = vmatmul.mubr.msk.f32.gmra.mrb[12].mxu1 %vm1890_vm10, %v1882_v11 }
 0x2c9   : > { %1659 = vst.msk [vmem:[#allocation2 + $0xf8] sm:$0xff] %vm1627_vm8, %v1594_v35 }
 0x2cb   : > { %v1785_v3 = vpop.permute.xlu0 %1784 }
 0x2cc   : > { %1851 = vst.msk [vmem:[#allocation2 + $0xf0] sm:$0xff] %vm1820_vm9, %v1785_v3  ;;  %v1787_v8 = vpop.permute.xlu1 %1786 }
 0x2cd   : > { %1852 = vst.msk [vmem:[#allocation2 + $0xf8] sm:$0xff] %vm1820_vm9, %v1787_v8 }
 0x2d3   : > { %v1883_v9 = vld [vmem:[#allocation2 + $0xf0] sm:$0xff] }
 0x2d4   : > { %2953 = vmatprep.mubr.msk.f32.mxu1 %vm1890_vm10, %v1883_v9  ;;  %v1884_v42 = vld [vmem:[#allocation2 + $0xf8] sm:$0xff] }
 0x2d5   : > { %2954 = vmatmul.mubr.msk.f32.gmra.mrb[14].mxu1 %vm1890_vm10, %v1884_v42 }
 0x2d7   : > { %v4446_v43 = vpop.f32.mrb[14].mxu0 }
 0x2d8   : > { %2232 = vst.msk [vmem:[%s4185_s30 + $0x78] sm:$0xff] %vm2216_vm11, %v4446_v43  ;;  %v4451_v40 = vpop.f32.mrb[15].mxu0  ;;  %v2278_v4 = vsel %vm2216_vm11, %v4446_v43, 0.0 }
 0x2d9   : > { %2231 = vst.msk [vmem:[%s4185_s30 + $0x70] sm:$0xff] %vm2216_vm11, %v4451_v40  ;;  %v2276_v12 = vsel %vm2216_vm11, %v4451_v40, 0.0 }
 0x2da   : > { %v2277_v46 = vadd.f32 %v2276_v12, %v2275_v37 }
 0x2dc   : > { %v2279_v23 = vadd.f32 %v2278_v4, %v2277_v46 }
 0x2f3   : > { %v4460_v41 = vpop.f32.mrb[0].mxu1 }
 0x2f4   : > { %2234 = vst.msk [vmem:[%s4185_s30 + $0x88] sm:$0xff] %vm2216_vm11, %v4460_v41  ;;  %v4465_v29 = vpop.f32.mrb[1].mxu1  ;;  %v2282_v47 = vsel %vm2216_vm11, %v4460_v41, 0.0 }
 0x2f5   : > { %2233 = vst.msk [vmem:[%s4185_s30 + $0x80] sm:$0xff] %vm2216_vm11, %v4465_v29  ;;  %v2280_v16 = vsel %vm2216_vm11, %v4465_v29, 0.0 }
 0x2f6   : > { %v2281_v5 = vadd.f32 %v2280_v16, %v2279_v23 }
 0x2f8   : > { %v2283_v39 = vadd.f32 %v2282_v47, %v2281_v5 }
 0x30f   : > { %v4474_v49 = vpop.f32.mrb[2].mxu1 }
 0x310   : > { %2236 = vst.msk [vmem:[%s4185_s30 + $0x98] sm:$0xff] %vm2216_vm11, %v4474_v49  ;;  %v4479_v14 = vpop.f32.mrb[3].mxu1  ;;  %v2286_v44 = vsel %vm2216_vm11, %v4474_v49, 0.0 }
 0x311   : > { %2235 = vst.msk [vmem:[%s4185_s30 + $0x90] sm:$0xff] %vm2216_vm11, %v4479_v14  ;;  %v2284_v51 = vsel %vm2216_vm11, %v4479_v14, 0.0 }
 0x312   : > { %v2285_v52 = vadd.f32 %v2284_v51, %v2283_v39 }
 0x314   : > { %v2287_v53 = vadd.f32 %v2286_v44, %v2285_v52 }
 0x32b   : > { %v4488_v32 = vpop.f32.mrb[4].mxu1 }
 0x32c   : > { %2238 = vst.msk [vmem:[%s4185_s30 + $0xa8] sm:$0xff] %vm2216_vm11, %v4488_v32  ;;  %v4493_v24 = vpop.f32.mrb[5].mxu1  ;;  %v2290_v45 = vsel %vm2216_vm11, %v4488_v32, 0.0 }
 0x32d   : > { %2237 = vst.msk [vmem:[%s4185_s30 + $0xa0] sm:$0xff] %vm2216_vm11, %v4493_v24  ;;  %v2288_v6 = vsel %vm2216_vm11, %v4493_v24, 0.0 }
 0x32e   : > { %v2289_v17 = vadd.f32 %v2288_v6, %v2287_v53 }
 0x330   : > { %v2291_v54 = vadd.f32 %v2290_v45, %v2289_v17 }
 0x347   : > { %v4502_v55 = vpop.f32.mrb[6].mxu1 }
 0x348   : > { %2240 = vst.msk [vmem:[%s4185_s30 + $0xb8] sm:$0xff] %vm2216_vm11, %v4502_v55  ;;  %v4507_v25 = vpop.f32.mrb[7].mxu1  ;;  %v2294_v57 = vsel %vm2216_vm11, %v4502_v55, 0.0 }
 0x349   : > { %2239 = vst.msk [vmem:[%s4185_s30 + $0xb0] sm:$0xff] %vm2216_vm11, %v4507_v25  ;;  %v2292_v56 = vsel %vm2216_vm11, %v4507_v25, 0.0 }
 0x34a   : > { %v2293_v7 = vadd.f32 %v2292_v56, %v2291_v54 }
 0x34c   : > { %v2295_v31 = vadd.f32 %v2294_v57, %v2293_v7 }
 0x363   : > { %v4516_v60 = vpop.f32.mrb[8].mxu1 }
 0x364   : > { %2242 = vst.msk [vmem:[%s4185_s30 + $0xc8] sm:$0xff] %vm2216_vm11, %v4516_v60  ;;  %v4521_v61 = vpop.f32.mrb[9].mxu1  ;;  %v2298_v36 = vsel %vm2216_vm11, %v4516_v60, 0.0 }
 0x365   : > { %2241 = vst.msk [vmem:[%s4185_s30 + $0xc0] sm:$0xff] %vm2216_vm11, %v4521_v61  ;;  %v2296_v48 = vsel %vm2216_vm11, %v4521_v61, 0.0 }
 0x366   : > { %v2297_v62 = vadd.f32 %v2296_v48, %v2295_v31 }
 0x368   : > { %v2299_v26 = vadd.f32 %v2298_v36, %v2297_v62 }
 0x37f   : > { %v4530_v0 = vpop.f32.mrb[10].mxu1 }
 0x380   : > { %2244 = vst.msk [vmem:[%s4185_s30 + $0xd8] sm:$0xff] %vm2216_vm11, %v4530_v0  ;;  %v4535_v2 = vpop.f32.mrb[11].mxu1  ;;  %v2302_v37 = vsel %vm2216_vm11, %v4530_v0, 0.0 }
 0x381   : > { %2243 = vst.msk [vmem:[%s4185_s30 + $0xd0] sm:$0xff] %vm2216_vm11, %v4535_v2  ;;  %v2300_v10 = vsel %vm2216_vm11, %v4535_v2, 0.0 }
 0x382   : > { %v2301_v20 = vadd.f32 %v2300_v10, %v2299_v26 }
 0x384   : > { %v2303_v27 = vadd.f32 %v2302_v37, %v2301_v20 }
 0x39b   : > { %v4544_v34 = vpop.f32.mrb[12].mxu1 }
 0x39c   : > { %2246 = vst.msk [vmem:[%s4185_s30 + $0xe8] sm:$0xff] %vm2216_vm11, %v4544_v34  ;;  %v4549_v18 = vpop.f32.mrb[13].mxu1  ;;  %v2306_v3 = vsel %vm2216_vm11, %v4544_v34, 0.0 }
 0x39d   : > { %2245 = vst.msk [vmem:[%s4185_s30 + $0xe0] sm:$0xff] %vm2216_vm11, %v4549_v18  ;;  %v2304_v11 = vsel %vm2216_vm11, %v4549_v18, 0.0 }
 0x39e   : > { %v2305_v35 = vadd.f32 %v2304_v11, %v2303_v27 }
 0x3a0   : > { %v2307_v8 = vadd.f32 %v2306_v3, %v2305_v35 }
 0x3a8   : > { %v4565_v9 = vpop.f32.mrb[14].mxu1 }
 0x3a9   : > { %2248 = vst.msk [vmem:[%s4185_s30 + $0xf8] sm:$0xff] %vm2216_vm11, %v4565_v9  ;;  %v4572_v42 = vpop.f32.mrb[15].mxu1 }
 0x3aa   : > { %2247 = vst.msk [vmem:[%s4185_s30 + $0xf0] sm:$0xff] %vm2216_vm11, %v4572_v42  ;;  %v2308_v12 = vsel %vm2216_vm11, %v4572_v42, 0.0 }
 0x3ab   : > { %v2309_v46 = vadd.f32 %v2308_v12, %v2307_v8 }
 0x3ac   : > { %3133 = shalt.err (!%p3130_p5)
}
 0x3ad   : > { %s3134_s7 = scalar_lea.hbm %s4563_s6, 4096  ;;  %s3138_s19 = scalar_lea.hbm %s4764_s2, 8192 }
 0x3ae   : > { %p3135_p9 = scmp.ne.s32.totalorder %s4563_s6, %s3134_s7  ;;  %p3139_p3 = scmp.lt.u32.totalorder %s4563_s6, %s4764_s2 }
 0x3af   : > { %p3140_p7 = scmp.lt.u32.totalorder %s3138_s19, %s3134_s7  ;;  %p3142_p4 = scmp.lt.u32.totalorder %s3134_s7, %s4563_s6 }
 0x3b0   : > { %p3136_p1 = pnand %p3135_p9, %p3370_p10 }
 0x3b1   : > { %p3141_p11 = por %p3140_p7, %p3139_p3 }
 0x3b2   : > { %p3137_p2 = pneg %p3136_p1 }
 0x3b3   : > { %p3143_p6 = por %p3142_p4, %p3141_p11 }
 0x3b5   : > { %p3144_p8 = pnand %p3143_p6, %p3137_p2 }
 0x3b7   : > { %3147 = shalt.err (!%p3144_p8)
}
 0x3b8   : > { %s3253_s4 = smov 128   ;;  %v2310_v4 = vsel %vm2216_vm11, %v4565_v9, 0.0  ;;  %vm2452_vm12 = vcmask 1040384   ;;  %vm2454_vm13 = vcmask 58368   ;;  %s2462_s10 = scalar_lea.sflag [#allocation10], %s3427_s25 }
 0x3b9   : > { %2979 = dma.vmem_to_hbm [thread:$0]  (%p3370_p10), %s4567_s27, 4096, %s4563_s6, %s2457_s9, %s3253_s4, %s3253_s4, %s3245_s20   ;;  %v2311_v23 = vadd.f32 %v2310_v4, %v2309_v46 }
 0x3ba   : > { %s2627_s20 = sshll.u32 %s3427_s25, 1  ;;  %s2857_s27 = sshll.u32 %s3230_s15, 5 }
 0x3bb   : > { %v2312_v16 = vrot.slane %v2311_v23, 4  ;;  %s237_s26 = scalar_lea.vmem [#allocation9], %s2627_s20  ;;  %s4712_s24 = scalar_lea.hbm %s4765_s3, %s2857_s27 }
 0x3bc   : > { %s2493_s6 = sshll.u32 %s237_s26, 4  ;;  %s3254_s11 = smov [#allocation9]   ;;  %s4714_s6 = int_to_ptr.vmem [resolvable:$true] %s2493_s6 }
 0x3bd   : > { %v2313_v5 = vadd.f32 %v2312_v16, %v2311_v23  ;;  %s3148_s15 = scalar_lea.vmem %s4714_s6, 32  ;;  %s3152_s7 = sshll.u32 %s3254_s11, 4  ;;  %s3153_s7 = int_to_ptr.vmem [resolvable:$false] %s3152_s7 }
 0x3be   : > { %p3149_p12 = scmp.ne.s32.totalorder %s4714_s6, %s3148_s15  ;;  %s3154_s8 = scalar_lea.vmem %s3153_s7, 64 }
 0x3bf   : > { %v2314_v47 = vrot.slane %v2313_v5, 2  ;;  %p3155_p5 = scmp.lt.s32.totalorder %s4714_s6, %s3153_s7  ;;  %p3156_p9 = scmp.lt.s32.totalorder %s3154_s8, %s3148_s15 }
 0x3c0   : > { %p3150_p13 = pnand %p3149_p12, %p3370_p10 }
 0x3c1   : > { %v2315_v39 = vadd.f32 %v2314_v47, %v2313_v5  ;;  %p3157_p1 = por %p3156_p9, %p3155_p5 }
 0x3c2   : > { %p3151_p0 = pneg %p3150_p13 }
 0x3c3   : > { %v2316_v51 = vrot.slane %v2315_v39, 1 }
 0x3c4   : > { %p3158_p2 = pnand %p3157_p1, %p3151_p0 }
 0x3c5   : > { %v4606_v52 = vadd.f32 %v2316_v51, %v2315_v39 }
 0x3c7   : > { %v4609_v44 = vmul.f32 0.00390625, %v4606_v52 }
 0x3c9   : > { %v2319_v53 = vsub.f32 %v4192_v13, %v4609_v44  ;;  %v2320_v6 = vsub.f32 %v4182_v38, %v4609_v44  ;;  %v2321_v17 = vsub.f32 %v4240_v59, %v4609_v44  ;;  %v2322_v45 = vsub.f32 %v4234_v58, %v4609_v44 }
 0x3ca   : > { %v2323_v7 = vsub.f32 %v4290_v28, %v4609_v44  ;;  %v2324_v31 = vsub.f32 %v4284_v22, %v4609_v44  ;;  %v2325_v59 = vsub.f32 %v4334_v30, %v4609_v44  ;;  %v2326_v28 = vsub.f32 %v4328_v33, %v4609_v44 }
 0x3cb   : > { %v2351_v54 = vmul.f32 %v2319_v53, %v2319_v53  ;;  %v2352_v56 = vmul.f32 %v2320_v6, %v2320_v6  ;;  %v2353_v57 = vmul.f32 %v2321_v17, %v2321_v17  ;;  %v2354_v48 = vmul.f32 %v2322_v45, %v2322_v45 }
 0x3cc   : > { %v2355_v36 = vmul.f32 %v2323_v7, %v2323_v7  ;;  %v2356_v10 = vmul.f32 %v2324_v31, %v2324_v31  ;;  %v2327_v37 = vsub.f32 %v4364_v1, %v4609_v44  ;;  %v2357_v27 = vmul.f32 %v2325_v59, %v2325_v59 }
 0x3cd   : > { %v2383_v13 = vsel %vm2216_vm11, %v2351_v54, 0.0  ;;  %v2384_v38 = vsel %vm2216_vm11, %v2352_v56, 0.0  ;;  %v2386_v58 = vsel %vm2216_vm11, %v2353_v57, 0.0  ;;  %v2388_v20 = vsel %vm2216_vm11, %v2354_v48, 0.0 }
 0x3ce   : > { %v2385_v62 = vadd.f32 %v2384_v38, %v2383_v13  ;;  %v2390_v11 = vsel %vm2216_vm11, %v2355_v36, 0.0  ;;  %v2328_v30 = vsub.f32 %v4358_v15, %v4609_v44  ;;  %v2358_v3 = vmul.f32 %v2326_v28, %v2326_v28 }
 0x3cf   : > { %v2392_v8 = vsel %vm2216_vm11, %v2356_v10, 0.0  ;;  %v2329_v33 = vsub.f32 %v4394_v50, %v4609_v44  ;;  %v2359_v46 = vmul.f32 %v2327_v37, %v2327_v37  ;;  %v2394_v4 = vsel %vm2216_vm11, %v2357_v27, 0.0 }
 0x3d0   : > { %v2387_v26 = vadd.f32 %v2386_v58, %v2385_v62  ;;  %v2330_v1 = vsub.f32 %v4388_v21, %v4609_v44  ;;  %v2360_v16 = vmul.f32 %v2328_v30, %v2328_v30  ;;  %v2396_v5 = vsel %vm2216_vm11, %v2358_v3, 0.0 }
 0x3d1   : > { %v2331_v15 = vsub.f32 %v4424_v63, %v4609_v44  ;;  %v2361_v39 = vmul.f32 %v2329_v33, %v2329_v33  ;;  %v2398_v51 = vsel %vm2216_vm11, %v2359_v46, 0.0  ;;  %v2332_v50 = vsub.f32 %v4418_v19, %v4609_v44 }
 0x3d2   : > { %v2389_v22 = vadd.f32 %v2388_v20, %v2387_v26  ;;  %v2362_v6 = vmul.f32 %v2330_v1, %v2330_v1  ;;  %v2400_v17 = vsel %vm2216_vm11, %v2360_v16, 0.0  ;;  %v2333_v21 = vsub.f32 %v4451_v40, %v4609_v44 }
 0x3d3   : > { %v2363_v54 = vmul.f32 %v2331_v15, %v2331_v15  ;;  %v2402_v56 = vsel %vm2216_vm11, %v2361_v39, 0.0  ;;  %v2334_v63 = vsub.f32 %v4446_v43, %v4609_v44  ;;  %v2364_v57 = vmul.f32 %v2332_v50, %v2332_v50 }
 0x3d4   : > { %v2391_v35 = vadd.f32 %v2390_v11, %v2389_v22  ;;  %v2404_v31 = vsel %vm2216_vm11, %v2362_v6, 0.0  ;;  %v2335_v19 = vsub.f32 %v4465_v29, %v4609_v44  ;;  %v2365_v13 = vmul.f32 %v2333_v21, %v2333_v21 }
 0x3d5   : > { %v2406_v38 = vsel %vm2216_vm11, %v2363_v54, 0.0  ;;  %v2336_v40 = vsub.f32 %v4460_v41, %v4609_v44  ;;  %v2366_v59 = vmul.f32 %v2334_v63, %v2334_v63  ;;  %v2408_v36 = vsel %vm2216_vm11, %v2364_v57, 0.0 }
 0x3d6   : > { %v2393_v12 = vadd.f32 %v2392_v8, %v2391_v35  ;;  %v2337_v43 = vsub.f32 %v4479_v14, %v4609_v44  ;;  %v2367_v26 = vmul.f32 %v2335_v19, %v2335_v19  ;;  %v2410_v28 = vsel %vm2216_vm11, %v2365_v13, 0.0 }
 0x3d7   : > { %v2338_v29 = vsub.f32 %v4474_v49, %v4609_v44  ;;  %v2368_v20 = vmul.f32 %v2336_v40, %v2336_v40  ;;  %v2412_v22 = vsel %vm2216_vm11, %v2366_v59, 0.0  ;;  %v2339_v41 = vsub.f32 %v4493_v24, %v4609_v44 }
 0x3d8   : > { %v2395_v23 = vadd.f32 %v2394_v4, %v2393_v12  ;;  %v2369_v27 = vmul.f32 %v2337_v43, %v2337_v43  ;;  %v2414_v11 = vsel %vm2216_vm11, %v2367_v26, 0.0  ;;  %v2340_v14 = vsub.f32 %v4488_v32, %v4609_v44 }
 0x3d9   : > { %v2370_v30 = vmul.f32 %v2338_v29, %v2338_v29  ;;  %v2416_v3 = vsel %vm2216_vm11, %v2368_v20, 0.0  ;;  %v2341_v49 = vsub.f32 %v4507_v25, %v4609_v44  ;;  %v2371_v12 = vmul.f32 %v2339_v41, %v2339_v41 }
 0x3da   : > { %v2397_v47 = vadd.f32 %v2396_v5, %v2395_v23  ;;  %v2418_v33 = vsel %vm2216_vm11, %v2369_v27, 0.0  ;;  %v2342_v24 = vsub.f32 %v4502_v55, %v4609_v44  ;;  %v2372_v4 = vmul.f32 %v2340_v14, %v2340_v14 }
 0x3db   : > { %v2420_v23 = vsel %vm2216_vm11, %v2370_v30, 0.0  ;;  %v2343_v32 = vsub.f32 %v4521_v61, %v4609_v44  ;;  %v2373_v16 = vmul.f32 %v2341_v49, %v2341_v49  ;;  %v2422_v5 = vsel %vm2216_vm11, %v2371_v12, 0.0 }
 0x3dc   : > { %v2399_v53 = vadd.f32 %v2398_v51, %v2397_v47  ;;  %v2344_v25 = vsub.f32 %v4516_v60, %v4609_v44  ;;  %v2374_v15 = vmul.f32 %v2342_v24, %v2342_v24  ;;  %v2424_v39 = vsel %vm2216_vm11, %v2372_v4, 0.0 }
 0x3dd   : > { %v2345_v55 = vsub.f32 %v4535_v2, %v4609_v44  ;;  %v2426_v50 = vsel %vm2216_vm11, %v2373_v16, 0.0  ;;  %v2346_v61 = vsub.f32 %v4530_v0, %v4609_v44  ;;  %v2347_v60 = vsub.f32 %v4549_v18, %v4609_v44 }
 0x3de   : > { %v2401_v45 = vadd.f32 %v2400_v17, %v2399_v53  ;;  %v2375_v53 = vmul.f32 %v2343_v32, %v2343_v32  ;;  %v2376_v17 = vmul.f32 %v2344_v25, %v2344_v25  ;;  %v2348_v2 = vsub.f32 %v4544_v34, %v4609_v44 }
 0x3df   : > { %v2377_v54 = vmul.f32 %v2345_v55, %v2345_v55  ;;  %v2378_v63 = vmul.f32 %v2346_v61, %v2346_v61  ;;  %v2349_v0 = vsub.f32 %v4572_v42, %v4609_v44  ;;  %v2350_v18 = vsub.f32 %v4565_v9, %v4609_v44 }
 0x3e0   : > { %v2403_v7 = vadd.f32 %v2402_v56, %v2401_v45  ;;  %v2428_v45 = vsel %vm2216_vm11, %v2374_v15, 0.0  ;;  %v2430_v56 = vsel %vm2216_vm11, %v2375_v53, 0.0  ;;  %v2432_v57 = vsel %vm2216_vm11, %v2376_v17, 0.0 }
 0x3e1   : > { %v2434_v19 = vsel %vm2216_vm11, %v2377_v54, 0.0  ;;  %v2381_v34 = vmul.f32 %v2349_v0, %v2349_v0 }
 0x3e2   : > { %v2405_v48 = vadd.f32 %v2404_v31, %v2403_v7 }
 0x3e3   : > { %v2442_v26 = vsel %vm2216_vm11, %v2381_v34, 0.0 }
 0x3e4   : > { %v2407_v62 = vadd.f32 %v2406_v38, %v2405_v48  ;;  %v2379_v48 = vmul.f32 %v2347_v60, %v2347_v60  ;;  %v2380_v38 = vmul.f32 %v2348_v2, %v2348_v2 }
 0x3e6   : > { %v2409_v58 = vadd.f32 %v2408_v36, %v2407_v62  ;;  %v2436_v62 = vsel %vm2216_vm11, %v2378_v63, 0.0  ;;  %v2438_v59 = vsel %vm2216_vm11, %v2379_v48, 0.0  ;;  %v2440_v42 = vsel %vm2216_vm11, %v2380_v38, 0.0 }
 0x3e8   : > { %v2411_v10 = vadd.f32 %v2410_v28, %v2409_v58  ;;  %v2382_v58 = vmul.f32 %v2350_v18, %v2350_v18 }
 0x3ea   : > { %v2413_v37 = vadd.f32 %v2412_v22, %v2411_v10  ;;  %v2444_v10 = vsel %vm2216_vm11, %v2382_v58, 0.0 }
 0x3ec   : > { %v2415_v35 = vadd.f32 %v2414_v11, %v2413_v37 }
 0x3ee   : > { %v2417_v8 = vadd.f32 %v2416_v3, %v2415_v35 }
 0x3f0   : > { %v2419_v46 = vadd.f32 %v2418_v33, %v2417_v8 }
 0x3f2   : > { %v2421_v1 = vadd.f32 %v2420_v23, %v2419_v46 }
 0x3f4   : > { %v2423_v47 = vadd.f32 %v2422_v5, %v2421_v1 }
 0x3f6   : > { %v2425_v51 = vadd.f32 %v2424_v39, %v2423_v47 }
 0x3f8   : > { %v2427_v6 = vadd.f32 %v2426_v50, %v2425_v51 }
 0x3fa   : > { %v2429_v21 = vadd.f32 %v2428_v45, %v2427_v6 }
 0x3fc   : > { %v2431_v7 = vadd.f32 %v2430_v56, %v2429_v21 }
 0x3fe   : > { %v2433_v31 = vadd.f32 %v2432_v57, %v2431_v7 }
 0x400   : > { %v2435_v13 = vadd.f32 %v2434_v19, %v2433_v31 }
 0x402   : > { %v2437_v40 = vadd.f32 %v2436_v62, %v2435_v13 }
 0x404   : > { %v2439_v36 = vadd.f32 %v2438_v59, %v2437_v40 }
 0x406   : > { %v2441_v43 = vadd.f32 %v2440_v42, %v2439_v36 }
 0x408   : > { %v2443_v28 = vadd.f32 %v2442_v26, %v2441_v43 }
 0x40a   : > { %v2445_v9 = vadd.f32 %v2444_v10, %v2443_v28 }
 0x40c   : > { %v2446_v44 = vrot.slane %v2445_v9, 4 }
 0x40e   : > { %v2447_v29 = vadd.f32 %v2446_v44, %v2445_v9 }
 0x410   : > { %v2448_v20 = vrot.slane %v2447_v29, 2 }
 0x412   : > { %v2449_v22 = vadd.f32 %v2448_v20, %v2447_v29 }
 0x414   : > { %v2450_v37 = vrot.slane %v2449_v22, 1 }
 0x416   : > { %v2451_v41 = vadd.f32 %v2450_v37, %v2449_v22 }
 0x418   : > { %v2453_v27 = vsel %vm2452_vm12, %v4606_v52, %v2451_v41 }
 0x419   : > { %2455 = vst.msk [vmem:[%s237_s26] sm:$0x3] %vm2454_vm13, %v2453_v27 }
 0x41a   : > { %3161 = shalt.err (!%p3158_p2)
}
 0x41b   : > { %s3162_s25 = scalar_lea.hbm %s4712_s24, 32  ;;  %s3166_s30 = scalar_lea.hbm %s4765_s3, 64 }
 0x41c   : > { %p3163_p3 = scmp.ne.s32.totalorder %s4712_s24, %s3162_s25  ;;  %p3167_p4 = scmp.lt.u32.totalorder %s4712_s24, %s4765_s3 }
 0x41d   : > { %p3168_p6 = scmp.lt.u32.totalorder %s3166_s30, %s3162_s25  ;;  %p3170_p12 = scmp.lt.u32.totalorder %s3162_s25, %s4712_s24 }
 0x41e   : > { %p3164_p7 = pnand %p3163_p3, %p3370_p10 }
 0x41f   : > { %p3169_p8 = por %p3168_p6, %p3167_p4 }
 0x420   : > { %p3165_p11 = pneg %p3164_p7 }
 0x421   : > { %p3171_p13 = por %p3170_p12, %p3169_p8 }
 0x423   : > { %p3172_p0 = pnand %p3171_p13, %p3165_p11 }
 0x425   : > { %3175 = shalt.err (!%p3172_p0)
}
 0x426   : > { %2980 = dma.vmem_to_hbm [thread:$0]  (%p3370_p10), %s4714_s6, 32, %s4712_s24, %s2462_s10  }
 0x427 PF: > { %s2505_s20 = sand.u32 1, %s3218_s12   ;;  %p4782_p5 = scmp.ne.s32.totalorder %s4773_s23, 0 }
 0x428   : > { %p4783_p9 = scmp.ge.s32.totalorder %s3238_s17, 2  ;;  %s2506_s27 = scalar_lea.sflag [#allocation5], %s2505_s20 }
 0x42a   : > { %p2992_p1 = pnand %p4783_p9, %p4782_p5 }
 0x42c   : > { %3209 = dma.done.wait (!%p2992_p1), %s2506_s27, 4096  }
 0x42d   : > { %3211 = vsyncadd (!%p2992_p1), %s2506_s27, 4294963200  ;;  %s2515_s26 = scalar_lea.sflag [#allocation10], %s2505_s20 }
 0x42e   : > { %3213 = dma.done.wait (!%p2992_p1), %s2515_s26, 32  }
 0x42f   : > { %3215 = vsyncadd (!%p2992_p1), %s2515_s26, 4294967264  ;;  %s24_s17 = sadd.s32 1, %s3238_s17   ;;  %s4784_s12 = smov %s3222_s13 }
 0x430   : > { %p21_p2 = scmp.ge.s32.totalorder %s24_s17, 4   ;;  %s4785_s13 = smov %s3226_s14 }
 0x431   : > { %s4786_s14 = smov %s3379_s5  ;;  %s4787_s15 = smov %s3234_s16 }
 0x432   : > { %s4788_s16 = smov %s4790_s28  ;;  %23 = sbr.rel (!%p21_p2) target bundleno = 9 (0x9), region = 101 }
 0x439   :  { %2520 = vsyncpa [#allocation4], 1 }
 0x43a   :  { %2522 = vsyncpa [#allocation4 + $0x1], 1 }
 0x43b   :  { %2523 = vsyncpa [#allocation7], 1 }
 0x43c   :  { %2524 = vsyncpa [#allocation5], 1 }
 0x43d   :  { %2526 = vsyncpa [#allocation5 + $0x1], 1 }
 0x43e   :  { %2527 = vsyncpa [#allocation10], 1 }
 0x43f   :  { %2529 = vsyncpa [#allocation10 + $0x1], 1 }

</bundles_post_ra>
